<compile_context>
chip_gen: v6e
topology: v6e:2x2x1
jax: 0.10.0
libtpu: 0.0.40
codegen_flags: <defaults>
</compile_context>

<pallas_src>
import math

import jax
import jax.numpy as jnp
from jax.experimental import pallas as pl
from jax.experimental.pallas import tpu as pltpu

# ----------------------------- config (small, shape-consistent) -----------------------------
B, S = 2, 8
BS = B * S
D_MODEL = 128
NUM_HEADS = 4
HEAD_DIM = D_MODEL // NUM_HEADS
D_FF = 256
NUM_LAYERS = 2
VOCAB = 256
PAD_INDEX = 0
MAX_LEN = 16
LN_EPS = 1e-5
NEG_INF = -1e9


# ----------------------------- fused forward kernel (no grid) -----------------------------
def _transformer_kernel(
    x_emb_ref, mask_ref,                                   # activations / mask
    w_qkv_ref, b_qkv_ref, wo_ref, bo_ref,                  # stacked [L, ...] layer weights
    w1_ref, b1_ref, w2_ref, b2_ref, ln_ref,
    norm_g_ref, norm_b_ref, proj_w_ref, proj_b_ref,        # final norm + projection
    logits_ref,                                            # output
):
    x = x_emb_ref[...]                        # [BS, D] f32 (resident activation, in registers)
    mem_bf = x.astype(jnp.bfloat16)           # decoder memory = embedded input; cast ONCE

    # additive causal+pad mask, precomputed in the wrapper; tiled to (head, batch) order once
    mask_b = mask_ref[...]                                            # [B, S, S] f32 (0 / -1e9)
    mask_bh = jnp.concatenate([mask_b] * NUM_HEADS, axis=0)           # [H*B, S, S]

    scale = 1.0 / math.sqrt(HEAD_DIM)

    def layer_norm(v, g, b):
        # f32 statistics (v5e has no native bf16 VPU/EUP)
        mu = jnp.mean(v, axis=-1, keepdims=True)
        var = jnp.mean((v - mu) ** 2, axis=-1, keepdims=True)
        return (v - mu) * jax.lax.rsqrt(var + LN_EPS) * g + b

    def split_heads(t):
        # [BS, D] f32 (heads packed along lanes) -> [H*B, S, Dh] bf16, batch order (head, batch)
        tb = t.astype(jnp.bfloat16)
        parts = [tb[:, h * HEAD_DIM:(h + 1) * HEAD_DIM] for h in range(NUM_HEADS)]
        return jnp.concatenate(parts, axis=0).reshape(NUM_HEADS * B, S, HEAD_DIM)

    def merge_heads(o):
        # [H*B, S, Dh] f32 -> [BS, D] f32, heads re-packed along lanes (registers, no scratch)
        o2 = o.reshape(NUM_HEADS * BS, HEAD_DIM)
        return jnp.concatenate(
            [o2[h * BS:(h + 1) * BS] for h in range(NUM_HEADS)], axis=1)

    def attend(q, k, v, masked):
        # batched (over B*H) attention: two MXU contractions per call
        qh, kh, vh = split_heads(q), split_heads(k), split_heads(v)
        s = jnp.einsum("bqd,bkd->bqk", qh, kh,
                       preferred_element_type=jnp.float32) * scale    # [H*B, S, S] f32
        if masked:
            s = s + mask_bh
        s = s - jnp.max(s, axis=-1, keepdims=True)
        p = jnp.exp(s)
        p = p * pl.reciprocal(jnp.sum(p, axis=-1, keepdims=True), approx=True)
        o = jnp.einsum("bqk,bkd->bqd", p.astype(jnp.bfloat16), vh,
                       preferred_element_type=jnp.float32)            # [H*B, S, Dh] f32
        return merge_heads(o)

    for l in range(NUM_LAYERS):               # static unrolled layer loop (NUM_LAYERS small)
        w_qkv = w_qkv_ref[l]                  # [D, 3D] bf16
        b_qkv = b_qkv_ref[l]                  # [1, 3D] f32
        wo = wo_ref[l]                        # [D, D]  bf16
        bo = bo_ref[l]                        # [1, D]  f32
        w1 = w1_ref[l]                        # [D, FF] bf16
        b1 = b1_ref[l]                        # [1, FF] f32
        w2 = w2_ref[l]                        # [FF, D] bf16
        b2 = b2_ref[l]                        # [1, D]  f32
        ln = ln_ref[l]                        # [6, D]  f32 (g1,b1,g2,b2,g3,b3)

        # ---- fused QKV: [x ; memory] @ W_qkv in one MXU pass (self-QKV + cross-KV) ----
        xm = jnp.concatenate([x.astype(jnp.bfloat16), mem_bf], axis=0)        # [2*BS, D]
        qkv = jnp.dot(xm, w_qkv, preferred_element_type=jnp.float32) + b_qkv  # [2*BS, 3D]
        q_s = qkv[:BS, :D_MODEL]
        k_s = qkv[:BS, D_MODEL:2 * D_MODEL]
        v_s = qkv[:BS, 2 * D_MODEL:]
        k_m = qkv[BS:, D_MODEL:2 * D_MODEL]
        v_m = qkv[BS:, 2 * D_MODEL:]

        # ---- self-attention (+ residual, post-norm LN1) ----
        a = attend(q_s, k_s, v_s, True)
        a = jnp.dot(a.astype(jnp.bfloat16), wo, preferred_element_type=jnp.float32) + bo
        x = layer_norm(x + a, ln[0:1, :], ln[1:2, :])

        # ---- cross-attention: Q from x, K/V from memory, shared weights, no mask ----
        q_c = (jnp.dot(x.astype(jnp.bfloat16), w_qkv[:, :D_MODEL],
                       preferred_element_type=jnp.float32) + b_qkv[:, :D_MODEL])
        a = attend(q_c, k_m, v_m, False)
        a = jnp.dot(a.astype(jnp.bfloat16), wo, preferred_element_type=jnp.float32) + bo
        x = layer_norm(x + a, ln[2:3, :], ln[3:4, :])

        # ---- FFN (+ residual, post-norm LN3) ----
        ff = jnp.dot(x.astype(jnp.bfloat16), w1, preferred_element_type=jnp.float32) + b1
        ff = jnp.maximum(ff, 0.0)
        f = jnp.dot(ff.astype(jnp.bfloat16), w2, preferred_element_type=jnp.float32) + b2
        x = layer_norm(x + f, ln[4:5, :], ln[5:6, :])

    # ---- final LayerNorm + vocab projection (lane-dense 256-wide output) ----
    y = layer_norm(x, norm_g_ref[...], norm_b_ref[...])
    logits_ref[...] = (
        jnp.dot(y.astype(jnp.bfloat16), proj_w_ref[...],
                preferred_element_type=jnp.float32) + proj_b_ref[...])


# ----------------------------- wrapper -----------------------------
def generator_transformer_forward(tgt_ids, params):
    Bq, Sq = tgt_ids.shape
    assert (Bq, Sq) == (B, S)

    # embedding gather (padding_idx row is zero) * sqrt(d_model) + sinusoidal PE  (XLA glue)
    x = params["emb"][tgt_ids] * math.sqrt(D_MODEL) + params["pe"][:Sq][None]
    x2d = x.reshape(BS, D_MODEL).astype(jnp.float32)

    # combined causal + key-padding additive mask (tgt_mask), precomputed once: [B, S, S]
    keep = (jnp.tril(jnp.ones((S, S), jnp.bool_))[None, :, :]
            & (tgt_ids != PAD_INDEX)[:, None, :])
    mask_add = jnp.where(keep, 0.0, NEG_INF).astype(jnp.float32)

    n_inputs = 15
    logits = pl.pallas_call(
        _transformer_kernel,
        out_shape=jax.ShapeDtypeStruct((BS, VOCAB), jnp.float32),
        in_specs=[pl.BlockSpec(memory_space=pltpu.MemorySpace.VMEM)] * n_inputs,
        out_specs=pl.BlockSpec(memory_space=pltpu.MemorySpace.VMEM),
    )(
        x2d, mask_add,
        params["w_qkv"], params["b_qkv"], params["wo"], params["bo"],
        params["w1"], params["b1"], params["w2"], params["b2"], params["ln"],
        params["norm_g"], params["norm_b"], params["proj_w"], params["proj_b"],
    )
    return logits.reshape(Bq, Sq, VOCAB)


# ----------------------------- deterministic parameter init -----------------------------
def _dense_init(key, fan_in, fan_out):
    return jax.random.normal(key, (fan_in, fan_out), jnp.float32) * 0.02


def init_params(key):
    keys = iter(jax.random.split(key, 2 + NUM_LAYERS * 6))
    params = {}

    emb = jax.random.normal(next(keys), (VOCAB, D_MODEL), jnp.float32) * 0.02
    params["emb"] = emb.at[PAD_INDEX].set(0.0)                    # padding_idx row = 0

    pos = jnp.arange(MAX_LEN, dtype=jnp.float32)[:, None]
    div = jnp.exp(jnp.arange(0, D_MODEL, 2, dtype=jnp.float32)
                  * (-math.log(10000.0) / D_MODEL))
    pe = jnp.zeros((MAX_LEN, D_MODEL), jnp.float32)
    pe = pe.at[:, 0::2].set(jnp.sin(pos * div))
    pe = pe.at[:, 1::2].set(jnp.cos(pos * div))
    params["pe"] = pe

    w_qkv, b_qkv, wo, bo, w1, b1, w2, b2, ln = ([] for _ in range(9))
    for _ in range(NUM_LAYERS):
        wq = _dense_init(next(keys), D_MODEL, D_MODEL)
        wk = _dense_init(next(keys), D_MODEL, D_MODEL)
        wv = _dense_init(next(keys), D_MODEL, D_MODEL)
        w_qkv.append(jnp.concatenate([wq, wk, wv], axis=1))       # [D, 3D]
        b_qkv.append(jnp.zeros((1, 3 * D_MODEL), jnp.float32))
        wo.append(_dense_init(next(keys), D_MODEL, D_MODEL))
        bo.append(jnp.zeros((1, D_MODEL), jnp.float32))
        w1.append(_dense_init(next(keys), D_MODEL, D_FF))
        b1.append(jnp.zeros((1, D_FF), jnp.float32))
        w2.append(_dense_init(next(keys), D_FF, D_MODEL))
        b2.append(jnp.zeros((1, D_MODEL), jnp.float32))
        ln.append(jnp.stack([
            jnp.ones((D_MODEL,), jnp.float32), jnp.zeros((D_MODEL,), jnp.float32),   # LN1
            jnp.ones((D_MODEL,), jnp.float32), jnp.zeros((D_MODEL,), jnp.float32),   # LN2
            jnp.ones((D_MODEL,), jnp.float32), jnp.zeros((D_MODEL,), jnp.float32),   # LN3
        ]))

    params["w_qkv"] = jnp.stack(w_qkv).astype(jnp.bfloat16)       # [L, D, 3D]
    params["b_qkv"] = jnp.stack(b_qkv)                            # [L, 1, 3D]
    params["wo"] = jnp.stack(wo).astype(jnp.bfloat16)             # [L, D, D]
    params["bo"] = jnp.stack(bo)
    params["w1"] = jnp.stack(w1).astype(jnp.bfloat16)             # [L, D, FF]
    params["b1"] = jnp.stack(b1)
    params["w2"] = jnp.stack(w2).astype(jnp.bfloat16)             # [L, FF, D]
    params["b2"] = jnp.stack(b2)
    params["ln"] = jnp.stack(ln)                                  # [L, 6, D]

    params["norm_g"] = jnp.ones((1, D_MODEL), jnp.float32)
    params["norm_b"] = jnp.zeros((1, D_MODEL), jnp.float32)
    params["proj_w"] = _dense_init(next(keys), D_MODEL, VOCAB).astype(jnp.bfloat16)
    params["proj_b"] = jnp.zeros((1, VOCAB), jnp.float32)
    return params


# TODO(synk): generate()/beam_search() are host-side autoregressive/beam loops around
# forward(); they wrap this kernel outside Pallas and are not part of the translation.

if __name__ == "__main__":
    key = jax.random.PRNGKey(0)
    pkey, dkey = jax.random.split(key)
    params = init_params(pkey)
    tgt_ids = jax.random.randint(dkey, (B, S), 0, VOCAB, dtype=jnp.int32)

    logits = jax.jit(generator_transformer_forward)(tgt_ids, params)
    logits = jax.block_until_ready(logits)
    assert logits.shape == (B, S, VOCAB)
    assert bool(jnp.all(jnp.isfinite(logits)))
    print("KERNEL_OK")
</pallas_src>

<mosaic_0001>
module attributes {stable_mosaic.version = 11 : i64} {
  func.func @_transformer_kernel(%arg0: memref<16x128xf32, #tpu.memory_space<vmem>>, %arg1: memref<2x8x8xf32, #tpu.memory_space<vmem>>, %arg2: memref<2x128x384xbf16, #tpu.memory_space<vmem>>, %arg3: memref<2x1x384xf32, #tpu.memory_space<vmem>>, %arg4: memref<2x128x128xbf16, #tpu.memory_space<vmem>>, %arg5: memref<2x1x128xf32, #tpu.memory_space<vmem>>, %arg6: memref<2x128x256xbf16, #tpu.memory_space<vmem>>, %arg7: memref<2x1x256xf32, #tpu.memory_space<vmem>>, %arg8: memref<2x256x128xbf16, #tpu.memory_space<vmem>>, %arg9: memref<2x1x128xf32, #tpu.memory_space<vmem>>, %arg10: memref<2x6x128xf32, #tpu.memory_space<vmem>>, %arg11: memref<1x128xf32, #tpu.memory_space<vmem>>, %arg12: memref<1x128xf32, #tpu.memory_space<vmem>>, %arg13: memref<128x256xbf16, #tpu.memory_space<vmem>>, %arg14: memref<1x256xf32, #tpu.memory_space<vmem>>, %arg15: memref<16x256xf32, #tpu.memory_space<vmem>>) attributes {dimension_semantics = [], scalar_prefetch = 0 : i64, scratch_operands = 0 : i64, tpu.core_type = #tpu.core_type<tc>} {
    %c0 = arith.constant 0 : index
    %c0_0 = arith.constant 0 : index
    %0 = vector.load %arg0[%c0, %c0_0] : memref<16x128xf32, #tpu.memory_space<vmem>>, vector<16x128xf32>
    %1 = arith.truncf %0 : vector<16x128xf32> to vector<16x128xbf16>
    %c0_1 = arith.constant 0 : index
    %c0_2 = arith.constant 0 : index
    %c0_3 = arith.constant 0 : index
    %2 = vector.load %arg1[%c0_1, %c0_2, %c0_3] : memref<2x8x8xf32, #tpu.memory_space<vmem>>, vector<2x8x8xf32>
    %3 = tpu.concatenate %2, %2, %2, %2 in 0 : vector<2x8x8xf32>, vector<2x8x8xf32>, vector<2x8x8xf32>, vector<2x8x8xf32> -> vector<8x8x8xf32>
    %c0_4 = arith.constant 0 : index
    %c0_5 = arith.constant 0 : index
    %c0_6 = arith.constant 0 : index
    %4 = vector.load %arg2[%c0_4, %c0_5, %c0_6] : memref<2x128x384xbf16, #tpu.memory_space<vmem>>, vector<1x128x384xbf16>
    %5 = vector.shape_cast %4 : vector<1x128x384xbf16> to vector<128x384xbf16>
    %c0_7 = arith.constant 0 : index
    %c0_8 = arith.constant 0 : index
    %c0_9 = arith.constant 0 : index
    %6 = vector.load %arg3[%c0_7, %c0_8, %c0_9] : memref<2x1x384xf32, #tpu.memory_space<vmem>>, vector<1x1x384xf32>
    %7 = vector.shape_cast %6 : vector<1x1x384xf32> to vector<1x384xf32>
    %c0_10 = arith.constant 0 : index
    %c0_11 = arith.constant 0 : index
    %c0_12 = arith.constant 0 : index
    %8 = vector.load %arg4[%c0_10, %c0_11, %c0_12] : memref<2x128x128xbf16, #tpu.memory_space<vmem>>, vector<1x128x128xbf16>
    %9 = vector.shape_cast %8 : vector<1x128x128xbf16> to vector<128x128xbf16>
    %c0_13 = arith.constant 0 : index
    %c0_14 = arith.constant 0 : index
    %c0_15 = arith.constant 0 : index
    %10 = vector.load %arg5[%c0_13, %c0_14, %c0_15] : memref<2x1x128xf32, #tpu.memory_space<vmem>>, vector<1x1x128xf32>
    %11 = vector.shape_cast %10 : vector<1x1x128xf32> to vector<1x128xf32>
    %c0_16 = arith.constant 0 : index
    %c0_17 = arith.constant 0 : index
    %c0_18 = arith.constant 0 : index
    %12 = vector.load %arg6[%c0_16, %c0_17, %c0_18] : memref<2x128x256xbf16, #tpu.memory_space<vmem>>, vector<1x128x256xbf16>
    %13 = vector.shape_cast %12 : vector<1x128x256xbf16> to vector<128x256xbf16>
    %c0_19 = arith.constant 0 : index
    %c0_20 = arith.constant 0 : index
    %c0_21 = arith.constant 0 : index
    %14 = vector.load %arg7[%c0_19, %c0_20, %c0_21] : memref<2x1x256xf32, #tpu.memory_space<vmem>>, vector<1x1x256xf32>
    %15 = vector.shape_cast %14 : vector<1x1x256xf32> to vector<1x256xf32>
    %c0_22 = arith.constant 0 : index
    %c0_23 = arith.constant 0 : index
    %c0_24 = arith.constant 0 : index
    %16 = vector.load %arg8[%c0_22, %c0_23, %c0_24] : memref<2x256x128xbf16, #tpu.memory_space<vmem>>, vector<1x256x128xbf16>
    %17 = vector.shape_cast %16 : vector<1x256x128xbf16> to vector<256x128xbf16>
    %c0_25 = arith.constant 0 : index
    %c0_26 = arith.constant 0 : index
    %c0_27 = arith.constant 0 : index
    %18 = vector.load %arg9[%c0_25, %c0_26, %c0_27] : memref<2x1x128xf32, #tpu.memory_space<vmem>>, vector<1x1x128xf32>
    %19 = vector.shape_cast %18 : vector<1x1x128xf32> to vector<1x128xf32>
    %c0_28 = arith.constant 0 : index
    %c0_29 = arith.constant 0 : index
    %c0_30 = arith.constant 0 : index
    %20 = vector.load %arg10[%c0_28, %c0_29, %c0_30] : memref<2x6x128xf32, #tpu.memory_space<vmem>>, vector<1x6x128xf32>
    %21 = vector.shape_cast %20 : vector<1x6x128xf32> to vector<6x128xf32>
    %22 = arith.truncf %0 : vector<16x128xf32> to vector<16x128xbf16>
    %23 = tpu.concatenate %22, %1 in 0 : vector<16x128xbf16>, vector<16x128xbf16> -> vector<32x128xbf16>
    %cst = arith.constant dense<0.000000e+00> : vector<32x384xf32>
    %24 = tpu.matmul %23, %5, %cst {dimension_numbers = #tpu.dot_dimension_numbers<[1], [0], [0], [1], [0, 0, 1, 1], [], []>} : vector<32x128xbf16>, vector<128x384xbf16>, vector<32x384xf32> -> vector<32x384xf32>
    %25 = vector.broadcast %7 : vector<1x384xf32> to vector<32x384xf32>
    %26 = arith.addf %24, %25 : vector<32x384xf32>
    %27 = vector.extract_strided_slice %26 {offsets = [0, 0], sizes = [16, 128], strides = [1, 1]} : vector<32x384xf32> to vector<16x128xf32>
    %28 = vector.extract_strided_slice %26 {offsets = [0, 128], sizes = [16, 128], strides = [1, 1]} : vector<32x384xf32> to vector<16x128xf32>
    %29 = vector.extract_strided_slice %26 {offsets = [0, 256], sizes = [16, 128], strides = [1, 1]} : vector<32x384xf32> to vector<16x128xf32>
    %30 = vector.extract_strided_slice %26 {offsets = [16, 128], sizes = [16, 128], strides = [1, 1]} : vector<32x384xf32> to vector<16x128xf32>
    %31 = vector.extract_strided_slice %26 {offsets = [16, 256], sizes = [16, 128], strides = [1, 1]} : vector<32x384xf32> to vector<16x128xf32>
    %32 = arith.truncf %27 : vector<16x128xf32> to vector<16x128xbf16>
    %33 = vector.extract_strided_slice %32 {offsets = [0, 0], sizes = [16, 32], strides = [1, 1]} : vector<16x128xbf16> to vector<16x32xbf16>
    %34 = vector.extract_strided_slice %32 {offsets = [0, 32], sizes = [16, 32], strides = [1, 1]} : vector<16x128xbf16> to vector<16x32xbf16>
    %35 = vector.extract_strided_slice %32 {offsets = [0, 64], sizes = [16, 32], strides = [1, 1]} : vector<16x128xbf16> to vector<16x32xbf16>
    %36 = vector.extract_strided_slice %32 {offsets = [0, 96], sizes = [16, 32], strides = [1, 1]} : vector<16x128xbf16> to vector<16x32xbf16>
    %37 = tpu.concatenate %33, %34, %35, %36 in 0 : vector<16x32xbf16>, vector<16x32xbf16>, vector<16x32xbf16>, vector<16x32xbf16> -> vector<64x32xbf16>
    %38 = vector.shape_cast %37 : vector<64x32xbf16> to vector<8x8x32xbf16>
    %39 = arith.truncf %28 : vector<16x128xf32> to vector<16x128xbf16>
    %40 = vector.extract_strided_slice %39 {offsets = [0, 0], sizes = [16, 32], strides = [1, 1]} : vector<16x128xbf16> to vector<16x32xbf16>
    %41 = vector.extract_strided_slice %39 {offsets = [0, 32], sizes = [16, 32], strides = [1, 1]} : vector<16x128xbf16> to vector<16x32xbf16>
    %42 = vector.extract_strided_slice %39 {offsets = [0, 64], sizes = [16, 32], strides = [1, 1]} : vector<16x128xbf16> to vector<16x32xbf16>
    %43 = vector.extract_strided_slice %39 {offsets = [0, 96], sizes = [16, 32], strides = [1, 1]} : vector<16x128xbf16> to vector<16x32xbf16>
    %44 = tpu.concatenate %40, %41, %42, %43 in 0 : vector<16x32xbf16>, vector<16x32xbf16>, vector<16x32xbf16>, vector<16x32xbf16> -> vector<64x32xbf16>
    %45 = vector.shape_cast %44 : vector<64x32xbf16> to vector<8x8x32xbf16>
    %46 = arith.truncf %29 : vector<16x128xf32> to vector<16x128xbf16>
    %47 = vector.extract_strided_slice %46 {offsets = [0, 0], sizes = [16, 32], strides = [1, 1]} : vector<16x128xbf16> to vector<16x32xbf16>
    %48 = vector.extract_strided_slice %46 {offsets = [0, 32], sizes = [16, 32], strides = [1, 1]} : vector<16x128xbf16> to vector<16x32xbf16>
    %49 = vector.extract_strided_slice %46 {offsets = [0, 64], sizes = [16, 32], strides = [1, 1]} : vector<16x128xbf16> to vector<16x32xbf16>
    %50 = vector.extract_strided_slice %46 {offsets = [0, 96], sizes = [16, 32], strides = [1, 1]} : vector<16x128xbf16> to vector<16x32xbf16>
    %51 = tpu.concatenate %47, %48, %49, %50 in 0 : vector<16x32xbf16>, vector<16x32xbf16>, vector<16x32xbf16>, vector<16x32xbf16> -> vector<64x32xbf16>
    %52 = vector.shape_cast %51 : vector<64x32xbf16> to vector<8x8x32xbf16>
    "tpu.trace_start"() <{level = 10 : i32, message = "bqd,bkd->bqk"}> : () -> ()
    %cst_31 = arith.constant dense<0.000000e+00> : vector<8x8x8xf32>
    %53 = tpu.matmul %38, %45, %cst_31 {dimension_numbers = #tpu.dot_dimension_numbers<[2], [2], [1], [1], [0, 0, 0, 1, 1, 1], [0], [0]>} : vector<8x8x32xbf16>, vector<8x8x32xbf16>, vector<8x8x8xf32> -> vector<8x8x8xf32>
    "tpu.trace_stop"() : () -> ()
    %cst_32 = arith.constant 0.176776692 : f32
    %54 = vector.broadcast %cst_32 : f32 to vector<8x8x8xf32>
    %55 = arith.mulf %53, %54 : vector<8x8x8xf32>
    %56 = arith.addf %55, %3 : vector<8x8x8xf32>
    %cst_33 = arith.constant dense<0xFF800000> : vector<8x8xf32>
    %57 = vector.multi_reduction <maximumf>, %56, %cst_33 [2] : vector<8x8x8xf32> to vector<8x8xf32>
    %58 = vector.shape_cast %57 : vector<8x8xf32> to vector<8x8x1xf32>
    %59 = vector.broadcast %58 : vector<8x8x1xf32> to vector<8x8x8xf32>
    %60 = arith.subf %56, %59 : vector<8x8x8xf32>
    %61 = math.exp %60 : vector<8x8x8xf32>
    %cst_34 = arith.constant dense<0.000000e+00> : vector<8x8xf32>
    %62 = vector.multi_reduction <add>, %61, %cst_34 [2] : vector<8x8x8xf32> to vector<8x8xf32>
    %63 = vector.shape_cast %62 : vector<8x8xf32> to vector<8x8x1xf32>
    %64 = tpu.reciprocal %63 {approx = true} : vector<8x8x1xf32> -> vector<8x8x1xf32>
    %65 = vector.broadcast %64 : vector<8x8x1xf32> to vector<8x8x8xf32>
    %66 = arith.mulf %61, %65 : vector<8x8x8xf32>
    %67 = arith.truncf %66 : vector<8x8x8xf32> to vector<8x8x8xbf16>
    "tpu.trace_start"() <{level = 10 : i32, message = "bqk,bkd->bqd"}> : () -> ()
    %cst_35 = arith.constant dense<0.000000e+00> : vector<8x8x32xf32>
    %68 = tpu.matmul %67, %52, %cst_35 {dimension_numbers = #tpu.dot_dimension_numbers<[2], [1], [1], [2], [0, 0, 0, 1, 1, 2], [0], [0]>} : vector<8x8x8xbf16>, vector<8x8x32xbf16>, vector<8x8x32xf32> -> vector<8x8x32xf32>
    "tpu.trace_stop"() : () -> ()
    %69 = vector.shape_cast %68 : vector<8x8x32xf32> to vector<64x32xf32>
    %70 = vector.extract_strided_slice %69 {offsets = [0, 0], sizes = [16, 32], strides = [1, 1]} : vector<64x32xf32> to vector<16x32xf32>
    %71 = vector.extract_strided_slice %69 {offsets = [16, 0], sizes = [16, 32], strides = [1, 1]} : vector<64x32xf32> to vector<16x32xf32>
    %72 = vector.extract_strided_slice %69 {offsets = [32, 0], sizes = [16, 32], strides = [1, 1]} : vector<64x32xf32> to vector<16x32xf32>
    %73 = vector.extract_strided_slice %69 {offsets = [48, 0], sizes = [16, 32], strides = [1, 1]} : vector<64x32xf32> to vector<16x32xf32>
    %74 = tpu.concatenate %70, %71, %72, %73 in 1 : vector<16x32xf32>, vector<16x32xf32>, vector<16x32xf32>, vector<16x32xf32> -> vector<16x128xf32>
    %75 = arith.truncf %74 : vector<16x128xf32> to vector<16x128xbf16>
    %cst_36 = arith.constant dense<0.000000e+00> : vector<16x128xf32>
    %76 = tpu.matmul %75, %9, %cst_36 {dimension_numbers = #tpu.dot_dimension_numbers<[1], [0], [0], [1], [0, 0, 1, 1], [], []>} : vector<16x128xbf16>, vector<128x128xbf16>, vector<16x128xf32> -> vector<16x128xf32>
    %77 = vector.broadcast %11 : vector<1x128xf32> to vector<16x128xf32>
    %78 = arith.addf %76, %77 : vector<16x128xf32>
    %79 = arith.addf %0, %78 : vector<16x128xf32>
    %80 = vector.extract_strided_slice %21 {offsets = [0, 0], sizes = [1, 128], strides = [1, 1]} : vector<6x128xf32> to vector<1x128xf32>
    %81 = vector.extract_strided_slice %21 {offsets = [1, 0], sizes = [1, 128], strides = [1, 1]} : vector<6x128xf32> to vector<1x128xf32>
    %cst_37 = arith.constant dense<0.000000e+00> : vector<16xf32>
    %82 = vector.multi_reduction <add>, %79, %cst_37 [1] : vector<16x128xf32> to vector<16xf32>
    %83 = vector.shape_cast %82 : vector<16xf32> to vector<16x1xf32>
    %cst_38 = arith.constant 1.280000e+02 : f32
    %84 = vector.broadcast %cst_38 : f32 to vector<16x1xf32>
    %85 = arith.divf %83, %84 : vector<16x1xf32>
    %86 = vector.broadcast %85 : vector<16x1xf32> to vector<16x128xf32>
    %87 = arith.subf %79, %86 : vector<16x128xf32>
    %88 = arith.mulf %87, %87 : vector<16x128xf32>
    %cst_39 = arith.constant dense<0.000000e+00> : vector<16xf32>
    %89 = vector.multi_reduction <add>, %88, %cst_39 [1] : vector<16x128xf32> to vector<16xf32>
    %90 = vector.shape_cast %89 : vector<16xf32> to vector<16x1xf32>
    %cst_40 = arith.constant 1.280000e+02 : f32
    %91 = vector.broadcast %cst_40 : f32 to vector<16x1xf32>
    %92 = arith.divf %90, %91 : vector<16x1xf32>
    %93 = vector.broadcast %85 : vector<16x1xf32> to vector<16x128xf32>
    %94 = arith.subf %79, %93 : vector<16x128xf32>
    %cst_41 = arith.constant 9.99999974E-6 : f32
    %95 = vector.broadcast %cst_41 : f32 to vector<16x1xf32>
    %96 = arith.addf %92, %95 : vector<16x1xf32>
    %97 = math.rsqrt %96 : vector<16x1xf32>
    %98 = vector.broadcast %97 : vector<16x1xf32> to vector<16x128xf32>
    %99 = arith.mulf %94, %98 : vector<16x128xf32>
    %100 = vector.broadcast %80 : vector<1x128xf32> to vector<16x128xf32>
    %101 = arith.mulf %99, %100 : vector<16x128xf32>
    %102 = vector.broadcast %81 : vector<1x128xf32> to vector<16x128xf32>
    %103 = arith.addf %101, %102 : vector<16x128xf32>
    %104 = arith.truncf %103 : vector<16x128xf32> to vector<16x128xbf16>
    %105 = vector.extract_strided_slice %5 {offsets = [0, 0], sizes = [128, 128], strides = [1, 1]} : vector<128x384xbf16> to vector<128x128xbf16>
    %cst_42 = arith.constant dense<0.000000e+00> : vector<16x128xf32>
    %106 = tpu.matmul %104, %105, %cst_42 {dimension_numbers = #tpu.dot_dimension_numbers<[1], [0], [0], [1], [0, 0, 1, 1], [], []>} : vector<16x128xbf16>, vector<128x128xbf16>, vector<16x128xf32> -> vector<16x128xf32>
    %107 = vector.extract_strided_slice %7 {offsets = [0, 0], sizes = [1, 128], strides = [1, 1]} : vector<1x384xf32> to vector<1x128xf32>
    %108 = vector.broadcast %107 : vector<1x128xf32> to vector<16x128xf32>
    %109 = arith.addf %106, %108 : vector<16x128xf32>
    %110 = arith.truncf %109 : vector<16x128xf32> to vector<16x128xbf16>
    %111 = vector.extract_strided_slice %110 {offsets = [0, 0], sizes = [16, 32], strides = [1, 1]} : vector<16x128xbf16> to vector<16x32xbf16>
    %112 = vector.extract_strided_slice %110 {offsets = [0, 32], sizes = [16, 32], strides = [1, 1]} : vector<16x128xbf16> to vector<16x32xbf16>
    %113 = vector.extract_strided_slice %110 {offsets = [0, 64], sizes = [16, 32], strides = [1, 1]} : vector<16x128xbf16> to vector<16x32xbf16>
    %114 = vector.extract_strided_slice %110 {offsets = [0, 96], sizes = [16, 32], strides = [1, 1]} : vector<16x128xbf16> to vector<16x32xbf16>
    %115 = tpu.concatenate %111, %112, %113, %114 in 0 : vector<16x32xbf16>, vector<16x32xbf16>, vector<16x32xbf16>, vector<16x32xbf16> -> vector<64x32xbf16>
    %116 = vector.shape_cast %115 : vector<64x32xbf16> to vector<8x8x32xbf16>
    %117 = arith.truncf %30 : vector<16x128xf32> to vector<16x128xbf16>
    %118 = vector.extract_strided_slice %117 {offsets = [0, 0], sizes = [16, 32], strides = [1, 1]} : vector<16x128xbf16> to vector<16x32xbf16>
    %119 = vector.extract_strided_slice %117 {offsets = [0, 32], sizes = [16, 32], strides = [1, 1]} : vector<16x128xbf16> to vector<16x32xbf16>
    %120 = vector.extract_strided_slice %117 {offsets = [0, 64], sizes = [16, 32], strides = [1, 1]} : vector<16x128xbf16> to vector<16x32xbf16>
    %121 = vector.extract_strided_slice %117 {offsets = [0, 96], sizes = [16, 32], strides = [1, 1]} : vector<16x128xbf16> to vector<16x32xbf16>
    %122 = tpu.concatenate %118, %119, %120, %121 in 0 : vector<16x32xbf16>, vector<16x32xbf16>, vector<16x32xbf16>, vector<16x32xbf16> -> vector<64x32xbf16>
    %123 = vector.shape_cast %122 : vector<64x32xbf16> to vector<8x8x32xbf16>
    %124 = arith.truncf %31 : vector<16x128xf32> to vector<16x128xbf16>
    %125 = vector.extract_strided_slice %124 {offsets = [0, 0], sizes = [16, 32], strides = [1, 1]} : vector<16x128xbf16> to vector<16x32xbf16>
    %126 = vector.extract_strided_slice %124 {offsets = [0, 32], sizes = [16, 32], strides = [1, 1]} : vector<16x128xbf16> to vector<16x32xbf16>
    %127 = vector.extract_strided_slice %124 {offsets = [0, 64], sizes = [16, 32], strides = [1, 1]} : vector<16x128xbf16> to vector<16x32xbf16>
    %128 = vector.extract_strided_slice %124 {offsets = [0, 96], sizes = [16, 32], strides = [1, 1]} : vector<16x128xbf16> to vector<16x32xbf16>
    %129 = tpu.concatenate %125, %126, %127, %128 in 0 : vector<16x32xbf16>, vector<16x32xbf16>, vector<16x32xbf16>, vector<16x32xbf16> -> vector<64x32xbf16>
    %130 = vector.shape_cast %129 : vector<64x32xbf16> to vector<8x8x32xbf16>
    "tpu.trace_start"() <{level = 10 : i32, message = "bqd,bkd->bqk"}> : () -> ()
    %cst_43 = arith.constant dense<0.000000e+00> : vector<8x8x8xf32>
    %131 = tpu.matmul %116, %123, %cst_43 {dimension_numbers = #tpu.dot_dimension_numbers<[2], [2], [1], [1], [0, 0, 0, 1, 1, 1], [0], [0]>} : vector<8x8x32xbf16>, vector<8x8x32xbf16>, vector<8x8x8xf32> -> vector<8x8x8xf32>
    "tpu.trace_stop"() : () -> ()
    %cst_44 = arith.constant 0.176776692 : f32
    %132 = vector.broadcast %cst_44 : f32 to vector<8x8x8xf32>
    %133 = arith.mulf %131, %132 : vector<8x8x8xf32>
    %cst_45 = arith.constant dense<0xFF800000> : vector<8x8xf32>
    %134 = vector.multi_reduction <maximumf>, %133, %cst_45 [2] : vector<8x8x8xf32> to vector<8x8xf32>
    %135 = vector.shape_cast %134 : vector<8x8xf32> to vector<8x8x1xf32>
    %136 = vector.broadcast %135 : vector<8x8x1xf32> to vector<8x8x8xf32>
    %137 = arith.subf %133, %136 : vector<8x8x8xf32>
    %138 = math.exp %137 : vector<8x8x8xf32>
    %cst_46 = arith.constant dense<0.000000e+00> : vector<8x8xf32>
    %139 = vector.multi_reduction <add>, %138, %cst_46 [2] : vector<8x8x8xf32> to vector<8x8xf32>
    %140 = vector.shape_cast %139 : vector<8x8xf32> to vector<8x8x1xf32>
    %141 = tpu.reciprocal %140 {approx = true} : vector<8x8x1xf32> -> vector<8x8x1xf32>
    %142 = vector.broadcast %141 : vector<8x8x1xf32> to vector<8x8x8xf32>
    %143 = arith.mulf %138, %142 : vector<8x8x8xf32>
    %144 = arith.truncf %143 : vector<8x8x8xf32> to vector<8x8x8xbf16>
    "tpu.trace_start"() <{level = 10 : i32, message = "bqk,bkd->bqd"}> : () -> ()
    %cst_47 = arith.constant dense<0.000000e+00> : vector<8x8x32xf32>
    %145 = tpu.matmul %144, %130, %cst_47 {dimension_numbers = #tpu.dot_dimension_numbers<[2], [1], [1], [2], [0, 0, 0, 1, 1, 2], [0], [0]>} : vector<8x8x8xbf16>, vector<8x8x32xbf16>, vector<8x8x32xf32> -> vector<8x8x32xf32>
    "tpu.trace_stop"() : () -> ()
    %146 = vector.shape_cast %145 : vector<8x8x32xf32> to vector<64x32xf32>
    %147 = vector.extract_strided_slice %146 {offsets = [0, 0], sizes = [16, 32], strides = [1, 1]} : vector<64x32xf32> to vector<16x32xf32>
    %148 = vector.extract_strided_slice %146 {offsets = [16, 0], sizes = [16, 32], strides = [1, 1]} : vector<64x32xf32> to vector<16x32xf32>
    %149 = vector.extract_strided_slice %146 {offsets = [32, 0], sizes = [16, 32], strides = [1, 1]} : vector<64x32xf32> to vector<16x32xf32>
    %150 = vector.extract_strided_slice %146 {offsets = [48, 0], sizes = [16, 32], strides = [1, 1]} : vector<64x32xf32> to vector<16x32xf32>
    %151 = tpu.concatenate %147, %148, %149, %150 in 1 : vector<16x32xf32>, vector<16x32xf32>, vector<16x32xf32>, vector<16x32xf32> -> vector<16x128xf32>
    %152 = arith.truncf %151 : vector<16x128xf32> to vector<16x128xbf16>
    %cst_48 = arith.constant dense<0.000000e+00> : vector<16x128xf32>
    %153 = tpu.matmul %152, %9, %cst_48 {dimension_numbers = #tpu.dot_dimension_numbers<[1], [0], [0], [1], [0, 0, 1, 1], [], []>} : vector<16x128xbf16>, vector<128x128xbf16>, vector<16x128xf32> -> vector<16x128xf32>
    %154 = vector.broadcast %11 : vector<1x128xf32> to vector<16x128xf32>
    %155 = arith.addf %153, %154 : vector<16x128xf32>
    %156 = arith.addf %103, %155 : vector<16x128xf32>
    %157 = vector.extract_strided_slice %21 {offsets = [2, 0], sizes = [1, 128], strides = [1, 1]} : vector<6x128xf32> to vector<1x128xf32>
    %158 = vector.extract_strided_slice %21 {offsets = [3, 0], sizes = [1, 128], strides = [1, 1]} : vector<6x128xf32> to vector<1x128xf32>
    %cst_49 = arith.constant dense<0.000000e+00> : vector<16xf32>
    %159 = vector.multi_reduction <add>, %156, %cst_49 [1] : vector<16x128xf32> to vector<16xf32>
    %160 = vector.shape_cast %159 : vector<16xf32> to vector<16x1xf32>
    %cst_50 = arith.constant 1.280000e+02 : f32
    %161 = vector.broadcast %cst_50 : f32 to vector<16x1xf32>
    %162 = arith.divf %160, %161 : vector<16x1xf32>
    %163 = vector.broadcast %162 : vector<16x1xf32> to vector<16x128xf32>
    %164 = arith.subf %156, %163 : vector<16x128xf32>
    %165 = arith.mulf %164, %164 : vector<16x128xf32>
    %cst_51 = arith.constant dense<0.000000e+00> : vector<16xf32>
    %166 = vector.multi_reduction <add>, %165, %cst_51 [1] : vector<16x128xf32> to vector<16xf32>
    %167 = vector.shape_cast %166 : vector<16xf32> to vector<16x1xf32>
    %cst_52 = arith.constant 1.280000e+02 : f32
    %168 = vector.broadcast %cst_52 : f32 to vector<16x1xf32>
    %169 = arith.divf %167, %168 : vector<16x1xf32>
    %170 = vector.broadcast %162 : vector<16x1xf32> to vector<16x128xf32>
    %171 = arith.subf %156, %170 : vector<16x128xf32>
    %cst_53 = arith.constant 9.99999974E-6 : f32
    %172 = vector.broadcast %cst_53 : f32 to vector<16x1xf32>
    %173 = arith.addf %169, %172 : vector<16x1xf32>
    %174 = math.rsqrt %173 : vector<16x1xf32>
    %175 = vector.broadcast %174 : vector<16x1xf32> to vector<16x128xf32>
    %176 = arith.mulf %171, %175 : vector<16x128xf32>
    %177 = vector.broadcast %157 : vector<1x128xf32> to vector<16x128xf32>
    %178 = arith.mulf %176, %177 : vector<16x128xf32>
    %179 = vector.broadcast %158 : vector<1x128xf32> to vector<16x128xf32>
    %180 = arith.addf %178, %179 : vector<16x128xf32>
    %181 = arith.truncf %180 : vector<16x128xf32> to vector<16x128xbf16>
    %cst_54 = arith.constant dense<0.000000e+00> : vector<16x256xf32>
    %182 = tpu.matmul %181, %13, %cst_54 {dimension_numbers = #tpu.dot_dimension_numbers<[1], [0], [0], [1], [0, 0, 1, 1], [], []>} : vector<16x128xbf16>, vector<128x256xbf16>, vector<16x256xf32> -> vector<16x256xf32>
    %183 = vector.broadcast %15 : vector<1x256xf32> to vector<16x256xf32>
    %184 = arith.addf %182, %183 : vector<16x256xf32>
    %cst_55 = arith.constant 0.000000e+00 : f32
    %185 = vector.broadcast %cst_55 : f32 to vector<16x256xf32>
    %186 = arith.maximumf %184, %185 : vector<16x256xf32>
    %187 = arith.truncf %186 : vector<16x256xf32> to vector<16x256xbf16>
    %cst_56 = arith.constant dense<0.000000e+00> : vector<16x128xf32>
    %188 = tpu.matmul %187, %17, %cst_56 {dimension_numbers = #tpu.dot_dimension_numbers<[1], [0], [0], [1], [0, 0, 1, 1], [], []>} : vector<16x256xbf16>, vector<256x128xbf16>, vector<16x128xf32> -> vector<16x128xf32>
    %189 = vector.broadcast %19 : vector<1x128xf32> to vector<16x128xf32>
    %190 = arith.addf %188, %189 : vector<16x128xf32>
    %191 = arith.addf %180, %190 : vector<16x128xf32>
    %192 = vector.extract_strided_slice %21 {offsets = [4, 0], sizes = [1, 128], strides = [1, 1]} : vector<6x128xf32> to vector<1x128xf32>
    %193 = vector.extract_strided_slice %21 {offsets = [5, 0], sizes = [1, 128], strides = [1, 1]} : vector<6x128xf32> to vector<1x128xf32>
    %cst_57 = arith.constant dense<0.000000e+00> : vector<16xf32>
    %194 = vector.multi_reduction <add>, %191, %cst_57 [1] : vector<16x128xf32> to vector<16xf32>
    %195 = vector.shape_cast %194 : vector<16xf32> to vector<16x1xf32>
    %cst_58 = arith.constant 1.280000e+02 : f32
    %196 = vector.broadcast %cst_58 : f32 to vector<16x1xf32>
    %197 = arith.divf %195, %196 : vector<16x1xf32>
    %198 = vector.broadcast %197 : vector<16x1xf32> to vector<16x128xf32>
    %199 = arith.subf %191, %198 : vector<16x128xf32>
    %200 = arith.mulf %199, %199 : vector<16x128xf32>
    %cst_59 = arith.constant dense<0.000000e+00> : vector<16xf32>
    %201 = vector.multi_reduction <add>, %200, %cst_59 [1] : vector<16x128xf32> to vector<16xf32>
    %202 = vector.shape_cast %201 : vector<16xf32> to vector<16x1xf32>
    %cst_60 = arith.constant 1.280000e+02 : f32
    %203 = vector.broadcast %cst_60 : f32 to vector<16x1xf32>
    %204 = arith.divf %202, %203 : vector<16x1xf32>
    %205 = vector.broadcast %197 : vector<16x1xf32> to vector<16x128xf32>
    %206 = arith.subf %191, %205 : vector<16x128xf32>
    %cst_61 = arith.constant 9.99999974E-6 : f32
    %207 = vector.broadcast %cst_61 : f32 to vector<16x1xf32>
    %208 = arith.addf %204, %207 : vector<16x1xf32>
    %209 = math.rsqrt %208 : vector<16x1xf32>
    %210 = vector.broadcast %209 : vector<16x1xf32> to vector<16x128xf32>
    %211 = arith.mulf %206, %210 : vector<16x128xf32>
    %212 = vector.broadcast %192 : vector<1x128xf32> to vector<16x128xf32>
    %213 = arith.mulf %211, %212 : vector<16x128xf32>
    %214 = vector.broadcast %193 : vector<1x128xf32> to vector<16x128xf32>
    %215 = arith.addf %213, %214 : vector<16x128xf32>
    %c1 = arith.constant 1 : index
    %c0_62 = arith.constant 0 : index
    %c0_63 = arith.constant 0 : index
    %216 = vector.load %arg2[%c1, %c0_62, %c0_63] : memref<2x128x384xbf16, #tpu.memory_space<vmem>>, vector<1x128x384xbf16>
    %217 = vector.shape_cast %216 : vector<1x128x384xbf16> to vector<128x384xbf16>
    %c1_64 = arith.constant 1 : index
    %c0_65 = arith.constant 0 : index
    %c0_66 = arith.constant 0 : index
    %218 = vector.load %arg3[%c1_64, %c0_65, %c0_66] : memref<2x1x384xf32, #tpu.memory_space<vmem>>, vector<1x1x384xf32>
    %219 = vector.shape_cast %218 : vector<1x1x384xf32> to vector<1x384xf32>
    %c1_67 = arith.constant 1 : index
    %c0_68 = arith.constant 0 : index
    %c0_69 = arith.constant 0 : index
    %220 = vector.load %arg4[%c1_67, %c0_68, %c0_69] : memref<2x128x128xbf16, #tpu.memory_space<vmem>>, vector<1x128x128xbf16>
    %221 = vector.shape_cast %220 : vector<1x128x128xbf16> to vector<128x128xbf16>
    %c1_70 = arith.constant 1 : index
    %c0_71 = arith.constant 0 : index
    %c0_72 = arith.constant 0 : index
    %222 = vector.load %arg5[%c1_70, %c0_71, %c0_72] : memref<2x1x128xf32, #tpu.memory_space<vmem>>, vector<1x1x128xf32>
    %223 = vector.shape_cast %222 : vector<1x1x128xf32> to vector<1x128xf32>
    %c1_73 = arith.constant 1 : index
    %c0_74 = arith.constant 0 : index
    %c0_75 = arith.constant 0 : index
    %224 = vector.load %arg6[%c1_73, %c0_74, %c0_75] : memref<2x128x256xbf16, #tpu.memory_space<vmem>>, vector<1x128x256xbf16>
    %225 = vector.shape_cast %224 : vector<1x128x256xbf16> to vector<128x256xbf16>
    %c1_76 = arith.constant 1 : index
    %c0_77 = arith.constant 0 : index
    %c0_78 = arith.constant 0 : index
    %226 = vector.load %arg7[%c1_76, %c0_77, %c0_78] : memref<2x1x256xf32, #tpu.memory_space<vmem>>, vector<1x1x256xf32>
    %227 = vector.shape_cast %226 : vector<1x1x256xf32> to vector<1x256xf32>
    %c1_79 = arith.constant 1 : index
    %c0_80 = arith.constant 0 : index
    %c0_81 = arith.constant 0 : index
    %228 = vector.load %arg8[%c1_79, %c0_80, %c0_81] : memref<2x256x128xbf16, #tpu.memory_space<vmem>>, vector<1x256x128xbf16>
    %229 = vector.shape_cast %228 : vector<1x256x128xbf16> to vector<256x128xbf16>
    %c1_82 = arith.constant 1 : index
    %c0_83 = arith.constant 0 : index
    %c0_84 = arith.constant 0 : index
    %230 = vector.load %arg9[%c1_82, %c0_83, %c0_84] : memref<2x1x128xf32, #tpu.memory_space<vmem>>, vector<1x1x128xf32>
    %231 = vector.shape_cast %230 : vector<1x1x128xf32> to vector<1x128xf32>
    %c1_85 = arith.constant 1 : index
    %c0_86 = arith.constant 0 : index
    %c0_87 = arith.constant 0 : index
    %232 = vector.load %arg10[%c1_85, %c0_86, %c0_87] : memref<2x6x128xf32, #tpu.memory_space<vmem>>, vector<1x6x128xf32>
    %233 = vector.shape_cast %232 : vector<1x6x128xf32> to vector<6x128xf32>
    %234 = arith.truncf %215 : vector<16x128xf32> to vector<16x128xbf16>
    %235 = tpu.concatenate %234, %1 in 0 : vector<16x128xbf16>, vector<16x128xbf16> -> vector<32x128xbf16>
    %cst_88 = arith.constant dense<0.000000e+00> : vector<32x384xf32>
    %236 = tpu.matmul %235, %217, %cst_88 {dimension_numbers = #tpu.dot_dimension_numbers<[1], [0], [0], [1], [0, 0, 1, 1], [], []>} : vector<32x128xbf16>, vector<128x384xbf16>, vector<32x384xf32> -> vector<32x384xf32>
    %237 = vector.broadcast %219 : vector<1x384xf32> to vector<32x384xf32>
    %238 = arith.addf %236, %237 : vector<32x384xf32>
    %239 = vector.extract_strided_slice %238 {offsets = [0, 0], sizes = [16, 128], strides = [1, 1]} : vector<32x384xf32> to vector<16x128xf32>
    %240 = vector.extract_strided_slice %238 {offsets = [0, 128], sizes = [16, 128], strides = [1, 1]} : vector<32x384xf32> to vector<16x128xf32>
    %241 = vector.extract_strided_slice %238 {offsets = [0, 256], sizes = [16, 128], strides = [1, 1]} : vector<32x384xf32> to vector<16x128xf32>
    %242 = vector.extract_strided_slice %238 {offsets = [16, 128], sizes = [16, 128], strides = [1, 1]} : vector<32x384xf32> to vector<16x128xf32>
    %243 = vector.extract_strided_slice %238 {offsets = [16, 256], sizes = [16, 128], strides = [1, 1]} : vector<32x384xf32> to vector<16x128xf32>
    %244 = arith.truncf %239 : vector<16x128xf32> to vector<16x128xbf16>
    %245 = vector.extract_strided_slice %244 {offsets = [0, 0], sizes = [16, 32], strides = [1, 1]} : vector<16x128xbf16> to vector<16x32xbf16>
    %246 = vector.extract_strided_slice %244 {offsets = [0, 32], sizes = [16, 32], strides = [1, 1]} : vector<16x128xbf16> to vector<16x32xbf16>
    %247 = vector.extract_strided_slice %244 {offsets = [0, 64], sizes = [16, 32], strides = [1, 1]} : vector<16x128xbf16> to vector<16x32xbf16>
    %248 = vector.extract_strided_slice %244 {offsets = [0, 96], sizes = [16, 32], strides = [1, 1]} : vector<16x128xbf16> to vector<16x32xbf16>
    %249 = tpu.concatenate %245, %246, %247, %248 in 0 : vector<16x32xbf16>, vector<16x32xbf16>, vector<16x32xbf16>, vector<16x32xbf16> -> vector<64x32xbf16>
    %250 = vector.shape_cast %249 : vector<64x32xbf16> to vector<8x8x32xbf16>
    %251 = arith.truncf %240 : vector<16x128xf32> to vector<16x128xbf16>
    %252 = vector.extract_strided_slice %251 {offsets = [0, 0], sizes = [16, 32], strides = [1, 1]} : vector<16x128xbf16> to vector<16x32xbf16>
    %253 = vector.extract_strided_slice %251 {offsets = [0, 32], sizes = [16, 32], strides = [1, 1]} : vector<16x128xbf16> to vector<16x32xbf16>
    %254 = vector.extract_strided_slice %251 {offsets = [0, 64], sizes = [16, 32], strides = [1, 1]} : vector<16x128xbf16> to vector<16x32xbf16>
    %255 = vector.extract_strided_slice %251 {offsets = [0, 96], sizes = [16, 32], strides = [1, 1]} : vector<16x128xbf16> to vector<16x32xbf16>
    %256 = tpu.concatenate %252, %253, %254, %255 in 0 : vector<16x32xbf16>, vector<16x32xbf16>, vector<16x32xbf16>, vector<16x32xbf16> -> vector<64x32xbf16>
    %257 = vector.shape_cast %256 : vector<64x32xbf16> to vector<8x8x32xbf16>
    %258 = arith.truncf %241 : vector<16x128xf32> to vector<16x128xbf16>
    %259 = vector.extract_strided_slice %258 {offsets = [0, 0], sizes = [16, 32], strides = [1, 1]} : vector<16x128xbf16> to vector<16x32xbf16>
    %260 = vector.extract_strided_slice %258 {offsets = [0, 32], sizes = [16, 32], strides = [1, 1]} : vector<16x128xbf16> to vector<16x32xbf16>
    %261 = vector.extract_strided_slice %258 {offsets = [0, 64], sizes = [16, 32], strides = [1, 1]} : vector<16x128xbf16> to vector<16x32xbf16>
    %262 = vector.extract_strided_slice %258 {offsets = [0, 96], sizes = [16, 32], strides = [1, 1]} : vector<16x128xbf16> to vector<16x32xbf16>
    %263 = tpu.concatenate %259, %260, %261, %262 in 0 : vector<16x32xbf16>, vector<16x32xbf16>, vector<16x32xbf16>, vector<16x32xbf16> -> vector<64x32xbf16>
    %264 = vector.shape_cast %263 : vector<64x32xbf16> to vector<8x8x32xbf16>
    "tpu.trace_start"() <{level = 10 : i32, message = "bqd,bkd->bqk"}> : () -> ()
    %cst_89 = arith.constant dense<0.000000e+00> : vector<8x8x8xf32>
    %265 = tpu.matmul %250, %257, %cst_89 {dimension_numbers = #tpu.dot_dimension_numbers<[2], [2], [1], [1], [0, 0, 0, 1, 1, 1], [0], [0]>} : vector<8x8x32xbf16>, vector<8x8x32xbf16>, vector<8x8x8xf32> -> vector<8x8x8xf32>
    "tpu.trace_stop"() : () -> ()
    %cst_90 = arith.constant 0.176776692 : f32
    %266 = vector.broadcast %cst_90 : f32 to vector<8x8x8xf32>
    %267 = arith.mulf %265, %266 : vector<8x8x8xf32>
    %268 = arith.addf %267, %3 : vector<8x8x8xf32>
    %cst_91 = arith.constant dense<0xFF800000> : vector<8x8xf32>
    %269 = vector.multi_reduction <maximumf>, %268, %cst_91 [2] : vector<8x8x8xf32> to vector<8x8xf32>
    %270 = vector.shape_cast %269 : vector<8x8xf32> to vector<8x8x1xf32>
    %271 = vector.broadcast %270 : vector<8x8x1xf32> to vector<8x8x8xf32>
    %272 = arith.subf %268, %271 : vector<8x8x8xf32>
    %273 = math.exp %272 : vector<8x8x8xf32>
    %cst_92 = arith.constant dense<0.000000e+00> : vector<8x8xf32>
    %274 = vector.multi_reduction <add>, %273, %cst_92 [2] : vector<8x8x8xf32> to vector<8x8xf32>
    %275 = vector.shape_cast %274 : vector<8x8xf32> to vector<8x8x1xf32>
    %276 = tpu.reciprocal %275 {approx = true} : vector<8x8x1xf32> -> vector<8x8x1xf32>
    %277 = vector.broadcast %276 : vector<8x8x1xf32> to vector<8x8x8xf32>
    %278 = arith.mulf %273, %277 : vector<8x8x8xf32>
    %279 = arith.truncf %278 : vector<8x8x8xf32> to vector<8x8x8xbf16>
    "tpu.trace_start"() <{level = 10 : i32, message = "bqk,bkd->bqd"}> : () -> ()
    %cst_93 = arith.constant dense<0.000000e+00> : vector<8x8x32xf32>
    %280 = tpu.matmul %279, %264, %cst_93 {dimension_numbers = #tpu.dot_dimension_numbers<[2], [1], [1], [2], [0, 0, 0, 1, 1, 2], [0], [0]>} : vector<8x8x8xbf16>, vector<8x8x32xbf16>, vector<8x8x32xf32> -> vector<8x8x32xf32>
    "tpu.trace_stop"() : () -> ()
    %281 = vector.shape_cast %280 : vector<8x8x32xf32> to vector<64x32xf32>
    %282 = vector.extract_strided_slice %281 {offsets = [0, 0], sizes = [16, 32], strides = [1, 1]} : vector<64x32xf32> to vector<16x32xf32>
    %283 = vector.extract_strided_slice %281 {offsets = [16, 0], sizes = [16, 32], strides = [1, 1]} : vector<64x32xf32> to vector<16x32xf32>
    %284 = vector.extract_strided_slice %281 {offsets = [32, 0], sizes = [16, 32], strides = [1, 1]} : vector<64x32xf32> to vector<16x32xf32>
    %285 = vector.extract_strided_slice %281 {offsets = [48, 0], sizes = [16, 32], strides = [1, 1]} : vector<64x32xf32> to vector<16x32xf32>
    %286 = tpu.concatenate %282, %283, %284, %285 in 1 : vector<16x32xf32>, vector<16x32xf32>, vector<16x32xf32>, vector<16x32xf32> -> vector<16x128xf32>
    %287 = arith.truncf %286 : vector<16x128xf32> to vector<16x128xbf16>
    %cst_94 = arith.constant dense<0.000000e+00> : vector<16x128xf32>
    %288 = tpu.matmul %287, %221, %cst_94 {dimension_numbers = #tpu.dot_dimension_numbers<[1], [0], [0], [1], [0, 0, 1, 1], [], []>} : vector<16x128xbf16>, vector<128x128xbf16>, vector<16x128xf32> -> vector<16x128xf32>
    %289 = vector.broadcast %223 : vector<1x128xf32> to vector<16x128xf32>
    %290 = arith.addf %288, %289 : vector<16x128xf32>
    %291 = arith.addf %215, %290 : vector<16x128xf32>
    %292 = vector.extract_strided_slice %233 {offsets = [0, 0], sizes = [1, 128], strides = [1, 1]} : vector<6x128xf32> to vector<1x128xf32>
    %293 = vector.extract_strided_slice %233 {offsets = [1, 0], sizes = [1, 128], strides = [1, 1]} : vector<6x128xf32> to vector<1x128xf32>
    %cst_95 = arith.constant dense<0.000000e+00> : vector<16xf32>
    %294 = vector.multi_reduction <add>, %291, %cst_95 [1] : vector<16x128xf32> to vector<16xf32>
    %295 = vector.shape_cast %294 : vector<16xf32> to vector<16x1xf32>
    %cst_96 = arith.constant 1.280000e+02 : f32
    %296 = vector.broadcast %cst_96 : f32 to vector<16x1xf32>
    %297 = arith.divf %295, %296 : vector<16x1xf32>
    %298 = vector.broadcast %297 : vector<16x1xf32> to vector<16x128xf32>
    %299 = arith.subf %291, %298 : vector<16x128xf32>
    %300 = arith.mulf %299, %299 : vector<16x128xf32>
    %cst_97 = arith.constant dense<0.000000e+00> : vector<16xf32>
    %301 = vector.multi_reduction <add>, %300, %cst_97 [1] : vector<16x128xf32> to vector<16xf32>
    %302 = vector.shape_cast %301 : vector<16xf32> to vector<16x1xf32>
    %cst_98 = arith.constant 1.280000e+02 : f32
    %303 = vector.broadcast %cst_98 : f32 to vector<16x1xf32>
    %304 = arith.divf %302, %303 : vector<16x1xf32>
    %305 = vector.broadcast %297 : vector<16x1xf32> to vector<16x128xf32>
    %306 = arith.subf %291, %305 : vector<16x128xf32>
    %cst_99 = arith.constant 9.99999974E-6 : f32
    %307 = vector.broadcast %cst_99 : f32 to vector<16x1xf32>
    %308 = arith.addf %304, %307 : vector<16x1xf32>
    %309 = math.rsqrt %308 : vector<16x1xf32>
    %310 = vector.broadcast %309 : vector<16x1xf32> to vector<16x128xf32>
    %311 = arith.mulf %306, %310 : vector<16x128xf32>
    %312 = vector.broadcast %292 : vector<1x128xf32> to vector<16x128xf32>
    %313 = arith.mulf %311, %312 : vector<16x128xf32>
    %314 = vector.broadcast %293 : vector<1x128xf32> to vector<16x128xf32>
    %315 = arith.addf %313, %314 : vector<16x128xf32>
    %316 = arith.truncf %315 : vector<16x128xf32> to vector<16x128xbf16>
    %317 = vector.extract_strided_slice %217 {offsets = [0, 0], sizes = [128, 128], strides = [1, 1]} : vector<128x384xbf16> to vector<128x128xbf16>
    %cst_100 = arith.constant dense<0.000000e+00> : vector<16x128xf32>
    %318 = tpu.matmul %316, %317, %cst_100 {dimension_numbers = #tpu.dot_dimension_numbers<[1], [0], [0], [1], [0, 0, 1, 1], [], []>} : vector<16x128xbf16>, vector<128x128xbf16>, vector<16x128xf32> -> vector<16x128xf32>
    %319 = vector.extract_strided_slice %219 {offsets = [0, 0], sizes = [1, 128], strides = [1, 1]} : vector<1x384xf32> to vector<1x128xf32>
    %320 = vector.broadcast %319 : vector<1x128xf32> to vector<16x128xf32>
    %321 = arith.addf %318, %320 : vector<16x128xf32>
    %322 = arith.truncf %321 : vector<16x128xf32> to vector<16x128xbf16>
    %323 = vector.extract_strided_slice %322 {offsets = [0, 0], sizes = [16, 32], strides = [1, 1]} : vector<16x128xbf16> to vector<16x32xbf16>
    %324 = vector.extract_strided_slice %322 {offsets = [0, 32], sizes = [16, 32], strides = [1, 1]} : vector<16x128xbf16> to vector<16x32xbf16>
    %325 = vector.extract_strided_slice %322 {offsets = [0, 64], sizes = [16, 32], strides = [1, 1]} : vector<16x128xbf16> to vector<16x32xbf16>
    %326 = vector.extract_strided_slice %322 {offsets = [0, 96], sizes = [16, 32], strides = [1, 1]} : vector<16x128xbf16> to vector<16x32xbf16>
    %327 = tpu.concatenate %323, %324, %325, %326 in 0 : vector<16x32xbf16>, vector<16x32xbf16>, vector<16x32xbf16>, vector<16x32xbf16> -> vector<64x32xbf16>
    %328 = vector.shape_cast %327 : vector<64x32xbf16> to vector<8x8x32xbf16>
    %329 = arith.truncf %242 : vector<16x128xf32> to vector<16x128xbf16>
    %330 = vector.extract_strided_slice %329 {offsets = [0, 0], sizes = [16, 32], strides = [1, 1]} : vector<16x128xbf16> to vector<16x32xbf16>
    %331 = vector.extract_strided_slice %329 {offsets = [0, 32], sizes = [16, 32], strides = [1, 1]} : vector<16x128xbf16> to vector<16x32xbf16>
    %332 = vector.extract_strided_slice %329 {offsets = [0, 64], sizes = [16, 32], strides = [1, 1]} : vector<16x128xbf16> to vector<16x32xbf16>
    %333 = vector.extract_strided_slice %329 {offsets = [0, 96], sizes = [16, 32], strides = [1, 1]} : vector<16x128xbf16> to vector<16x32xbf16>
    %334 = tpu.concatenate %330, %331, %332, %333 in 0 : vector<16x32xbf16>, vector<16x32xbf16>, vector<16x32xbf16>, vector<16x32xbf16> -> vector<64x32xbf16>
    %335 = vector.shape_cast %334 : vector<64x32xbf16> to vector<8x8x32xbf16>
    %336 = arith.truncf %243 : vector<16x128xf32> to vector<16x128xbf16>
    %337 = vector.extract_strided_slice %336 {offsets = [0, 0], sizes = [16, 32], strides = [1, 1]} : vector<16x128xbf16> to vector<16x32xbf16>
    %338 = vector.extract_strided_slice %336 {offsets = [0, 32], sizes = [16, 32], strides = [1, 1]} : vector<16x128xbf16> to vector<16x32xbf16>
    %339 = vector.extract_strided_slice %336 {offsets = [0, 64], sizes = [16, 32], strides = [1, 1]} : vector<16x128xbf16> to vector<16x32xbf16>
    %340 = vector.extract_strided_slice %336 {offsets = [0, 96], sizes = [16, 32], strides = [1, 1]} : vector<16x128xbf16> to vector<16x32xbf16>
    %341 = tpu.concatenate %337, %338, %339, %340 in 0 : vector<16x32xbf16>, vector<16x32xbf16>, vector<16x32xbf16>, vector<16x32xbf16> -> vector<64x32xbf16>
    %342 = vector.shape_cast %341 : vector<64x32xbf16> to vector<8x8x32xbf16>
    "tpu.trace_start"() <{level = 10 : i32, message = "bqd,bkd->bqk"}> : () -> ()
    %cst_101 = arith.constant dense<0.000000e+00> : vector<8x8x8xf32>
    %343 = tpu.matmul %328, %335, %cst_101 {dimension_numbers = #tpu.dot_dimension_numbers<[2], [2], [1], [1], [0, 0, 0, 1, 1, 1], [0], [0]>} : vector<8x8x32xbf16>, vector<8x8x32xbf16>, vector<8x8x8xf32> -> vector<8x8x8xf32>
    "tpu.trace_stop"() : () -> ()
    %cst_102 = arith.constant 0.176776692 : f32
    %344 = vector.broadcast %cst_102 : f32 to vector<8x8x8xf32>
    %345 = arith.mulf %343, %344 : vector<8x8x8xf32>
    %cst_103 = arith.constant dense<0xFF800000> : vector<8x8xf32>
    %346 = vector.multi_reduction <maximumf>, %345, %cst_103 [2] : vector<8x8x8xf32> to vector<8x8xf32>
    %347 = vector.shape_cast %346 : vector<8x8xf32> to vector<8x8x1xf32>
    %348 = vector.broadcast %347 : vector<8x8x1xf32> to vector<8x8x8xf32>
    %349 = arith.subf %345, %348 : vector<8x8x8xf32>
    %350 = math.exp %349 : vector<8x8x8xf32>
    %cst_104 = arith.constant dense<0.000000e+00> : vector<8x8xf32>
    %351 = vector.multi_reduction <add>, %350, %cst_104 [2] : vector<8x8x8xf32> to vector<8x8xf32>
    %352 = vector.shape_cast %351 : vector<8x8xf32> to vector<8x8x1xf32>
    %353 = tpu.reciprocal %352 {approx = true} : vector<8x8x1xf32> -> vector<8x8x1xf32>
    %354 = vector.broadcast %353 : vector<8x8x1xf32> to vector<8x8x8xf32>
    %355 = arith.mulf %350, %354 : vector<8x8x8xf32>
    %356 = arith.truncf %355 : vector<8x8x8xf32> to vector<8x8x8xbf16>
    "tpu.trace_start"() <{level = 10 : i32, message = "bqk,bkd->bqd"}> : () -> ()
    %cst_105 = arith.constant dense<0.000000e+00> : vector<8x8x32xf32>
    %357 = tpu.matmul %356, %342, %cst_105 {dimension_numbers = #tpu.dot_dimension_numbers<[2], [1], [1], [2], [0, 0, 0, 1, 1, 2], [0], [0]>} : vector<8x8x8xbf16>, vector<8x8x32xbf16>, vector<8x8x32xf32> -> vector<8x8x32xf32>
    "tpu.trace_stop"() : () -> ()
    %358 = vector.shape_cast %357 : vector<8x8x32xf32> to vector<64x32xf32>
    %359 = vector.extract_strided_slice %358 {offsets = [0, 0], sizes = [16, 32], strides = [1, 1]} : vector<64x32xf32> to vector<16x32xf32>
    %360 = vector.extract_strided_slice %358 {offsets = [16, 0], sizes = [16, 32], strides = [1, 1]} : vector<64x32xf32> to vector<16x32xf32>
    %361 = vector.extract_strided_slice %358 {offsets = [32, 0], sizes = [16, 32], strides = [1, 1]} : vector<64x32xf32> to vector<16x32xf32>
    %362 = vector.extract_strided_slice %358 {offsets = [48, 0], sizes = [16, 32], strides = [1, 1]} : vector<64x32xf32> to vector<16x32xf32>
    %363 = tpu.concatenate %359, %360, %361, %362 in 1 : vector<16x32xf32>, vector<16x32xf32>, vector<16x32xf32>, vector<16x32xf32> -> vector<16x128xf32>
    %364 = arith.truncf %363 : vector<16x128xf32> to vector<16x128xbf16>
    %cst_106 = arith.constant dense<0.000000e+00> : vector<16x128xf32>
    %365 = tpu.matmul %364, %221, %cst_106 {dimension_numbers = #tpu.dot_dimension_numbers<[1], [0], [0], [1], [0, 0, 1, 1], [], []>} : vector<16x128xbf16>, vector<128x128xbf16>, vector<16x128xf32> -> vector<16x128xf32>
    %366 = vector.broadcast %223 : vector<1x128xf32> to vector<16x128xf32>
    %367 = arith.addf %365, %366 : vector<16x128xf32>
    %368 = arith.addf %315, %367 : vector<16x128xf32>
    %369 = vector.extract_strided_slice %233 {offsets = [2, 0], sizes = [1, 128], strides = [1, 1]} : vector<6x128xf32> to vector<1x128xf32>
    %370 = vector.extract_strided_slice %233 {offsets = [3, 0], sizes = [1, 128], strides = [1, 1]} : vector<6x128xf32> to vector<1x128xf32>
    %cst_107 = arith.constant dense<0.000000e+00> : vector<16xf32>
    %371 = vector.multi_reduction <add>, %368, %cst_107 [1] : vector<16x128xf32> to vector<16xf32>
    %372 = vector.shape_cast %371 : vector<16xf32> to vector<16x1xf32>
    %cst_108 = arith.constant 1.280000e+02 : f32
    %373 = vector.broadcast %cst_108 : f32 to vector<16x1xf32>
    %374 = arith.divf %372, %373 : vector<16x1xf32>
    %375 = vector.broadcast %374 : vector<16x1xf32> to vector<16x128xf32>
    %376 = arith.subf %368, %375 : vector<16x128xf32>
    %377 = arith.mulf %376, %376 : vector<16x128xf32>
    %cst_109 = arith.constant dense<0.000000e+00> : vector<16xf32>
    %378 = vector.multi_reduction <add>, %377, %cst_109 [1] : vector<16x128xf32> to vector<16xf32>
    %379 = vector.shape_cast %378 : vector<16xf32> to vector<16x1xf32>
    %cst_110 = arith.constant 1.280000e+02 : f32
    %380 = vector.broadcast %cst_110 : f32 to vector<16x1xf32>
    %381 = arith.divf %379, %380 : vector<16x1xf32>
    %382 = vector.broadcast %374 : vector<16x1xf32> to vector<16x128xf32>
    %383 = arith.subf %368, %382 : vector<16x128xf32>
    %cst_111 = arith.constant 9.99999974E-6 : f32
    %384 = vector.broadcast %cst_111 : f32 to vector<16x1xf32>
    %385 = arith.addf %381, %384 : vector<16x1xf32>
    %386 = math.rsqrt %385 : vector<16x1xf32>
    %387 = vector.broadcast %386 : vector<16x1xf32> to vector<16x128xf32>
    %388 = arith.mulf %383, %387 : vector<16x128xf32>
    %389 = vector.broadcast %369 : vector<1x128xf32> to vector<16x128xf32>
    %390 = arith.mulf %388, %389 : vector<16x128xf32>
    %391 = vector.broadcast %370 : vector<1x128xf32> to vector<16x128xf32>
    %392 = arith.addf %390, %391 : vector<16x128xf32>
    %393 = arith.truncf %392 : vector<16x128xf32> to vector<16x128xbf16>
    %cst_112 = arith.constant dense<0.000000e+00> : vector<16x256xf32>
    %394 = tpu.matmul %393, %225, %cst_112 {dimension_numbers = #tpu.dot_dimension_numbers<[1], [0], [0], [1], [0, 0, 1, 1], [], []>} : vector<16x128xbf16>, vector<128x256xbf16>, vector<16x256xf32> -> vector<16x256xf32>
    %395 = vector.broadcast %227 : vector<1x256xf32> to vector<16x256xf32>
    %396 = arith.addf %394, %395 : vector<16x256xf32>
    %cst_113 = arith.constant 0.000000e+00 : f32
    %397 = vector.broadcast %cst_113 : f32 to vector<16x256xf32>
    %398 = arith.maximumf %396, %397 : vector<16x256xf32>
    %399 = arith.truncf %398 : vector<16x256xf32> to vector<16x256xbf16>
    %cst_114 = arith.constant dense<0.000000e+00> : vector<16x128xf32>
    %400 = tpu.matmul %399, %229, %cst_114 {dimension_numbers = #tpu.dot_dimension_numbers<[1], [0], [0], [1], [0, 0, 1, 1], [], []>} : vector<16x256xbf16>, vector<256x128xbf16>, vector<16x128xf32> -> vector<16x128xf32>
    %401 = vector.broadcast %231 : vector<1x128xf32> to vector<16x128xf32>
    %402 = arith.addf %400, %401 : vector<16x128xf32>
    %403 = arith.addf %392, %402 : vector<16x128xf32>
    %404 = vector.extract_strided_slice %233 {offsets = [4, 0], sizes = [1, 128], strides = [1, 1]} : vector<6x128xf32> to vector<1x128xf32>
    %405 = vector.extract_strided_slice %233 {offsets = [5, 0], sizes = [1, 128], strides = [1, 1]} : vector<6x128xf32> to vector<1x128xf32>
    %cst_115 = arith.constant dense<0.000000e+00> : vector<16xf32>
    %406 = vector.multi_reduction <add>, %403, %cst_115 [1] : vector<16x128xf32> to vector<16xf32>
    %407 = vector.shape_cast %406 : vector<16xf32> to vector<16x1xf32>
    %cst_116 = arith.constant 1.280000e+02 : f32
    %408 = vector.broadcast %cst_116 : f32 to vector<16x1xf32>
    %409 = arith.divf %407, %408 : vector<16x1xf32>
    %410 = vector.broadcast %409 : vector<16x1xf32> to vector<16x128xf32>
    %411 = arith.subf %403, %410 : vector<16x128xf32>
    %412 = arith.mulf %411, %411 : vector<16x128xf32>
    %cst_117 = arith.constant dense<0.000000e+00> : vector<16xf32>
    %413 = vector.multi_reduction <add>, %412, %cst_117 [1] : vector<16x128xf32> to vector<16xf32>
    %414 = vector.shape_cast %413 : vector<16xf32> to vector<16x1xf32>
    %cst_118 = arith.constant 1.280000e+02 : f32
    %415 = vector.broadcast %cst_118 : f32 to vector<16x1xf32>
    %416 = arith.divf %414, %415 : vector<16x1xf32>
    %417 = vector.broadcast %409 : vector<16x1xf32> to vector<16x128xf32>
    %418 = arith.subf %403, %417 : vector<16x128xf32>
    %cst_119 = arith.constant 9.99999974E-6 : f32
    %419 = vector.broadcast %cst_119 : f32 to vector<16x1xf32>
    %420 = arith.addf %416, %419 : vector<16x1xf32>
    %421 = math.rsqrt %420 : vector<16x1xf32>
    %422 = vector.broadcast %421 : vector<16x1xf32> to vector<16x128xf32>
    %423 = arith.mulf %418, %422 : vector<16x128xf32>
    %424 = vector.broadcast %404 : vector<1x128xf32> to vector<16x128xf32>
    %425 = arith.mulf %423, %424 : vector<16x128xf32>
    %426 = vector.broadcast %405 : vector<1x128xf32> to vector<16x128xf32>
    %427 = arith.addf %425, %426 : vector<16x128xf32>
    %c0_120 = arith.constant 0 : index
    %c0_121 = arith.constant 0 : index
    %428 = vector.load %arg11[%c0_120, %c0_121] : memref<1x128xf32, #tpu.memory_space<vmem>>, vector<1x128xf32>
    %c0_122 = arith.constant 0 : index
    %c0_123 = arith.constant 0 : index
    %429 = vector.load %arg12[%c0_122, %c0_123] : memref<1x128xf32, #tpu.memory_space<vmem>>, vector<1x128xf32>
    %cst_124 = arith.constant dense<0.000000e+00> : vector<16xf32>
    %430 = vector.multi_reduction <add>, %427, %cst_124 [1] : vector<16x128xf32> to vector<16xf32>
    %431 = vector.shape_cast %430 : vector<16xf32> to vector<16x1xf32>
    %cst_125 = arith.constant 1.280000e+02 : f32
    %432 = vector.broadcast %cst_125 : f32 to vector<16x1xf32>
    %433 = arith.divf %431, %432 : vector<16x1xf32>
    %434 = vector.broadcast %433 : vector<16x1xf32> to vector<16x128xf32>
    %435 = arith.subf %427, %434 : vector<16x128xf32>
    %436 = arith.mulf %435, %435 : vector<16x128xf32>
    %cst_126 = arith.constant dense<0.000000e+00> : vector<16xf32>
    %437 = vector.multi_reduction <add>, %436, %cst_126 [1] : vector<16x128xf32> to vector<16xf32>
    %438 = vector.shape_cast %437 : vector<16xf32> to vector<16x1xf32>
    %cst_127 = arith.constant 1.280000e+02 : f32
    %439 = vector.broadcast %cst_127 : f32 to vector<16x1xf32>
    %440 = arith.divf %438, %439 : vector<16x1xf32>
    %441 = vector.broadcast %433 : vector<16x1xf32> to vector<16x128xf32>
    %442 = arith.subf %427, %441 : vector<16x128xf32>
    %cst_128 = arith.constant 9.99999974E-6 : f32
    %443 = vector.broadcast %cst_128 : f32 to vector<16x1xf32>
    %444 = arith.addf %440, %443 : vector<16x1xf32>
    %445 = math.rsqrt %444 : vector<16x1xf32>
    %446 = vector.broadcast %445 : vector<16x1xf32> to vector<16x128xf32>
    %447 = arith.mulf %442, %446 : vector<16x128xf32>
    %448 = vector.broadcast %428 : vector<1x128xf32> to vector<16x128xf32>
    %449 = arith.mulf %447, %448 : vector<16x128xf32>
    %450 = vector.broadcast %429 : vector<1x128xf32> to vector<16x128xf32>
    %451 = arith.addf %449, %450 : vector<16x128xf32>
    %452 = arith.truncf %451 : vector<16x128xf32> to vector<16x128xbf16>
    %c0_129 = arith.constant 0 : index
    %c0_130 = arith.constant 0 : index
    %453 = vector.load %arg13[%c0_129, %c0_130] : memref<128x256xbf16, #tpu.memory_space<vmem>>, vector<128x256xbf16>
    %cst_131 = arith.constant dense<0.000000e+00> : vector<16x256xf32>
    %454 = tpu.matmul %452, %453, %cst_131 {dimension_numbers = #tpu.dot_dimension_numbers<[1], [0], [0], [1], [0, 0, 1, 1], [], []>} : vector<16x128xbf16>, vector<128x256xbf16>, vector<16x256xf32> -> vector<16x256xf32>
    %c0_132 = arith.constant 0 : index
    %c0_133 = arith.constant 0 : index
    %455 = vector.load %arg14[%c0_132, %c0_133] : memref<1x256xf32, #tpu.memory_space<vmem>>, vector<1x256xf32>
    %456 = vector.broadcast %455 : vector<1x256xf32> to vector<16x256xf32>
    %457 = arith.addf %454, %456 : vector<16x256xf32>
    %c0_134 = arith.constant 0 : index
    %c0_135 = arith.constant 0 : index
    %458 = vector.load %arg15[%c0_134, %c0_135] : memref<16x256xf32, #tpu.memory_space<vmem>>, vector<16x256xf32>
    tpu.vector_store %arg15[%c0_134, %c0_135], %457 {strides = array<i32>} : memref<16x256xf32, #tpu.memory_space<vmem>>, vector<16x256xf32>,
    return
  }
}

</mosaic_0001>

<bundles_post_ra>
// kernel: generator_transformer_forward.1
= control target key start
LH: loop header
LB: loop body
LE: loop exit
PB: predicated region body
PF: predicated region fallthrough
CT: control target
= control target key end

     0   :  { %20 = vsyncpa [#allocation3], 0  ;;  %s8855_s0 = inlined_call_operand.vmem [shape: f32[16,128], index: 0, kind: input, shape index: {}]   ;;  %s8856_s1 = inlined_call_operand.vmem [shape: f32[2,8,8], index: 1, kind: input, shape index: {}]   ;;  %s8857_s2 = inlined_call_operand.hbm [shape: bf16[2,128,384], index: 2, kind: input, shape index: {}]   ;;  %s8858_s3 = inlined_call_operand.vmem [shape: f32[2,1,384], index: 3, kind: input, shape index: {}]   ;;  %s8859_s4 = inlined_call_operand.hbm [shape: bf16[2,128,128], index: 4, kind: input, shape index: {}]   ;;  %s8860_s5 = inlined_call_operand.vmem [shape: f32[2,1,128], index: 5, kind: input, shape index: {}]   ;;  %s8861_s6 = inlined_call_operand.vmem [shape: bf16[2,128,256], index: 6, kind: input, shape index: {}]   ;;  %s8862_s7 = inlined_call_operand.vmem [shape: f32[2,1,256], index: 7, kind: input, shape index: {}]   ;;  %s8863_s8 = inlined_call_operand.hbm [shape: bf16[2,256,128], index: 8, kind: input, shape index: {}]   ;;  %s8864_s9 = inlined_call_operand.vmem [shape: f32[2,1,128], index: 9, kind: input, shape index: {}]   ;;  %s8865_s10 = inlined_call_operand.vmem [shape: f32[2,6,128], index: 10, kind: input, shape index: {}]   ;;  %s8866_s11 = inlined_call_operand.vmem [shape: f32[1,128], index: 11, kind: input, shape index: {}]   ;;  %s8867_s12 = inlined_call_operand.vmem [shape: f32[1,128], index: 12, kind: input, shape index: {}]   ;;  %s8868_s13 = inlined_call_operand.hbm [shape: bf16[128,256], index: 13, kind: input, shape index: {}]   ;;  %s8869_s14 = inlined_call_operand.vmem [shape: f32[1,256], index: 14, kind: input, shape index: {}]   ;;  %s8870_s15 = inlined_call_operand.hbm [shape: f32[16,256], index: 15, kind: output, shape index: {}]  }
   0x1   :  { %21 = vsyncpa [#allocation6], 0 }
   0x2   :  { %22 = vsyncpa [#allocation9], 0 }
   0x3   :  { %23 = vsyncpa [#allocation4], 0  ;;  %s7646_s18 = smov [#allocation5]  }
   0x4   :  { %s47_s19 = sshll.u32 %s7646_s18, 4  ;;  %s48_s19 = int_to_ptr.vmem [resolvable:$true] %s47_s19 }
   0x5   :  { %s7546_s20 = scalar_lea.vmem %s48_s19, 2048  ;;  %p7551_p1 = scmp.lt.s32.totalorder %s48_s19, %s48_s19 }
   0x6   :  { %p7547_p0 = scmp.ne.s32.totalorder %s48_s19, %s7546_s20  ;;  %p7552_p2 = scmp.lt.s32.totalorder %s7546_s20, %s7546_s20 }
   0x8   :  { %p7553_p3 = por %p7552_p2, %p7551_p1 }
   0xa   :  { %p7554_p4 = pnand %p7553_p3, %p7547_p0 }
   0xc   :  { %7557 = shalt.err (!%p7554_p4)
}
   0xd   :  { %s7647_s21 = smov 64   ;;  %s7648_s22 = smov 4  }
   0xe   :  { %53 = dma.hbm_to_vmem [thread:$0]  %s8859_s4, 2048, %s48_s19, [#allocation6], %s7647_s21, %s7647_s21, %s7648_s22  }
   0xf   :  { %s7649_s25 = smov [#allocation2]  }
  0x10   :  { %s33_s26 = sshll.u32 %s7649_s25, 4  ;;  %s34_s26 = int_to_ptr.vmem [resolvable:$true] %s33_s26 }
  0x11   :  { %s7566_s27 = scalar_lea.vmem %s34_s26, 6144  ;;  %p7571_p6 = scmp.lt.s32.totalorder %s34_s26, %s34_s26 }
  0x12   :  { %p7567_p5 = scmp.ne.s32.totalorder %s34_s26, %s7566_s27  ;;  %p7572_p7 = scmp.lt.s32.totalorder %s7566_s27, %s7566_s27 }
  0x14   :  { %p7573_p8 = por %p7572_p7, %p7571_p6 }
  0x16   :  { %p7574_p9 = pnand %p7573_p8, %p7567_p5 }
  0x18   :  { %7577 = shalt.err (!%p7574_p9)
}
  0x19   :  { %s7650_s28 = smov 192   ;;  %s7651_s29 = smov 12  }
  0x1a   :  { %39 = dma.hbm_to_vmem [thread:$0]  %s8857_s2, 6144, %s34_s26, [#allocation3], %s7650_s28, %s7650_s28, %s7651_s29  }
  0x1b   :  { %s7652_s17 = smov [#allocation7]   ;;  %s7653_s20 = smov [#allocation8]  }
  0x1c   :  { %s65_s18 = sshll.u32 %s7652_s17, 4  ;;  %s85_s4 = sshll.u32 %s7653_s20, 4  ;;  %s66_s18 = int_to_ptr.vmem [resolvable:$true] %s65_s18  ;;  %s86_s4 = int_to_ptr.vmem [resolvable:$true] %s85_s4 }
  0x1d   :  { %s7586_s19 = scalar_lea.vmem %s66_s18, 4096  ;;  %p7591_p11 = scmp.lt.s32.totalorder %s66_s18, %s66_s18 }
  0x1e   :  { %p7587_p10 = scmp.ne.s32.totalorder %s66_s18, %s7586_s19  ;;  %p7592_p12 = scmp.lt.s32.totalorder %s7586_s19, %s7586_s19 }
  0x20   :  { %p7593_p13 = por %p7592_p12, %p7591_p11 }
  0x22   :  { %p7594_p0 = pnand %p7593_p13, %p7587_p10 }
  0x24   :  { %7597 = shalt.err (!%p7594_p0)
}
  0x25   :  { %71 = dma.hbm_to_vmem [thread:$0]  %s8863_s8, 4096, %s66_s18, [#allocation6], %s7647_s21, %s7647_s21, %s7648_s22  }
  0x26   :  { %s7606_s2 = scalar_lea.vmem %s86_s4, 2048  ;;  %p7611_p2 = scmp.lt.s32.totalorder %s86_s4, %s86_s4 }
  0x27   :  { %p7607_p1 = scmp.ne.s32.totalorder %s86_s4, %s7606_s2  ;;  %p7612_p3 = scmp.lt.s32.totalorder %s7606_s2, %s7606_s2 }
  0x29   :  { %p7613_p4 = por %p7612_p3, %p7611_p2 }
  0x2b   :  { %p7614_p5 = pnand %p7613_p4, %p7607_p1 }
  0x2d   :  { %7617 = shalt.err (!%p7614_p5)
}
  0x2e   :  { %s7654_s25 = smov 128   ;;  %s7655_s26 = smov 8  }
  0x2f   :  { %91 = dma.hbm_to_vmem [thread:$0]  %s8868_s13, 2048, %s86_s4, [#allocation9], %s7654_s25, %s7654_s25, %s7655_s26  }
  0x30   :  { %7638 = dma.done.wait [#allocation3], 6144  }
  0x31   :  { %7639 = vsyncadd [#allocation3], 4294961152 }
  0x32   :  { %7640 = dma.done.wait [#allocation6], 6144  }
  0x33   :  { %7641 = vsyncadd [#allocation6], 4294961152 }
  0x34   :  { %7642 = dma.done.wait [#allocation9], 2048  }
  0x35   :  { %7643 = vsyncadd [#allocation9], 4294965248  ;;  %v7656_v0 = vmov 0   ;;  %v7184_v1 = vld [vmem:[#allocation2 + $0xac] ss:$12 sps:$4 sm:$0xff]   ;;  %v107_v10 = vld [vmem:[%s8855_s0] sm:$0xff]  ;;  %v214_v29 = vlaneseq }
  0x36   :  { %389 = vmatprep.mubr.bf16.mxu0 %v7656_v0  ;;  %v7186_v2 = vld [vmem:[#allocation2 + $0xa8] ss:$12 sps:$4 sm:$0xff]   ;;  %357 = vmatprep.subr.bf16.mxu0 %v7184_v1  ;;  %v7189_v4 = vld [vmem:[#allocation2 + $0x90] ss:$12 sps:$4 sm:$0xff]   ;;  %v7192_v6 = vld [vmem:[#allocation2 + $0x78] ss:$12 sps:$4 sm:$0xff]  }
  0x37   :  { %v7187_v3 = vld [vmem:[#allocation2 + $0x94] ss:$12 sps:$4 sm:$0xff]   ;;  %358 = vmatpush1.bf16.msra.mxu0 %v7186_v2  ;;  %v7190_v5 = vld [vmem:[#allocation2 + $0x7c] ss:$12 sps:$4 sm:$0xff]   ;;  %v7193_v7 = vld [vmem:[#allocation2 + $0x64] ss:$12 sps:$4 sm:$0xff]  }
  0x38   :  { %359 = vmatprep.subr.bf16.mxu0 %v7187_v3  ;;  %v7195_v8 = vld [vmem:[#allocation2 + $0x60] ss:$12 sps:$4 sm:$0xff]   ;;  %v7208_v13 = vld [vmem:[#allocation2 + $0xb0] ss:$12 sps:$4 sm:$0xff]   ;;  %v7209_v14 = vld [vmem:[#allocation2 + $0x98] ss:$12 sps:$4 sm:$0xff]  }
  0x39   :  { %v7196_v9 = vld [vmem:[#allocation2 + $0x4c] ss:$12 sps:$4 sm:$0xff]   ;;  %v7198_v15 = vld [vmem:[#allocation2 + $0x48] ss:$12 sps:$4 sm:$0xff]   ;;  %6562 = vmatprep.subr.bf16.mxu1 %v7208_v13  ;;  %v7201_v18 = vld [vmem:[#allocation2 + $0x30] ss:$12 sps:$4 sm:$0xff]  }
  0x3a   :  { %v108_v11 = vld [vmem:[%s8855_s0 + $0x8] sm:$0xff]  ;;  %v7199_v16 = vld [vmem:[#allocation2 + $0x34] ss:$12 sps:$4 sm:$0xff]   ;;  %6563 = vmatpush3.bf16.msra.mxu1 %v7208_v13  ;;  %v7204_v21 = vld [vmem:[#allocation2 + $0x18] ss:$12 sps:$4 sm:$0xff]   ;;  %v7657_v28 = vmov 0.0  }
  0x3b   :  { %360 = vmatpush1.bf16.msra.mxu0 %v7189_v4  ;;  %v7769_v12 = vpack.c.bf16 %v108_v11, %v107_v10  ;;  %6564 = vmatprep.subr.bf16.mxu1 %v7209_v14  ;;  %v7210_v17 = vld [vmem:[#allocation2 + $0x80] ss:$12 sps:$4 sm:$0xff]   ;;  %v7202_v19 = vld [vmem:[#allocation2 + $0x1c] ss:$12 sps:$4 sm:$0xff]   ;;  %v7205_v22 = vld [vmem:[#allocation2 + $0x4] ss:$12 sps:$4 sm:$0xff]  }
  0x3c   :  { %361 = vmatprep.subr.bf16.mxu0 %v7190_v5  ;;  %v7211_v20 = vld [vmem:[#allocation2 + $0x68] ss:$12 sps:$4 sm:$0xff]   ;;  %v7212_v23 = vld [vmem:[#allocation2 + $0x50] ss:$12 sps:$4 sm:$0xff]   ;;  %v7207_v24 = vld [vmem:[#allocation2] ss:$12 sps:$4 sm:$0xff]  }
  0x3d   :  { %6578 = vmatprep.mubr.bf16.mxu1 %v7769_v12  ;;  %v7213_v25 = vld [vmem:[#allocation2 + $0x38] ss:$12 sps:$4 sm:$0xff]   ;;  %v7214_v26 = vld [vmem:[#allocation2 + $0x20] ss:$12 sps:$4 sm:$0xff]   ;;  %v7215_v27 = vld [vmem:[#allocation2 + $0x8] ss:$12 sps:$4 sm:$0xff]  }
  0x3e   :  { %6565 = vmatpush3.bf16.msra.mxu1 %v7209_v14  ;;  %vm7658_vm0 = vmmov 0   ;;  %v7782_v30 = vshrl.u32 %v214_v29, 7  ;;  %v144_v32 = vld [vmem:[%s8858_s3] sm:$0x7]  ;;  %vm529_vm1 = vcmask 261120   ;;  %s7659_s17 = smov 96  }
  0x3f   :  { %362 = vmatpush1.bf16.msra.mxu0 %v7192_v6  ;;  %6566 = vmatprep.subr.bf16.mxu1 %v7210_v17  ;;  %s7660_s18 = smov 32   ;;  %vm1014_vm2 = vcmask 1043456   ;;  %vm914_vm3 = vcmask 64512   ;;  %vm1406_vm4 = vcmask 523264   ;;  %vm1409_vm5 = vcmask 785408  }
  0x40   :  { %363 = vmatprep.subr.bf16.mxu0 %v7193_v7  ;;  %v7785_v31 = vsub.s32 1, %v7782_v30  ;;  %v7794_v35 = vsub.s32 0, %v7782_v30  ;;  %v7822_v55 = vsub.s32 2, %v7782_v30 }
  0x42   :  { %6567 = vmatpush3.bf16.msra.mxu1 %v7210_v17  ;;  %v7791_v33 = vrot.slane %v144_v32, %v7785_v31  ;;  %v7798_v39 = vrot.slane %v144_v32, %v7794_v35  ;;  %v225_v56 = vrot.slane %v144_v32, %v7822_v55 }
  0x43   :  { %364 = vmatpush1.bf16.msra.mxu0 %v7195_v8  ;;  %6568 = vmatprep.subr.bf16.mxu1 %v7211_v20 }
  0x44   :  { %365 = vmatprep.subr.bf16.mxu0 %v7196_v9 }
  0x46   :  { %6569 = vmatpush3.bf16.msra.mxu1 %v7211_v20 }
  0x47   :  { %366 = vmatpush1.bf16.msra.mxu0 %v7198_v15  ;;  %6570 = vmatprep.subr.bf16.mxu1 %v7212_v23 }
  0x48   :  { %367 = vmatprep.subr.bf16.mxu0 %v7199_v16 }
  0x4a   :  { %6571 = vmatpush3.bf16.msra.mxu1 %v7212_v23 }
  0x4b   :  { %368 = vmatpush1.bf16.msra.mxu0 %v7201_v18  ;;  %6572 = vmatprep.subr.bf16.mxu1 %v7213_v25 }
  0x4c   :  { %369 = vmatprep.subr.bf16.mxu0 %v7202_v19 }
  0x4e   :  { %6573 = vmatpush3.bf16.msra.mxu1 %v7213_v25 }
  0x4f   :  { %370 = vmatpush1.bf16.msra.mxu0 %v7204_v21  ;;  %6574 = vmatprep.subr.bf16.mxu1 %v7214_v26 }
  0x50   :  { %371 = vmatprep.subr.bf16.mxu0 %v7205_v22 }
  0x52   :  { %6575 = vmatpush3.bf16.msra.mxu1 %v7214_v26 }
  0x53   :  { %372 = vmatpush1.bf16.msra.mxu0 %v7207_v24  ;;  %6576 = vmatprep.subr.bf16.mxu1 %v7215_v27 }
  0x54   :  { %6588 = vmatprep.subr.bf16.mxu0 %v7657_v28 }
  0x56   :  { %390 = vmatmul.mubr.bf16.vlgmr.msra.gmra.mxu0 %v7769_v12  ;;  %6577 = vmatpush3.bf16.msra.mxu1 %v7215_v27 }
  0x57   :  { %399 = vmatprep.mubr.bf16.mxu0 %v7656_v0  ;;  %6582 = vmatprep.subr.bf16.mxu1 %v7657_v28 }
  0x59   :  { %6579 = vmatmul.mubr.bf16.vlgmr.msra.gmra.mxu1 %v7769_v12 }
  0x5a   :  { %6584 = vmatprep.mubr.msk.bf16.mxu1 %vm7658_vm0, %v7657_v28 }
  0x5e   :  { %400 = vmatmul.mubr.bf16.gmra.mxu0 %v7769_v12 }
  0x5f   :  { %6590 = vmatprep.mubr.msk.bf16.mxu0 %vm7658_vm0, %v7657_v28 }
 0x116   :  { %v391_v34 = vpop.f32.mrf.mxu0 }
 0x117   :  { %v392_v45 = vadd.f32 %v391_v34, %v7798_v39 }
 0x118   :  { %v393_v36 = vpop.f32.mrf.mxu0 }
 0x119   :  { %v394_v37 = vadd.f32 %v393_v36, %v7791_v33  ;;  %v6292_v50 = vpack.c.bf16 %v392_v45, %v392_v45  ;;  %v6580_v57 = vpop.f32.mrf.mxu1 }
 0x11a   :  { %v395_v38 = vpop.f32.mrf.mxu0  ;;  %v7825_v58 = vadd.f32 %v6580_v57, %v225_v56 }
 0x11b   :  { %v6294_v40 = vpack.c.bf16 %v394_v37, %v394_v37  ;;  %v396_v46 = vadd.f32 %v395_v38, %v7798_v39  ;;  %v442_v59 = vpop.f32.mrf.mxu1 }
 0x11c   :  { %v397_v41 = vpop.f32.mrf.mxu0  ;;  %v443_v61 = vadd.f32 %v442_v59, %v225_v56 }
 0x11d   :  { %v398_v42 = vadd.f32 %v397_v41, %v7791_v33  ;;  %v534_v43 = vsel %vm529_vm1, %v6294_v40, 0  ;;  %v457_v51 = vpack.c.bf16 %v396_v46, %v392_v45  ;;  %v6293_v52 = vpack.c.bf16 %v396_v46, %v396_v46  ;;  %v6581_v60 = vpop.f32.mrf.mxu1  ;;  %v110_v41 = vld [vmem:[%s8856_s1] sm:$0xff] }
 0x11e   :  { %6583 = vmatpush3.bf16.xpose.msra.mxu1 %v534_v43  ;;  %v401_v44 = vpop.f32.mrf.mxu0  ;;  %v7827_v62 = vadd.f32 %v6581_v60, %v225_v56  ;;  %v6296_v26 = vpack.c.bf16 %v443_v61, %v443_v61 }
 0x11f   :  { %v481_v47 = vpack.c.bf16 %v398_v42, %v394_v37  ;;  %v6295_v48 = vpack.c.bf16 %v398_v42, %v398_v42  ;;  %6594 = vmatprep.subr.bf16.mxu1 %v7657_v28  ;;  %v445_v63 = vpop.f32.mrf.mxu1 }
 0x120   :  { %v7819_v53 = vpop.f32.mrf.mxu0  ;;  %v7831_v1 = vpack.c.bf16 %v7827_v62, %v7825_v58  ;;  %v446_v2 = vadd.f32 %v445_v63, %v225_v56  ;;  %v1016_v36 = vsel %vm1014_vm2, %v6296_v26, 0 }
 0x121   :  { %485 = vrot.lane.b32.xlu1 %v481_v47, %s7647_s21  ;;  %483 = vrot.lane.b32.xlu0 %v481_v47, %s7659_s17  ;;  %v580_v49 = vsel %vm529_vm1, %v6295_v48, 0 }
 0x122   :  { %6589 = vmatpush3.bf16.xpose.msra.mxu0 %v580_v49  ;;  %v404_v54 = vpop.f32.mrf.mxu0  ;;  %v7833_v3 = vpack.c.bf16 %v446_v2, %v443_v61  ;;  %v6297_v27 = vpack.c.bf16 %v446_v2, %v446_v2 }
 0x123   :  { %6600 = vmatprep.subr.bf16.mxu0 %v7657_v28 }
 0x124   :  { %v1062_v37 = vsel %vm1014_vm2, %v6297_v27, 0  ;;  %v7869_v40 = vpop.f32.mrf.mxu0 }
 0x125   :  { %6585 = vmatmul.mubr.msk.bf16.vlgmr.msra.gmra.mxu1 %vm529_vm1, %v6292_v50  ;;  %461 = vrot.lane.b32.xlu1 %v457_v51, %s7647_s21 }
 0x126   :  { %459 = vrot.lane.b32.xlu0 %v457_v51, %s7659_s17  ;;  %6596 = vmatprep.mubr.msk.bf16.mxu1 %vm7658_vm0, %v7657_v28 }
 0x129   :  { %6591 = vmatmul.mubr.msk.bf16.vlgmr.msra.gmra.mxu0 %vm529_vm1, %v6293_v52  ;;  %463 = vrot.lane.b32.xlu1 %v457_v51, %s7660_s18 }
 0x12a   :  { %487 = vrot.lane.b32.xlu0 %v481_v47, %s7660_s18  ;;  %6602 = vmatprep.mubr.msk.bf16.mxu0 %vm7658_vm0, %v7657_v28  ;;  %v111_v47 = vld [vmem:[%s8856_s1 + $0x8] sm:$0xff] }
 0x193   :  { %v484_v4 = vpop.permute.xlu0 %483  ;;  %v486_v9 = vpop.permute.xlu1 %485 }
 0x194   :  { %v5995_v5 = vcombine.low %v484_v4, %v484_v4  ;;  %v5996_v6 = vcombine.high %v484_v4, %v484_v4  ;;  %v5997_v11 = vcombine.low %v486_v9, %v486_v9  ;;  %v5998_v13 = vcombine.high %v486_v9, %v486_v9 }
 0x196   :  { %v626_v7 = vsel %vm529_vm1, %v5995_v5, 0  ;;  %v672_v8 = vsel %vm529_vm1, %v5996_v6, 0  ;;  %v718_v16 = vsel %vm529_vm1, %v5997_v11, 0  ;;  %v764_v17 = vsel %vm529_vm1, %v5998_v13, 0 }
 0x197   :  { %6595 = vmatpush3.bf16.xpose.msra.mxu1 %v626_v7  ;;  %6601 = vmatpush3.bf16.xpose.msra.mxu0 %v672_v8  ;;  %v462_v19 = vpop.permute.xlu1 %461 }
 0x198   :  { %6606 = vmatprep.subr.bf16.mxu1 %v7657_v28  ;;  %6612 = vmatprep.subr.bf16.mxu0 %v7657_v28  ;;  %v460_v10 = vpop.permute.xlu0 %459  ;;  %v5989_v22 = vcombine.low %v462_v19, %v462_v19  ;;  %v5990_v23 = vcombine.high %v462_v19, %v462_v19 }
 0x199   :  { %v5987_v14 = vcombine.low %v460_v10, %v460_v10  ;;  %v5988_v15 = vcombine.high %v460_v10, %v460_v10 }
 0x19b   :  { %v464_v29 = vpop.permute.xlu1 %463 }
 0x19c   :  { %v488_v18 = vpop.permute.xlu0 %487  ;;  %v5991_v32 = vcombine.low %v464_v29, %v464_v29  ;;  %v5992_v34 = vcombine.high %v464_v29, %v464_v29 }
 0x19d   :  { %v5999_v20 = vcombine.low %v488_v18, %v488_v18  ;;  %v6000_v21 = vcombine.high %v488_v18, %v488_v18 }
 0x19e   :  { %6597 = vmatmul.mubr.msk.bf16.vlgmr.msra.gmra.mxu1 %vm529_vm1, %v5987_v14  ;;  %6603 = vmatmul.mubr.msk.bf16.vlgmr.msra.gmra.mxu0 %vm529_vm1, %v5988_v15 }
 0x19f   :  { %6607 = vmatpush3.bf16.xpose.msra.mxu1 %v718_v16  ;;  %6613 = vmatpush3.bf16.xpose.msra.mxu0 %v764_v17  ;;  %v810_v24 = vsel %vm529_vm1, %v5999_v20, 0  ;;  %v856_v25 = vsel %vm529_vm1, %v6000_v21, 0 }
 0x1a0   :  { %6608 = vmatprep.mubr.msk.bf16.mxu1 %vm7658_vm0, %v7657_v28  ;;  %6614 = vmatprep.mubr.msk.bf16.mxu0 %vm7658_vm0, %v7657_v28 }
 0x1a1   :  { %6618 = vmatprep.subr.bf16.mxu1 %v7657_v28  ;;  %6624 = vmatprep.subr.bf16.mxu0 %v7657_v28 }
 0x1a6   :  { %6609 = vmatmul.mubr.msk.bf16.vlgmr.msra.gmra.mxu1 %vm529_vm1, %v5989_v22  ;;  %6615 = vmatmul.mubr.msk.bf16.vlgmr.msra.gmra.mxu0 %vm529_vm1, %v5990_v23 }
 0x1a7   :  { %6619 = vmatpush3.bf16.xpose.msra.mxu1 %v810_v24  ;;  %6625 = vmatpush3.bf16.xpose.msra.mxu0 %v856_v25 }
 0x1a8   :  { %6620 = vmatprep.mubr.msk.bf16.mxu1 %vm7658_vm0, %v7657_v28  ;;  %6626 = vmatprep.mubr.msk.bf16.mxu0 %vm7658_vm0, %v7657_v28 }
 0x1a9   :  { %6630 = vmatprep.subr.bf16.mxu1 %v7657_v28  ;;  %6636 = vmatprep.subr.bf16.mxu0 %v7657_v28 }
 0x1ae   :  { %6621 = vmatmul.mubr.msk.bf16.vlgmr.msra.gmra.mxu1 %vm529_vm1, %v5991_v32  ;;  %6627 = vmatmul.mubr.msk.bf16.vlgmr.msra.gmra.mxu0 %vm529_vm1, %v5992_v34 }
 0x1af   :  { %6631 = vmatpush3.bf16.msra.mxu1 %v1016_v36  ;;  %6637 = vmatpush3.bf16.msra.mxu0 %v1062_v37 }
 0x1b0   :  { %6638 = vmatprep.mubr.msk.bf16.mxu0 %vm7658_vm0, %v7657_v28  ;;  %6648 = vmatprep.subr.bf16.mxu0 %v7657_v28 }
 0x1b1   :  { %6632 = vmatprep.mubr.msk.bf16.mxu1 %vm7658_vm0, %v7657_v28  ;;  %6642 = vmatprep.subr.bf16.mxu1 %v7657_v28 }
 0x1e5   :  { %v570_v38 = vpop.f32.mrf.mxu1 }
 0x1e6   :  { %v898_v42 = vmul.f32 0.17677669, %v570_v38 }
 0x1e7   :  { %v6586_v43 = vpop.f32.mrf.mxu1 }
 0x1e8   :  { %v7874_v44 = vadd.f32 %v898_v42, %v110_v41 }
 0x1e9   :  { %v573_v45 = vpop.f32.mrf.mxu1  ;;  %v616_v46 = vpop.f32.mrf.mxu0 }
 0x1ea   :  { %v899_v48 = vmul.f32 0.17677669, %v616_v46  ;;  %v915_v49 = vsel %vm914_vm3, %v7874_v44, -inf }
 0x1eb   :  { %v6587_v50 = vpop.f32.mrf.mxu1  ;;  %v6592_v51 = vpop.f32.mrf.mxu0  ;;  %916 = vmax.xlane.f32.xlu0 %v915_v49 }
 0x1ec   :  { %v907_v52 = vadd.f32 %v899_v48, %v111_v47 }
 0x1ed   :  { %v619_v54 = vpop.f32.mrf.mxu0 }
 0x1ee   :  { %v918_v56 = vsel %vm914_vm3, %v907_v52, -inf }
 0x1ef   :  { %v6593_v57 = vpop.f32.mrf.mxu0  ;;  %919 = vmax.xlane.f32.xlu1 %v918_v56 }
 0x25e   :  { %v662_v59 = vpop.f32.mrf.mxu1  ;;  %v708_v60 = vpop.f32.mrf.mxu0 }
 0x25f   :  { %v900_v61 = vmul.f32 0.17677669, %v662_v59  ;;  %v901_v63 = vmul.f32 0.17677669, %v708_v60 }
 0x260   :  { %v6598_v2 = vpop.f32.mrf.mxu1  ;;  %v6604_v4 = vpop.f32.mrf.mxu0 }
 0x261   :  { %v908_v5 = vadd.f32 %v900_v61, %v110_v41  ;;  %v909_v9 = vadd.f32 %v901_v63, %v111_v47 }
 0x262   :  { %v665_v6 = vpop.f32.mrf.mxu1  ;;  %v711_v7 = vpop.f32.mrf.mxu0 }
 0x263   :  { %v921_v8 = vsel %vm914_vm3, %v908_v5, -inf  ;;  %v924_v17 = vsel %vm914_vm3, %v909_v9, -inf }
 0x264   :  { %v6605_v10 = vpop.f32.mrf.mxu0  ;;  %922 = vmax.xlane.f32.xlu0 %v921_v8  ;;  %v6599_v11 = vpop.f32.mrf.mxu1 }
 0x266   :  { %v754_v13 = vpop.f32.mrf.mxu1  ;;  %v800_v14 = vpop.f32.mrf.mxu0 }
 0x267   :  { %v902_v15 = vmul.f32 0.17677669, %v754_v13  ;;  %v903_v16 = vmul.f32 0.17677669, %v800_v14 }
 0x268   :  { %v6616_v18 = vpop.f32.mrf.mxu0  ;;  %925 = vmax.xlane.f32.xlu0 %v924_v17  ;;  %v6610_v19 = vpop.f32.mrf.mxu1 }
 0x269   :  { %v911_v20 = vadd.f32 %v903_v16, %v111_v47  ;;  %v910_v21 = vadd.f32 %v902_v15, %v110_v41 }
 0x26a   :  { %v757_v22 = vpop.f32.mrf.mxu1  ;;  %v803_v23 = vpop.f32.mrf.mxu0 }
 0x26b   :  { %v930_v24 = vsel %vm914_vm3, %v911_v20, -inf  ;;  %v927_v25 = vsel %vm914_vm3, %v910_v21, -inf }
 0x26c   :  { %v6617_v26 = vpop.f32.mrf.mxu0  ;;  %931 = vmax.xlane.f32.xlu0 %v930_v24  ;;  %928 = vmax.xlane.f32.xlu1 %v927_v25  ;;  %v6611_v27 = vpop.f32.mrf.mxu1 }
 0x26e   :  { %v846_v29 = vpop.f32.mrf.mxu1  ;;  %v892_v32 = vpop.f32.mrf.mxu0 }
 0x26f   :  { %v904_v34 = vmul.f32 0.17677669, %v846_v29  ;;  %v905_v36 = vmul.f32 0.17677669, %v892_v32 }
 0x270   :  { %v6622_v37 = vpop.f32.mrf.mxu1  ;;  %v6628_v38 = vpop.f32.mrf.mxu0 }
 0x271   :  { %v913_v42 = vadd.f32 %v905_v36, %v111_v47  ;;  %v912_v43 = vadd.f32 %v904_v34, %v110_v41 }
 0x272   :  { %v849_v45 = vpop.f32.mrf.mxu1  ;;  %v895_v46 = vpop.f32.mrf.mxu0 }
 0x273   :  { %v936_v48 = vsel %vm914_vm3, %v913_v42, -inf  ;;  %v933_v49 = vsel %vm914_vm3, %v912_v43, -inf }
 0x274   :  { %937 = vmax.xlane.f32.xlu0 %v936_v48  ;;  %v6629_v50 = vpop.f32.mrf.mxu0  ;;  %934 = vmax.xlane.f32.xlu1 %v933_v49  ;;  %v6623_v51 = vpop.f32.mrf.mxu1 }
 0x275   :  { %v917_v47 = vpop.xlane.xlu0 %916 }
 0x276   :  { %v939_v60 = vsub.f32 %v7874_v44, %v917_v47 }
 0x278   :  { %v920_v54 = vpop.xlane.xlu1 %919  ;;  %v947_v61 = vmul.f32 1.442695, %v939_v60 }
 0x279   :  { %v940_v56 = vsub.f32 %v907_v52, %v920_v54 }
 0x27b   :  { %v949_v57 = vmul.f32 1.442695, %v940_v56 }
 0x27d   :  { %7368 = vpow2.f32 %v949_v57 }
 0x27e   :  { %7370 = vpow2.f32 %v947_v61 }
 0x285   :  { %507 = vrot.lane.b32.xlu1 %v7833_v3, %s7659_s17 }
 0x28a   :  { %v7369_v59 = vpop.eup %7368 }
 0x28b   :  { %v966_v41 = vsel %vm914_vm3, %v7369_v59, 0.0  ;;  %v7892_v63 = vpop.eup %7370 }
 0x28c   :  { %967 = vadd.xlane.f32.xlu0 %v966_v41  ;;  %v963_v2 = vsel %vm914_vm3, %v7892_v63, 0.0 }
 0x2a9   :  { %964 = vadd.xlane.f32.xlu1 %v963_v2 }
 0x2ed   :  { %v923_v52 = vpop.xlane.xlu0 %922 }
 0x2ee   :  { %v941_v4 = vsub.f32 %v908_v5, %v923_v52 }
 0x2f0   :  { %v951_v6 = vmul.f32 1.442695, %v941_v4 }
 0x2f1   :  { %v926_v7 = vpop.xlane.xlu0 %925 }
 0x2f2   :  { %7372 = vpow2.f32 %v951_v6  ;;  %v942_v8 = vsub.f32 %v909_v9, %v926_v7 }
 0x2f4   :  { %v953_v10 = vmul.f32 1.442695, %v942_v8 }
 0x2f5   :  { %v929_v11 = vpop.xlane.xlu1 %928  ;;  %v932_v13 = vpop.xlane.xlu0 %931 }
 0x2f6   :  { %7374 = vpow2.f32 %v953_v10  ;;  %v943_v14 = vsub.f32 %v910_v21, %v929_v11  ;;  %v944_v44 = vsub.f32 %v911_v20, %v932_v13 }
 0x2f8   :  { %v955_v15 = vmul.f32 1.442695, %v943_v14  ;;  %v957_v16 = vmul.f32 1.442695, %v944_v44 }
 0x2fa   :  { %7376 = vpow2.f32 %v955_v15 }
 0x2fb   :  { %7378 = vpow2.f32 %v957_v16 }
 0x2fd   :  { %v935_v17 = vpop.xlane.xlu1 %934  ;;  %v938_v18 = vpop.xlane.xlu0 %937 }
 0x2fe   :  { %v945_v19 = vsub.f32 %v912_v43, %v935_v17  ;;  %v946_v22 = vsub.f32 %v913_v42, %v938_v18 }
 0x2ff   :  { %v7373_v23 = vpop.eup %7372 }
 0x300   :  { %v959_v5 = vmul.f32 1.442695, %v945_v19  ;;  %v961_v24 = vmul.f32 1.442695, %v946_v22  ;;  %v969_v25 = vsel %vm914_vm3, %v7373_v23, 0.0 }
 0x301   :  { %970 = vadd.xlane.f32.xlu1 %v969_v25  ;;  %v508_v42 = vpop.permute.xlu1 %507 }
 0x302   :  { %7380 = vpow2.f32 %v959_v5  ;;  %v6004_v45 = vcombine.high %v508_v42, %v508_v42  ;;  %v6003_v54 = vcombine.low %v508_v42, %v508_v42  ;;  %v7528_v42 = vld [vmem:[#allocation2 + $0x48] ss:$12 sps:$4 sm:$0xff]  }
 0x303   :  { %v7375_v9 = vpop.eup %7374  ;;  %7382 = vpow2.f32 %v961_v24 }
 0x304   :  { %v972_v21 = vsel %vm914_vm3, %v7375_v9, 0.0  ;;  %v1154_v49 = vsel %vm1014_vm2, %v6004_v45, 0  ;;  %v7530_v45 = vld [vmem:[#allocation2 + $0x18] ss:$12 sps:$4 sm:$0xff]  }
 0x305   :  { %973 = vadd.xlane.f32.xlu0 %v972_v21 }
 0x307   :  { %v7898_v20 = vpop.eup %7376 }
 0x308   :  { %v7900_v26 = vpop.eup %7378  ;;  %v975_v27 = vsel %vm914_vm3, %v7898_v20, 0.0 }
 0x309   :  { %976 = vadd.xlane.f32.xlu1 %v975_v27  ;;  %v978_v29 = vsel %vm914_vm3, %v7900_v26, 0.0 }
 0x30a   :  { %979 = vadd.xlane.f32.xlu0 %v978_v29 }
 0x30f   :  { %v7906_v32 = vpop.eup %7380 }
 0x310   :  { %v7908_v34 = vpop.eup %7382  ;;  %v981_v36 = vsel %vm914_vm3, %v7906_v32, 0.0 }
 0x311   :  { %982 = vadd.xlane.f32.xlu1 %v981_v36  ;;  %v984_v37 = vsel %vm914_vm3, %v7908_v34, 0.0 }
 0x312   :  { %985 = vadd.xlane.f32.xlu0 %v984_v37  ;;  %v7524_v37 = vld [vmem:[#allocation2 + $0xa8] ss:$12 sps:$4 sm:$0xff]  }
 0x315   :  { %v968_v38 = vpop.xlane.xlu0 %967 }
 0x316   :  { %7384 = vrcp.f32 %v968_v38  ;;  %v7527_v38 = vld [vmem:[#allocation2 + $0x60] ss:$12 sps:$4 sm:$0xff]  }
 0x322   :  { %511 = vrot.lane.b32.xlu1 %v7833_v3, %s7660_s18 }
 0x323   :  { %v7385_v43 = vpop.eup %7384 }
 0x324   :  { %v996_v46 = vmul.f32 %v7385_v43, %v7369_v59  ;;  %v7529_v43 = vld [vmem:[#allocation2 + $0x30] ss:$12 sps:$4 sm:$0xff]  }
 0x326   :  { %v1004_v48 = vpack.c.bf16 %v996_v46, %v996_v46  ;;  %v7531_v46 = vld [vmem:[#allocation2] ss:$12 sps:$4 sm:$0xff]  }
 0x328   :  { %509 = vrot.lane.b32.xlu0 %v7833_v3, %s7647_s21  ;;  %6639 = vmatmul.mubr.msk.bf16.vlgmr.msra.gmra.mxu0 %vm914_vm3, %v1004_v48  ;;  %v1108_v3 = vsel %vm1014_vm2, %v6003_v54, 0  ;;  %v7969_v54 = vld [vmem:[#allocation5 + $0x38] sm:$0xff]  }
 0x329   :  { %6649 = vmatpush3.bf16.msra.mxu0 %v1154_v49  ;;  %6650 = vmatprep.mubr.msk.bf16.mxu0 %vm7658_vm0, %v7657_v28 }
 0x32a   :  { %6660 = vmatprep.subr.bf16.mxu0 %v7657_v28 }
 0x332   :  { %v965_v50 = vpop.xlane.xlu1 %964 }
 0x333   :  { %7386 = vrcp.f32 %v965_v50 }
 0x340   :  { %v7387_v51 = vpop.eup %7386 }
 0x341   :  { %v995_v56 = vmul.f32 %v7387_v51, %v7892_v63 }
 0x343   :  { %v1003_v57 = vpack.c.bf16 %v995_v56, %v995_v56  ;;  %v7972_v56 = vld [vmem:[#allocation5 + $0x30] sm:$0xff]  }
 0x345   :  { %6633 = vmatmul.mubr.msk.bf16.vlgmr.msra.gmra.mxu1 %vm914_vm3, %v1003_v57  ;;  %v7976_v57 = vld [vmem:[#allocation5 + $0x28] sm:$0xff]  }
 0x346   :  { %6643 = vmatpush3.bf16.msra.mxu1 %v1108_v3  ;;  %6644 = vmatprep.mubr.msk.bf16.mxu1 %vm7658_vm0, %v7657_v28 }
 0x347   :  { %6654 = vmatprep.subr.bf16.mxu1 %v7657_v28 }
 0x38a   :  { %v971_v59 = vpop.xlane.xlu1 %970 }
 0x38b   :  { %7388 = vrcp.f32 %v971_v59 }
 0x38e   :  { %v974_v41 = vpop.xlane.xlu0 %973 }
 0x38f   :  { %7390 = vrcp.f32 %v974_v41 }
 0x392   :  { %v977_v47 = vpop.xlane.xlu1 %976 }
 0x393   :  { %7392 = vrcp.f32 %v977_v47  ;;  %v980_v60 = vpop.xlane.xlu0 %979 }
 0x394   :  { %7394 = vrcp.f32 %v980_v60  ;;  %v7981_v60 = vld [vmem:[#allocation5 + $0x20] sm:$0xff]  }
 0x398   :  { %v7389_v61 = vpop.eup %7388 }
 0x399   :  { %v997_v63 = vmul.f32 %v7389_v61, %v7373_v23  ;;  %v7984_v61 = vld [vmem:[#allocation5 + $0x18] sm:$0xff]  }
 0x39a   :  { %v983_v2 = vpop.xlane.xlu1 %982 }
 0x39b   :  { %7396 = vrcp.f32 %v983_v2  ;;  %v986_v52 = vpop.xlane.xlu0 %985  ;;  %v1005_v4 = vpack.c.bf16 %v997_v63, %v997_v63 }
 0x39c   :  { %v7391_v6 = vpop.eup %7390  ;;  %7398 = vrcp.f32 %v986_v52  ;;  %v7989_v52 = vld [vmem:[#allocation5 + $0x10] sm:$0xff]  }
 0x39d   :  { %6645 = vmatmul.mubr.msk.bf16.vlgmr.msra.gmra.mxu1 %vm914_vm3, %v1005_v4  ;;  %v998_v7 = vmul.f32 %v7391_v6, %v7375_v9 }
 0x39e   :  { %6656 = vmatprep.mubr.msk.bf16.mxu1 %vm7658_vm0, %v7657_v28  ;;  %v512_v8 = vpop.permute.xlu1 %511 }
 0x39f   :  { %v510_v10 = vpop.permute.xlu0 %509  ;;  %v1006_v11 = vpack.c.bf16 %v998_v7, %v998_v7  ;;  %v6007_v17 = vcombine.low %v512_v8, %v512_v8  ;;  %v6008_v5 = vcombine.high %v512_v8, %v512_v8  ;;  %v7992_v7 = vld [vmem:[#allocation5 + $0x8] sm:$0xff]  }
 0x3a0   :  { %v7393_v13 = vpop.eup %7392  ;;  %v6005_v14 = vcombine.low %v510_v10, %v510_v10  ;;  %v6006_v44 = vcombine.high %v510_v10, %v510_v10 }
 0x3a1   :  { %v7395_v15 = vpop.eup %7394  ;;  %6651 = vmatmul.mubr.msk.bf16.vlgmr.msra.gmra.mxu0 %vm914_vm3, %v1006_v11  ;;  %v999_v16 = vmul.f32 %v7393_v13, %v7898_v20  ;;  %v1292_v24 = vsel %vm1014_vm2, %v6007_v17, 0  ;;  %v1338_v20 = vsel %vm1014_vm2, %v6008_v5, 0 }
 0x3a2   :  { %v1200_v18 = vsel %vm1014_vm2, %v6005_v14, 0  ;;  %v1246_v19 = vsel %vm1014_vm2, %v6006_v44, 0  ;;  %6662 = vmatprep.mubr.msk.bf16.mxu0 %vm7658_vm0, %v7657_v28  ;;  %v1000_v23 = vmul.f32 %v7395_v15, %v7900_v26  ;;  %v7998_v15 = vld [vmem:[#allocation5] sm:$0xff]  }
 0x3a3   :  { %6655 = vmatpush3.bf16.msra.mxu1 %v1200_v18  ;;  %6661 = vmatpush3.bf16.msra.mxu0 %v1246_v19  ;;  %v1007_v22 = vpack.c.bf16 %v999_v16, %v999_v16 }
 0x3a4   :  { %6666 = vmatprep.subr.bf16.mxu1 %v7657_v28  ;;  %6672 = vmatprep.subr.bf16.mxu0 %v7657_v28  ;;  %v1008_v25 = vpack.c.bf16 %v1000_v23, %v1000_v23 }
 0x3a6   :  { %6657 = vmatmul.mubr.msk.bf16.vlgmr.msra.gmra.mxu1 %vm914_vm3, %v1007_v22 }
 0x3a7   :  { %6667 = vmatpush3.bf16.msra.mxu1 %v1292_v24  ;;  %6668 = vmatprep.mubr.msk.bf16.mxu1 %vm7658_vm0, %v7657_v28 }
 0x3a8   :  { %v7397_v9 = vpop.eup %7396  ;;  %6678 = vmatprep.subr.bf16.mxu1 %v7657_v28 }
 0x3a9   :  { %v7399_v21 = vpop.eup %7398  ;;  %6663 = vmatmul.mubr.msk.bf16.vlgmr.msra.gmra.mxu0 %vm914_vm3, %v1008_v25  ;;  %v1001_v26 = vmul.f32 %v7397_v9, %v7906_v32  ;;  %v7525_v32 = vld [vmem:[#allocation2 + $0x90] ss:$12 sps:$4 sm:$0xff]  }
 0x3aa   :  { %6673 = vmatpush3.bf16.msra.mxu0 %v1338_v20  ;;  %6674 = vmatprep.mubr.msk.bf16.mxu0 %vm7658_vm0, %v7657_v28  ;;  %v1002_v29 = vmul.f32 %v7399_v21, %v7908_v34  ;;  %v7526_v34 = vld [vmem:[#allocation2 + $0x78] ss:$12 sps:$4 sm:$0xff]  }
 0x3ab   :  { %v1009_v27 = vpack.c.bf16 %v1001_v26, %v1001_v26  ;;  %6698 = vmatprep.subr.bf16.mxu0 %v7657_v28 }
 0x3ac   :  { %v1010_v36 = vpack.c.bf16 %v1002_v29, %v1002_v29 }
 0x3ae   :  { %6669 = vmatmul.mubr.msk.bf16.vlgmr.msra.gmra.mxu1 %vm914_vm3, %v1009_v27 }
 0x3af   :  { %6694 = vmatprep.mubr.msk.bf16.mxu1 %vm7658_vm0, %v7657_v28  ;;  %6679 = vmatpush3.bf16.msra.mxu1 %v7969_v54 }
 0x3b0   :  { %6680 = vmatprep.subr.bf16.mxu1 %v7657_v28 }
 0x3b1   :  { %6675 = vmatmul.mubr.msk.bf16.vlgmr.msra.gmra.mxu0 %vm914_vm3, %v1010_v36 }
 0x3b2   :  { %6699 = vmatpush3.bf16.msra.mxu0 %v7524_v37  ;;  %6714 = vmatprep.mubr.msk.bf16.mxu0 %vm7658_vm0, %v7657_v28 }
 0x3b3   :  { %6700 = vmatprep.subr.bf16.mxu0 %v7657_v28  ;;  %6681 = vmatpush3.bf16.msra.mxu1 %v7972_v56 }
 0x3b4   :  { %6682 = vmatprep.subr.bf16.mxu1 %v7657_v28 }
 0x3b6   :  { %6701 = vmatpush3.bf16.msra.mxu0 %v7525_v32 }
 0x3b7   :  { %6702 = vmatprep.subr.bf16.mxu0 %v7657_v28  ;;  %6683 = vmatpush3.bf16.msra.mxu1 %v7976_v57 }
 0x3b8   :  { %6684 = vmatprep.subr.bf16.mxu1 %v7657_v28 }
 0x3ba   :  { %6703 = vmatpush3.bf16.msra.mxu0 %v7526_v34 }
 0x3bb   :  { %6704 = vmatprep.subr.bf16.mxu0 %v7657_v28  ;;  %6685 = vmatpush3.bf16.msra.mxu1 %v7981_v60 }
 0x3bc   :  { %6686 = vmatprep.subr.bf16.mxu1 %v7657_v28 }
 0x3be   :  { %6705 = vmatpush3.bf16.msra.mxu0 %v7527_v38 }
 0x3bf   :  { %6706 = vmatprep.subr.bf16.mxu0 %v7657_v28  ;;  %6687 = vmatpush3.bf16.msra.mxu1 %v7984_v61 }
 0x3c0   :  { %6688 = vmatprep.subr.bf16.mxu1 %v7657_v28 }
 0x3c2   :  { %6707 = vmatpush3.bf16.msra.mxu0 %v7528_v42 }
 0x3c3   :  { %6708 = vmatprep.subr.bf16.mxu0 %v7657_v28  ;;  %6689 = vmatpush3.bf16.msra.mxu1 %v7989_v52 }
 0x3c4   :  { %6690 = vmatprep.subr.bf16.mxu1 %v7657_v28 }
 0x3c6   :  { %6709 = vmatpush3.bf16.msra.mxu0 %v7529_v43  ;;  %v403_v43 = vadd.f32 %v7819_v53, %v7791_v33 }
 0x3c7   :  { %6710 = vmatprep.subr.bf16.mxu0 %v7657_v28  ;;  %6691 = vmatpush3.bf16.msra.mxu1 %v7992_v7 }
 0x3c8   :  { %6692 = vmatprep.subr.bf16.mxu1 %v7657_v28 }
 0x3ca   :  { %6711 = vmatpush3.bf16.msra.mxu0 %v7530_v45 }
 0x3cb   :  { %6712 = vmatprep.subr.bf16.mxu0 %v7657_v28  ;;  %6693 = vmatpush3.bf16.msra.mxu1 %v7998_v15 }
 0x3cc   :  { %6718 = vmatprep.subr.bf16.mxu1 %v7657_v28 }
 0x3ce   :  { %6713 = vmatpush3.bf16.msra.mxu0 %v7531_v46 }
 0x3cf   :  { %6724 = vmatprep.subr.bf16.mxu0 %v7657_v28 }
 0x3e8   :  { %v7967_v48 = vpop.f32.mrf.mxu0 }
 0x3ea   :  { %v6640_v49 = vpop.f32.mrf.mxu0 }
 0x3ec   :  { %v1101_v50 = vpop.f32.mrf.mxu0 }
 0x3ee   :  { %v6641_v51 = vpop.f32.mrf.mxu0 }
 0x405   :  { %v1052_v3 = vpop.f32.mrf.mxu1 }
 0x407   :  { %v6634_v59 = vpop.f32.mrf.mxu1 }
 0x409   :  { %v1055_v41 = vpop.f32.mrf.mxu1 }
 0x40b   :  { %v6635_v47 = vpop.f32.mrf.mxu1 }
 0x40c   :  { %v6300_v47 = vpack.c.bf16 %v403_v43, %v403_v43 }
 0x45d   :  { %v1144_v63 = vpop.f32.mrf.mxu1 }
 0x45f   :  { %v6646_v2 = vpop.f32.mrf.mxu1 }
 0x461   :  { %v1147_v4 = vpop.f32.mrf.mxu1  ;;  %v1190_v6 = vpop.f32.mrf.mxu0 }
 0x462   :  { %v7124_v8 = vpack.i.bf16 %v1190_v6, %v1144_v63 }
 0x463   :  { %v6647_v10 = vpop.f32.mrf.mxu1  ;;  %v6652_v11 = vpop.f32.mrf.mxu0 }
 0x464   :  { %7125 = vrot.lane.b32.xlu1 %v7124_v8, %s7660_s18  ;;  %v1663_v8 = vsel %vm529_vm1, %v6300_v47, 0 }
 0x465   :  { %v1193_v13 = vpop.f32.mrf.mxu0 }
 0x466   :  { %v1236_v14 = vpop.f32.mrf.mxu1  ;;  %v7532_v13 = vld [vmem:[%s8855_s0] sm:$0xff] }
 0x467   :  { %v6653_v44 = vpop.f32.mrf.mxu0 }
 0x468   :  { %v6658_v16 = vpop.f32.mrf.mxu1 }
 0x469   :  { %v1282_v17 = vpop.f32.mrf.mxu0 }
 0x46a   :  { %v1239_v18 = vpop.f32.mrf.mxu1  ;;  %v7129_v19 = vpack.i.bf16 %v1282_v17, %v1236_v14 }
 0x46b   :  { %v6664_v22 = vpop.f32.mrf.mxu0  ;;  %v7533_v18 = vld [vmem:[%s8855_s0 + $0x8] sm:$0xff] }
 0x46c   :  { %v6659_v23 = vpop.f32.mrf.mxu1  ;;  %7130 = vrot.lane.b32.xlu0 %v7129_v19, %s7647_s21  ;;  %v406_v22 = vadd.f32 %v7869_v40, %v7791_v33 }
 0x46d   :  { %v1285_v5 = vpop.f32.mrf.mxu0 }
 0x46e   :  { %v1328_v24 = vpop.f32.mrf.mxu1  ;;  %v8032_v23 = vpack.c.bf16 %v406_v22, %v403_v43 }
 0x46f   :  { %v6665_v25 = vpop.f32.mrf.mxu0 }
 0x470   :  { %v6670_v9 = vpop.f32.mrf.mxu1 }
 0x471   :  { %v1374_v21 = vpop.f32.mrf.mxu0 }
 0x472   :  { %v1331_v20 = vpop.f32.mrf.mxu1  ;;  %v7134_v26 = vpack.i.bf16 %v1374_v21, %v1328_v24 }
 0x473   :  { %v6676_v27 = vpop.f32.mrf.mxu0 }
 0x474   :  { %v6671_v29 = vpop.f32.mrf.mxu1  ;;  %7135 = vrot.lane.b32.xlu1 %v7134_v26, %s7659_s17 }
 0x475   :  { %v1377_v36 = vpop.f32.mrf.mxu0 }
 0x477   :  { %v6677_v37 = vpop.f32.mrf.mxu0 }
 0x4d6   :  { %v7126_v32 = vpop.permute.xlu1 %7125 }
 0x4d7   :  { %v7128_v38 = vunpack.i.h.bf16 %v7126_v32  ;;  %v7127_v42 = vunpack.i.l.bf16 %v7126_v32 }
 0x4d9   :  { %v1405_v50 = vsel %vm529_vm1, %v7967_v48, %v7128_v38  ;;  %v1404_v51 = vsel %vm529_vm1, %v1052_v3, %v7127_v42  ;;  %v8020_v48 = vld [vmem:[%s8860_s5] ss:$0 sm:$0xff] }
 0x4de   :  { %v7131_v34 = vpop.permute.xlu0 %7130 }
 0x4df   :  { %v7133_v45 = vunpack.i.h.bf16 %v7131_v34  ;;  %v7132_v46 = vunpack.i.l.bf16 %v7131_v34  ;;  %v8041_v34 = vld [vmem:[%s8865_s10] sm:$0x3f] }
 0x4e0   :  { %v1536_v43 = vrot.slane %v8041_v34, %v7794_v35 }
 0x4e1   :  { %v1408_v63 = vsel %vm1406_vm4, %v1405_v50, %v7133_v45  ;;  %v1407_v2 = vsel %vm1406_vm4, %v1404_v51, %v7132_v46  ;;  %v1542_v50 = vrot.slane %v8041_v34, %v7785_v31 }
 0x4e6   :  { %v7136_v49 = vpop.permute.xlu1 %7135 }
 0x4e7   :  { %v7138_v59 = vunpack.i.h.bf16 %v7136_v49  ;;  %v7137_v41 = vunpack.i.l.bf16 %v7136_v49 }
 0x4e9   :  { %v1411_v4 = vsel %vm1409_vm5, %v1408_v63, %v7138_v59  ;;  %v1410_v53 = vsel %vm1409_vm5, %v1407_v2, %v7137_v41  ;;  %v6301_v59 = vpack.c.bf16 %v406_v22, %v406_v22 }
 0x4ea   :  { %v1412_v6 = vpack.c.bf16 %v1411_v4, %v1410_v53 }
 0x4eb   :  { %v1709_v2 = vsel %vm529_vm1, %v6301_v59, 0 }
 0x4ec   :  { %6695 = vmatmul.mubr.bf16.vlgmr.msra.gmra.mxu1 %v1412_v6 }
 0x4ed   :  { %6719 = vmatpush3.bf16.xpose.msra.mxu1 %v1663_v8  ;;  %6720 = vmatprep.mubr.msk.bf16.mxu1 %vm7658_vm0, %v7657_v28 }
 0x4ee   :  { %6730 = vmatprep.subr.bf16.mxu1 %v7657_v28 }
 0x5ac   :  { %v1501_v3 = vpop.f32.mrf.mxu1 }
 0x5ad   :  { %v1502_v10 = vadd.f32 %v8020_v48, %v1501_v3 }
 0x5ae   :  { %v6696_v11 = vpop.f32.mrf.mxu1 }
 0x5af   :  { %v1508_v14 = vadd.f32 %v7532_v13, %v1502_v10 }
 0x5b0   :  { %v1504_v44 = vpop.f32.mrf.mxu1 }
 0x5b1   :  { %v1505_v16 = vadd.f32 %v8020_v48, %v1504_v44  ;;  %1510 = vadd.xlane.f32.xlu0 %v1508_v14 }
 0x5b2   :  { %v6697_v17 = vpop.f32.mrf.mxu1 }
 0x5b3   :  { %v1509_v19 = vadd.f32 %v7533_v18, %v1505_v16 }
 0x5b5   :  { %1512 = vadd.xlane.f32.xlu1 %v1509_v19 }
 0x5c6   :  { %1613 = vrot.lane.b32.xlu1 %v8032_v23, %s7659_s17 }
 0x5ca   :  { %1615 = vrot.lane.b32.xlu1 %v8032_v23, %s7647_s21 }
 0x63a   :  { %v1511_v5 = vpop.xlane.xlu0 %1510 }
 0x63b   :  { %v1515_v24 = vmul.f32 0.0078125, %v1511_v5 }
 0x63d   :  { %v1517_v25 = vsub.f32 %v1508_v14, %v1515_v24 }
 0x63e   :  { %v1513_v9 = vpop.xlane.xlu1 %1512 }
 0x63f   :  { %v1516_v21 = vmul.f32 0.0078125, %v1513_v9  ;;  %v1519_v20 = vmul.f32 %v1517_v25, %v1517_v25 }
 0x641   :  { %1521 = vadd.xlane.f32.xlu0 %v1519_v20  ;;  %v1518_v26 = vsub.f32 %v1509_v19, %v1516_v21 }
 0x642   :  { %v1614_v4 = vpop.permute.xlu1 %1613 }
 0x643   :  { %v1520_v27 = vmul.f32 %v1518_v26, %v1518_v26  ;;  %v6044_v6 = vcombine.low %v1614_v4, %v1614_v4  ;;  %v6045_v13 = vcombine.high %v1614_v4, %v1614_v4 }
 0x645   :  { %1523 = vadd.xlane.f32.xlu0 %v1520_v27  ;;  %v1755_v44 = vsel %vm529_vm1, %v6044_v6, 0  ;;  %v1801_v19 = vsel %vm529_vm1, %v6045_v13, 0 }
 0x6ca   :  { %v1522_v29 = vpop.xlane.xlu0 %1521 }
 0x6cb   :  { %v1525_v33 = vmul.f32 0.0078125, %v1522_v29 }
 0x6cd   :  { %v1527_v40 = vadd.f32 1e-05, %v1525_v33 }
 0x6ce   :  { %v1524_v36 = vpop.xlane.xlu0 %1523 }
 0x6cf   :  { %7400 = vrsqrt.f32 %v1527_v40  ;;  %v1526_v37 = vmul.f32 0.0078125, %v1524_v36 }
 0x6d1   :  { %v1528_v32 = vadd.f32 1e-05, %v1526_v37 }
 0x6d3   :  { %7402 = vrsqrt.f32 %v1528_v32 }
 0x6dc   :  { %v7401_v38 = vpop.eup %7400 }
 0x6dd   :  { %v1531_v42 = vmul.f32 %v7401_v38, %v1517_v25  ;;  %v6302_v38 = vpack.c.bf16 %v7825_v58, %v7825_v58 }
 0x6df   :  { %v1537_v49 = vmul.f32 %v1536_v43, %v1531_v42  ;;  %v6303_v42 = vpack.c.bf16 %v7827_v62, %v7827_v62 }
 0x6e0   :  { %v7403_v45 = vpop.eup %7402 }
 0x6e1   :  { %v1532_v46 = vmul.f32 %v7403_v45, %v1518_v26  ;;  %v8047_v41 = vadd.f32 %v1542_v50, %v1537_v49  ;;  %v2181_v49 = vsel %vm1014_vm2, %v6303_v42, 0 }
 0x6e3   :  { %v1538_v51 = vmul.f32 %v1536_v43, %v1532_v46  ;;  %v2135_v46 = vsel %vm1014_vm2, %v6302_v38, 0 }
 0x6e5   :  { %v8049_v47 = vadd.f32 %v1542_v50, %v1538_v51 }
 0x6e7   :  { %v1545_v63 = vpack.c.bf16 %v8049_v47, %v8047_v41 }
 0x6e9   :  { %6715 = vmatmul.mubr.bf16.vlgmr.msra.gmra.mxu0 %v1545_v63 }
 0x6ea   :  { %6725 = vmatpush3.bf16.xpose.msra.mxu0 %v1709_v2  ;;  %6726 = vmatprep.mubr.msk.bf16.mxu0 %vm7658_vm0, %v7657_v28 }
 0x6eb   :  { %6736 = vmatprep.subr.bf16.mxu0 %v7657_v28 }
 0x7a9   :  { %v1580_v53 = vpop.f32.mrf.mxu0 }
 0x7aa   :  { %v1581_v8 = vadd.f32 %v1580_v53, %v7798_v39 }
 0x7ab   :  { %v6716_v3 = vpop.f32.mrf.mxu0 }
 0x7ac   :  { %v6298_v10 = vpack.c.bf16 %v1581_v8, %v1581_v8 }
 0x7ad   :  { %v1583_v11 = vpop.f32.mrf.mxu0 }
 0x7ae   :  { %v1584_v14 = vadd.f32 %v1583_v11, %v7798_v39  ;;  %6721 = vmatmul.mubr.msk.bf16.vlgmr.msra.gmra.mxu1 %vm529_vm1, %v6298_v10  ;;  %v1616_v39 = vpop.permute.xlu1 %1615 }
 0x7af   :  { %6731 = vmatpush3.bf16.xpose.msra.mxu1 %v1755_v44  ;;  %v6717_v16 = vpop.f32.mrf.mxu0  ;;  %6732 = vmatprep.mubr.msk.bf16.mxu1 %vm7658_vm0, %v7657_v28  ;;  %v6046_v22 = vcombine.low %v1616_v39, %v1616_v39  ;;  %v6047_v5 = vcombine.high %v1616_v39, %v1616_v39 }
 0x7b0   :  { %v1587_v17 = vpack.c.bf16 %v1584_v14, %v1581_v8  ;;  %v6299_v18 = vpack.c.bf16 %v1584_v14, %v1584_v14  ;;  %6742 = vmatprep.subr.bf16.mxu1 %v7657_v28 }
 0x7b1   :  { %v1847_v21 = vsel %vm529_vm1, %v6046_v22, 0  ;;  %v1893_v20 = vsel %vm529_vm1, %v6047_v5, 0 }
 0x7b2   :  { %6727 = vmatmul.mubr.msk.bf16.vlgmr.msra.gmra.mxu0 %vm529_vm1, %v6299_v18  ;;  %1591 = vrot.lane.b32.xlu1 %v1587_v17, %s7647_s21 }
 0x7b3   :  { %1589 = vrot.lane.b32.xlu0 %v1587_v17, %s7659_s17  ;;  %6737 = vmatpush3.bf16.xpose.msra.mxu0 %v1801_v19 }
 0x7b4   :  { %6738 = vmatprep.mubr.msk.bf16.mxu0 %vm7658_vm0, %v7657_v28  ;;  %6748 = vmatprep.subr.bf16.mxu0 %v7657_v28 }
 0x7b6   :  { %1593 = vrot.lane.b32.xlu1 %v1587_v17, %s7660_s18 }
 0x7b7   :  { %1617 = vrot.lane.b32.xlu0 %v8032_v23, %s7660_s18 }
 0x824   :  { %v1592_v23 = vpop.permute.xlu1 %1591 }
 0x825   :  { %v1590_v24 = vpop.permute.xlu0 %1589  ;;  %v6038_v33 = vcombine.low %v1592_v23, %v1592_v23  ;;  %v6039_v40 = vcombine.high %v1592_v23, %v1592_v23 }
 0x826   :  { %v6036_v25 = vcombine.low %v1590_v24, %v1590_v24  ;;  %v6037_v9 = vcombine.high %v1590_v24, %v1590_v24 }
 0x828   :  { %6733 = vmatmul.mubr.msk.bf16.vlgmr.msra.gmra.mxu1 %vm529_vm1, %v6036_v25  ;;  %6739 = vmatmul.mubr.msk.bf16.vlgmr.msra.gmra.mxu0 %vm529_vm1, %v6037_v9  ;;  %v1594_v32 = vpop.permute.xlu1 %1593 }
 0x829   :  { %6743 = vmatpush3.bf16.xpose.msra.mxu1 %v1847_v21  ;;  %6749 = vmatpush3.bf16.xpose.msra.mxu0 %v1893_v20  ;;  %v1618_v26 = vpop.permute.xlu0 %1617  ;;  %v6040_v43 = vcombine.low %v1594_v32, %v1594_v32  ;;  %v6041_v45 = vcombine.high %v1594_v32, %v1594_v32 }
 0x82a   :  { %6744 = vmatprep.mubr.msk.bf16.mxu1 %vm7658_vm0, %v7657_v28  ;;  %6750 = vmatprep.mubr.msk.bf16.mxu0 %vm7658_vm0, %v7657_v28  ;;  %v6048_v27 = vcombine.low %v1618_v26, %v1618_v26  ;;  %v6049_v29 = vcombine.high %v1618_v26, %v1618_v26 }
 0x82b   :  { %6754 = vmatprep.subr.bf16.mxu1 %v7657_v28  ;;  %6760 = vmatprep.subr.bf16.mxu0 %v7657_v28 }
 0x82c   :  { %v1939_v36 = vsel %vm529_vm1, %v6048_v27, 0  ;;  %v1985_v37 = vsel %vm529_vm1, %v6049_v29, 0 }
 0x830   :  { %6745 = vmatmul.mubr.msk.bf16.vlgmr.msra.gmra.mxu1 %vm529_vm1, %v6038_v33  ;;  %6751 = vmatmul.mubr.msk.bf16.vlgmr.msra.gmra.mxu0 %vm529_vm1, %v6039_v40 }
 0x831   :  { %6755 = vmatpush3.bf16.xpose.msra.mxu1 %v1939_v36  ;;  %6761 = vmatpush3.bf16.xpose.msra.mxu0 %v1985_v37 }
 0x832   :  { %6756 = vmatprep.mubr.msk.bf16.mxu1 %vm7658_vm0, %v7657_v28  ;;  %6762 = vmatprep.mubr.msk.bf16.mxu0 %vm7658_vm0, %v7657_v28 }
 0x833   :  { %6766 = vmatprep.subr.bf16.mxu1 %v7657_v28  ;;  %6772 = vmatprep.subr.bf16.mxu0 %v7657_v28 }
 0x838   :  { %6757 = vmatmul.mubr.msk.bf16.vlgmr.msra.gmra.mxu1 %vm529_vm1, %v6040_v43  ;;  %6763 = vmatmul.mubr.msk.bf16.vlgmr.msra.gmra.mxu0 %vm529_vm1, %v6041_v45 }
 0x839   :  { %6767 = vmatpush3.bf16.msra.mxu1 %v2135_v46  ;;  %6773 = vmatpush3.bf16.msra.mxu0 %v2181_v49 }
 0x83a   :  { %6774 = vmatprep.mubr.msk.bf16.mxu0 %vm7658_vm0, %v7657_v28  ;;  %6784 = vmatprep.subr.bf16.mxu0 %v7657_v28 }
 0x83b   :  { %6768 = vmatprep.mubr.msk.bf16.mxu1 %vm7658_vm0, %v7657_v28  ;;  %6778 = vmatprep.subr.bf16.mxu1 %v7657_v28 }
 0x86e   :  { %v1699_v58 = vpop.f32.mrf.mxu1 }
 0x86f   :  { %v8108_v62 = vmul.f32 0.17677669, %v1699_v58 }
 0x870   :  { %v6722_v50 = vpop.f32.mrf.mxu1 }
 0x871   :  { %v2035_v51 = vsel %vm914_vm3, %v8108_v62, -inf }
 0x872   :  { %v1745_v59 = vpop.f32.mrf.mxu0  ;;  %2036 = vmax.xlane.f32.xlu0 %v2035_v51  ;;  %v1702_v63 = vpop.f32.mrf.mxu1 }
 0x873   :  { %v2028_v2 = vmul.f32 0.17677669, %v1745_v59 }
 0x874   :  { %v6723_v4 = vpop.f32.mrf.mxu1  ;;  %v6728_v53 = vpop.f32.mrf.mxu0 }
 0x875   :  { %v2038_v6 = vsel %vm914_vm3, %v2028_v2, -inf }
 0x876   :  { %2039 = vmax.xlane.f32.xlu1 %v2038_v6  ;;  %v1748_v8 = vpop.f32.mrf.mxu0 }
 0x878   :  { %v6729_v3 = vpop.f32.mrf.mxu0 }
 0x8e8   :  { %v1791_v10 = vpop.f32.mrf.mxu1  ;;  %v1837_v11 = vpop.f32.mrf.mxu0 }
 0x8e9   :  { %v2029_v13 = vmul.f32 0.17677669, %v1791_v10  ;;  %v2030_v16 = vmul.f32 0.17677669, %v1837_v11 }
 0x8ea   :  { %v6734_v14 = vpop.f32.mrf.mxu1  ;;  %v6740_v44 = vpop.f32.mrf.mxu0 }
 0x8eb   :  { %v2041_v17 = vsel %vm914_vm3, %v2029_v13, -inf  ;;  %v2044_v5 = vsel %vm914_vm3, %v2030_v16, -inf }
 0x8ec   :  { %v1840_v18 = vpop.f32.mrf.mxu0  ;;  %2042 = vmax.xlane.f32.xlu0 %v2041_v17  ;;  %v1794_v19 = vpop.f32.mrf.mxu1 }
 0x8ee   :  { %v6735_v39 = vpop.f32.mrf.mxu1  ;;  %v6741_v22 = vpop.f32.mrf.mxu0 }
 0x8f0   :  { %v1929_v24 = vpop.f32.mrf.mxu0  ;;  %2045 = vmax.xlane.f32.xlu0 %v2044_v5  ;;  %v1883_v25 = vpop.f32.mrf.mxu1 }
 0x8f1   :  { %v2032_v9 = vmul.f32 0.17677669, %v1929_v24  ;;  %v2031_v21 = vmul.f32 0.17677669, %v1883_v25 }
 0x8f2   :  { %v6746_v20 = vpop.f32.mrf.mxu1  ;;  %v6752_v26 = vpop.f32.mrf.mxu0 }
 0x8f3   :  { %v2050_v23 = vsel %vm914_vm3, %v2032_v9, -inf  ;;  %v2047_v27 = vsel %vm914_vm3, %v2031_v21, -inf }
 0x8f4   :  { %v1932_v29 = vpop.f32.mrf.mxu0  ;;  %2051 = vmax.xlane.f32.xlu0 %v2050_v23  ;;  %2048 = vmax.xlane.f32.xlu1 %v2047_v27  ;;  %v1886_v33 = vpop.f32.mrf.mxu1 }
 0x8f6   :  { %v6747_v40 = vpop.f32.mrf.mxu1  ;;  %v6753_v36 = vpop.f32.mrf.mxu0 }
 0x8f8   :  { %v1975_v37 = vpop.f32.mrf.mxu1  ;;  %v2021_v32 = vpop.f32.mrf.mxu0 }
 0x8f9   :  { %v2033_v38 = vmul.f32 0.17677669, %v1975_v37  ;;  %v2034_v42 = vmul.f32 0.17677669, %v2021_v32 }
 0x8fa   :  { %v6758_v43 = vpop.f32.mrf.mxu1  ;;  %v6764_v45 = vpop.f32.mrf.mxu0 }
 0x8fb   :  { %v2056_v46 = vsel %vm914_vm3, %v2034_v42, -inf  ;;  %v2053_v49 = vsel %vm914_vm3, %v2033_v38, -inf  ;;  %v2037_v3 = vpop.xlane.xlu0 %2036 }
 0x8fc   :  { %v2024_v58 = vpop.f32.mrf.mxu0  ;;  %2057 = vmax.xlane.f32.xlu0 %v2056_v46  ;;  %2054 = vmax.xlane.f32.xlu1 %v2053_v49  ;;  %v1978_v50 = vpop.f32.mrf.mxu1  ;;  %v2059_v10 = vsub.f32 %v8108_v62, %v2037_v3 }
 0x8fe   :  { %v6759_v51 = vpop.f32.mrf.mxu1  ;;  %v6765_v59 = vpop.f32.mrf.mxu0  ;;  %v2067_v11 = vmul.f32 1.442695, %v2059_v10 }
 0x8ff   :  { %v2040_v63 = vpop.xlane.xlu1 %2039 }
 0x900   :  { %v2060_v4 = vsub.f32 %v2028_v2, %v2040_v63 }
 0x902   :  { %v2069_v53 = vmul.f32 1.442695, %v2060_v4 }
 0x904   :  { %7404 = vpow2.f32 %v2069_v53 }
 0x905   :  { %7406 = vpow2.f32 %v2067_v11 }
 0x90d   :  { %1637 = vrot.lane.b32.xlu1 %v7831_v1, %s7659_s17 }
 0x911   :  { %v7405_v6 = vpop.eup %7404 }
 0x912   :  { %v2086_v8 = vsel %vm914_vm3, %v7405_v6, 0.0  ;;  %v8123_v14 = vpop.eup %7406 }
 0x913   :  { %2087 = vadd.xlane.f32.xlu0 %v2086_v8  ;;  %v2083_v44 = vsel %vm914_vm3, %v8123_v14, 0.0 }
 0x931   :  { %2084 = vadd.xlane.f32.xlu1 %v2083_v44 }
 0x975   :  { %v2043_v2 = vpop.xlane.xlu0 %2042 }
 0x976   :  { %v2061_v17 = vsub.f32 %v2029_v13, %v2043_v2 }
 0x978   :  { %v2071_v18 = vmul.f32 1.442695, %v2061_v17 }
 0x979   :  { %v2046_v19 = vpop.xlane.xlu0 %2045 }
 0x97a   :  { %7408 = vpow2.f32 %v2071_v18  ;;  %v2062_v39 = vsub.f32 %v2030_v16, %v2046_v19 }
 0x97c   :  { %v2073_v22 = vmul.f32 1.442695, %v2062_v39 }
 0x97d   :  { %v2052_v5 = vpop.xlane.xlu0 %2051  ;;  %v2049_v24 = vpop.xlane.xlu1 %2048 }
 0x97e   :  { %7410 = vpow2.f32 %v2073_v22  ;;  %v2064_v25 = vsub.f32 %v2032_v9, %v2052_v5  ;;  %v2063_v62 = vsub.f32 %v2031_v21, %v2049_v24 }
 0x980   :  { %v2077_v20 = vmul.f32 1.442695, %v2064_v25  ;;  %v2075_v26 = vmul.f32 1.442695, %v2063_v62 }
 0x982   :  { %7412 = vpow2.f32 %v2077_v20 }
 0x983   :  { %7414 = vpow2.f32 %v2075_v26 }
 0x985   :  { %v2058_v23 = vpop.xlane.xlu0 %2057  ;;  %v2055_v27 = vpop.xlane.xlu1 %2054 }
 0x986   :  { %v2066_v29 = vsub.f32 %v2034_v42, %v2058_v23  ;;  %v2065_v33 = vsub.f32 %v2033_v38, %v2055_v27 }
 0x987   :  { %v7409_v40 = vpop.eup %7408 }
 0x988   :  { %v2081_v13 = vmul.f32 1.442695, %v2066_v29  ;;  %v2079_v36 = vmul.f32 1.442695, %v2065_v33  ;;  %v2089_v37 = vsel %vm914_vm3, %v7409_v40, 0.0 }
 0x989   :  { %2090 = vadd.xlane.f32.xlu1 %v2089_v37  ;;  %v1638_v50 = vpop.permute.xlu1 %1637 }
 0x98a   :  { %7416 = vpow2.f32 %v2081_v13  ;;  %v6053_v59 = vcombine.high %v1638_v50, %v1638_v50  ;;  %v6052_v10 = vcombine.low %v1638_v50, %v1638_v50 }
 0x98b   :  { %v7411_v16 = vpop.eup %7410  ;;  %7418 = vpow2.f32 %v2079_v36 }
 0x98c   :  { %v2092_v9 = vsel %vm914_vm3, %v7411_v16, 0.0  ;;  %v2273_v53 = vsel %vm1014_vm2, %v6053_v59, 0 }
 0x98d   :  { %2093 = vadd.xlane.f32.xlu0 %v2092_v9 }
 0x98f   :  { %v8129_v21 = vpop.eup %7412 }
 0x990   :  { %v8131_v32 = vpop.eup %7414  ;;  %v2098_v42 = vsel %vm914_vm3, %v8129_v21, 0.0 }
 0x991   :  { %2099 = vadd.xlane.f32.xlu0 %v2098_v42  ;;  %v2095_v38 = vsel %vm914_vm3, %v8131_v32, 0.0 }
 0x992   :  { %2096 = vadd.xlane.f32.xlu1 %v2095_v38 }
 0x997   :  { %v8137_v43 = vpop.eup %7416 }
 0x998   :  { %v8139_v45 = vpop.eup %7418  ;;  %v2104_v46 = vsel %vm914_vm3, %v8137_v43, 0.0 }
 0x999   :  { %2105 = vadd.xlane.f32.xlu0 %v2104_v46  ;;  %v2101_v49 = vsel %vm914_vm3, %v8139_v45, 0.0 }
 0x99a   :  { %2102 = vadd.xlane.f32.xlu1 %v2101_v49 }
 0x99c   :  { %v2088_v58 = vpop.xlane.xlu0 %2087 }
 0x99d   :  { %7420 = vrcp.f32 %v2088_v58 }
 0x9aa   :  { %v7421_v51 = vpop.eup %7420 }
 0x9ab   :  { %1641 = vrot.lane.b32.xlu1 %v7831_v1, %s7660_s18  ;;  %v2116_v63 = vmul.f32 %v7421_v51, %v7405_v6 }
 0x9ad   :  { %v2124_v4 = vpack.c.bf16 %v2116_v63, %v2116_v63 }
 0x9af   :  { %1639 = vrot.lane.b32.xlu0 %v7831_v1, %s7647_s21  ;;  %6775 = vmatmul.mubr.msk.bf16.vlgmr.msra.gmra.mxu0 %vm914_vm3, %v2124_v4  ;;  %v2227_v1 = vsel %vm1014_vm2, %v6052_v10, 0 }
 0x9b0   :  { %6785 = vmatpush3.bf16.msra.mxu0 %v2273_v53  ;;  %6786 = vmatprep.mubr.msk.bf16.mxu0 %vm7658_vm0, %v7657_v28 }
 0x9b1   :  { %6796 = vmatprep.subr.bf16.mxu0 %v7657_v28 }
 0x9ba   :  { %v2085_v8 = vpop.xlane.xlu1 %2084 }
 0x9bb   :  { %7422 = vrcp.f32 %v2085_v8 }
 0x9c8   :  { %v7423_v3 = vpop.eup %7422 }
 0x9c9   :  { %v2115_v6 = vmul.f32 %v7423_v3, %v8123_v14 }
 0x9cb   :  { %v2123_v11 = vpack.c.bf16 %v2115_v6, %v2115_v6 }
 0x9cd   :  { %6769 = vmatmul.mubr.msk.bf16.vlgmr.msra.gmra.mxu1 %vm914_vm3, %v2123_v11 }
 0x9ce   :  { %6779 = vmatpush3.bf16.msra.mxu1 %v2227_v1  ;;  %6780 = vmatprep.mubr.msk.bf16.mxu1 %vm7658_vm0, %v7657_v28 }
 0x9cf   :  { %6790 = vmatprep.subr.bf16.mxu1 %v7657_v28 }
 0xa12   :  { %v2091_v44 = vpop.xlane.xlu1 %2090 }
 0xa13   :  { %7424 = vrcp.f32 %v2091_v44 }
 0xa16   :  { %v2094_v2 = vpop.xlane.xlu0 %2093 }
 0xa17   :  { %7426 = vrcp.f32 %v2094_v2 }
 0xa1a   :  { %v2100_v17 = vpop.xlane.xlu0 %2099 }
 0xa1b   :  { %7428 = vrcp.f32 %v2100_v17  ;;  %v2097_v18 = vpop.xlane.xlu1 %2096 }
 0xa1c   :  { %7430 = vrcp.f32 %v2097_v18 }
 0xa20   :  { %v7425_v14 = vpop.eup %7424 }
 0xa21   :  { %v2117_v19 = vmul.f32 %v7425_v14, %v7409_v40 }
 0xa22   :  { %v2106_v39 = vpop.xlane.xlu0 %2105 }
 0xa23   :  { %7432 = vrcp.f32 %v2106_v39  ;;  %v2103_v22 = vpop.xlane.xlu1 %2102  ;;  %v2125_v5 = vpack.c.bf16 %v2117_v19, %v2117_v19 }
 0xa24   :  { %v7427_v24 = vpop.eup %7426  ;;  %7434 = vrcp.f32 %v2103_v22 }
 0xa25   :  { %6781 = vmatmul.mubr.msk.bf16.vlgmr.msra.gmra.mxu1 %vm914_vm3, %v2125_v5  ;;  %v2118_v25 = vmul.f32 %v7427_v24, %v7411_v16 }
 0xa26   :  { %v1640_v62 = vpop.permute.xlu0 %1639  ;;  %6792 = vmatprep.mubr.msk.bf16.mxu1 %vm7658_vm0, %v7657_v28 }
 0xa27   :  { %v6054_v20 = vcombine.low %v1640_v62, %v1640_v62  ;;  %v6055_v26 = vcombine.high %v1640_v62, %v1640_v62  ;;  %v1642_v23 = vpop.permute.xlu1 %1641  ;;  %v2126_v27 = vpack.c.bf16 %v2118_v25, %v2118_v25 }
 0xa28   :  { %v7429_v29 = vpop.eup %7428  ;;  %v6056_v36 = vcombine.low %v1642_v23, %v1642_v23  ;;  %v6057_v42 = vcombine.high %v1642_v23, %v1642_v23 }
 0xa29   :  { %v7431_v33 = vpop.eup %7430  ;;  %6787 = vmatmul.mubr.msk.bf16.vlgmr.msra.gmra.mxu0 %vm914_vm3, %v2126_v27  ;;  %v2319_v40 = vsel %vm1014_vm2, %v6054_v20, 0  ;;  %v2365_v13 = vsel %vm1014_vm2, %v6055_v26, 0  ;;  %v2120_v16 = vmul.f32 %v7429_v29, %v8129_v21 }
 0xa2a   :  { %6791 = vmatpush3.bf16.msra.mxu1 %v2319_v40  ;;  %6797 = vmatpush3.bf16.msra.mxu0 %v2365_v13  ;;  %v2119_v37 = vmul.f32 %v7431_v33, %v8131_v32  ;;  %v2411_v38 = vsel %vm1014_vm2, %v6056_v36, 0  ;;  %v2457_v21 = vsel %vm1014_vm2, %v6057_v42, 0 }
 0xa2b   :  { %6802 = vmatprep.subr.bf16.mxu1 %v7657_v28  ;;  %6798 = vmatprep.mubr.msk.bf16.mxu0 %vm7658_vm0, %v7657_v28  ;;  %v2128_v46 = vpack.c.bf16 %v2120_v16, %v2120_v16 }
 0xa2c   :  { %v2127_v9 = vpack.c.bf16 %v2119_v37, %v2119_v37  ;;  %6808 = vmatprep.subr.bf16.mxu0 %v7657_v28 }
 0xa2e   :  { %6793 = vmatmul.mubr.msk.bf16.vlgmr.msra.gmra.mxu1 %vm914_vm3, %v2127_v9 }
 0xa2f   :  { %6803 = vmatpush3.bf16.msra.mxu1 %v2411_v38  ;;  %6804 = vmatprep.mubr.msk.bf16.mxu1 %vm7658_vm0, %v7657_v28 }
 0xa30   :  { %v7433_v32 = vpop.eup %7432  ;;  %6814 = vmatprep.subr.bf16.mxu1 %v7657_v28 }
 0xa31   :  { %v7435_v49 = vpop.eup %7434  ;;  %6799 = vmatmul.mubr.msk.bf16.vlgmr.msra.gmra.mxu0 %vm914_vm3, %v2128_v46  ;;  %v2122_v50 = vmul.f32 %v7433_v32, %v8137_v43 }
 0xa32   :  { %6809 = vmatpush3.bf16.msra.mxu0 %v2457_v21  ;;  %v2121_v58 = vmul.f32 %v7435_v49, %v8139_v45  ;;  %6810 = vmatprep.mubr.msk.bf16.mxu0 %vm7658_vm0, %v7657_v28 }
 0xa33   :  { %v2130_v59 = vpack.c.bf16 %v2122_v50, %v2122_v50 }
 0xa34   :  { %v2129_v51 = vpack.c.bf16 %v2121_v58, %v2121_v58 }
 0xa36   :  { %6805 = vmatmul.mubr.msk.bf16.vlgmr.msra.gmra.mxu1 %vm914_vm3, %v2129_v51 }
 0xa37   :  { %6815 = vmatpush3.bf16.msra.mxu1 %v7969_v54  ;;  %6830 = vmatprep.mubr.msk.bf16.mxu1 %vm7658_vm0, %v7657_v28 }
 0xa38   :  { %6816 = vmatprep.subr.bf16.mxu1 %v7657_v28 }
 0xa39   :  { %6811 = vmatmul.mubr.msk.bf16.vlgmr.msra.gmra.mxu0 %vm914_vm3, %v2130_v59 }
 0xa3a   :  { %2731 = vmatprep.mubr.bf16.mxu0 %v7656_v0 }
 0xa3b   :  { %6817 = vmatpush3.bf16.msra.mxu1 %v7972_v56 }
 0xa3c   :  { %6818 = vmatprep.subr.bf16.mxu1 %v7657_v28 }
 0xa3f   :  { %6819 = vmatpush3.bf16.msra.mxu1 %v7976_v57 }
 0xa40   :  { %6820 = vmatprep.subr.bf16.mxu1 %v7657_v28 }
 0xa43   :  { %6821 = vmatpush3.bf16.msra.mxu1 %v7981_v60 }
 0xa44   :  { %6822 = vmatprep.subr.bf16.mxu1 %v7657_v28 }
 0xa47   :  { %6823 = vmatpush3.bf16.msra.mxu1 %v7984_v61 }
 0xa48   :  { %6824 = vmatprep.subr.bf16.mxu1 %v7657_v28 }
 0xa4b   :  { %6825 = vmatpush3.bf16.msra.mxu1 %v7989_v52 }
 0xa4c   :  { %6826 = vmatprep.subr.bf16.mxu1 %v7657_v28 }
 0xa4f   :  { %6827 = vmatpush3.bf16.msra.mxu1 %v7992_v7 }
 0xa50   :  { %6828 = vmatprep.subr.bf16.mxu1 %v7657_v28 }
 0xa53   :  { %6829 = vmatpush3.bf16.msra.mxu1 %v7998_v15 }
 0xa6f   :  { %v2217_v54 = vpop.f32.mrf.mxu0 }
 0xa71   :  { %v6776_v56 = vpop.f32.mrf.mxu0 }
 0xa73   :  { %v2220_v57 = vpop.f32.mrf.mxu0 }
 0xa75   :  { %v6777_v60 = vpop.f32.mrf.mxu0 }
 0xa8d   :  { %v2171_v43 = vpop.f32.mrf.mxu1 }
 0xa8f   :  { %v6770_v45 = vpop.f32.mrf.mxu1 }
 0xa91   :  { %v2174_v63 = vpop.f32.mrf.mxu1 }
 0xa92   :  { %v7224_v63 = vld [vmem:[%s8861_s6 + $0x70] ss:$8 sps:$4 sm:$0xff]  }
 0xa93   :  { %v6771_v61 = vpop.f32.mrf.mxu1 }
 0xa94   :  { %v7226_v61 = vld [vmem:[%s8861_s6 + $0x74] ss:$8 sps:$4 sm:$0xff]  }
 0xa95   :  { %2699 = vmatprep.subr.bf16.mxu0 %v7226_v61  ;;  %v7263_v61 = vld [vmem:[#allocation7] sm:$0xff]  }
 0xa96   :  { %2700 = vmatpush1.bf16.msra.mxu0 %v7224_v63  ;;  %v7262_v63 = vld [vmem:[#allocation7 + $0x40] sm:$0xff]  }
 0xae5   :  { %v2263_v4 = vpop.f32.mrf.mxu1 }
 0xae7   :  { %v6782_v53 = vpop.f32.mrf.mxu1 }
 0xae9   :  { %v2266_v8 = vpop.f32.mrf.mxu1  ;;  %v2309_v52 = vpop.f32.mrf.mxu0 }
 0xaea   :  { %v7139_v3 = vpack.i.bf16 %v2309_v52, %v2263_v4 }
 0xaeb   :  { %v6783_v10 = vpop.f32.mrf.mxu1  ;;  %v6788_v6 = vpop.f32.mrf.mxu0 }
 0xaec   :  { %7140 = vrot.lane.b32.xlu1 %v7139_v3, %s7660_s18  ;;  %v7229_v10 = vld [vmem:[%s8861_s6 + $0x64] ss:$8 sps:$4 sm:$0xff]   ;;  %v7227_v6 = vld [vmem:[%s8861_s6 + $0x60] ss:$8 sps:$4 sm:$0xff]  }
 0xaed   :  { %v2312_v7 = vpop.f32.mrf.mxu0  ;;  %2701 = vmatprep.subr.bf16.mxu0 %v7229_v10 }
 0xaee   :  { %v2355_v11 = vpop.f32.mrf.mxu1  ;;  %2702 = vmatpush1.bf16.msra.mxu0 %v7227_v6  ;;  %v7232_v7 = vld [vmem:[%s8861_s6 + $0x54] ss:$8 sps:$4 sm:$0xff]  }
 0xaef   :  { %v6789_v15 = vpop.f32.mrf.mxu0  ;;  %2703 = vmatprep.subr.bf16.mxu0 %v7232_v7 }
 0xaf0   :  { %v6794_v1 = vpop.f32.mrf.mxu1  ;;  %v7233_v15 = vld [vmem:[%s8861_s6 + $0x40] ss:$8 sps:$4 sm:$0xff]  }
 0xaf1   :  { %v2401_v44 = vpop.f32.mrf.mxu0  ;;  %v7235_v1 = vld [vmem:[%s8861_s6 + $0x44] ss:$8 sps:$4 sm:$0xff]  }
 0xaf2   :  { %v2358_v2 = vpop.f32.mrf.mxu1  ;;  %v7144_v17 = vpack.i.bf16 %v2401_v44, %v2355_v11  ;;  %v7230_v11 = vld [vmem:[%s8861_s6 + $0x50] ss:$8 sps:$4 sm:$0xff]   ;;  %v7238_v44 = vld [vmem:[%s8861_s6 + $0x34] ss:$8 sps:$4 sm:$0xff]  }
 0xaf3   :  { %v6800_v18 = vpop.f32.mrf.mxu0  ;;  %2704 = vmatpush1.bf16.msra.mxu0 %v7230_v11  ;;  %v7236_v2 = vld [vmem:[%s8861_s6 + $0x30] ss:$8 sps:$4 sm:$0xff]  }
 0xaf4   :  { %v6795_v14 = vpop.f32.mrf.mxu1  ;;  %7145 = vrot.lane.b32.xlu0 %v7144_v17, %s7647_s21  ;;  %2705 = vmatprep.subr.bf16.mxu0 %v7235_v1  ;;  %v7241_v17 = vld [vmem:[%s8861_s6 + $0x24] ss:$8 sps:$4 sm:$0xff]   ;;  %v7239_v18 = vld [vmem:[%s8861_s6 + $0x20] ss:$8 sps:$4 sm:$0xff]  }
 0xaf5   :  { %v2404_v19 = vpop.f32.mrf.mxu0  ;;  %v7244_v14 = vld [vmem:[%s8861_s6 + $0x14] ss:$8 sps:$4 sm:$0xff]  }
 0xaf6   :  { %v2447_v39 = vpop.f32.mrf.mxu1  ;;  %v7242_v19 = vld [vmem:[%s8861_s6 + $0x10] ss:$8 sps:$4 sm:$0xff]  }
 0xaf7   :  { %v6801_v22 = vpop.f32.mrf.mxu0  ;;  %2706 = vmatpush1.bf16.msra.mxu0 %v7233_v15 }
 0xaf8   :  { %v6806_v5 = vpop.f32.mrf.mxu1  ;;  %2707 = vmatprep.subr.bf16.mxu0 %v7238_v44  ;;  %v7245_v22 = vld [vmem:[%s8861_s6] ss:$8 sps:$4 sm:$0xff]  }
 0xaf9   :  { %v2493_v24 = vpop.f32.mrf.mxu0  ;;  %v7248_v5 = vld [vmem:[#allocation7 + $0x78] sm:$0xff]  }
 0xafa   :  { %v2450_v25 = vpop.f32.mrf.mxu1  ;;  %v7149_v62 = vpack.i.bf16 %v2493_v24, %v2447_v39  ;;  %v7247_v39 = vld [vmem:[%s8861_s6 + $0x4] ss:$8 sps:$4 sm:$0xff]   ;;  %v7249_v24 = vld [vmem:[#allocation7 + $0x38] sm:$0xff]   ;;  %6417 = vmatprep.subr.bf16.mxu1 %v7248_v5 }
 0xafb   :  { %v6812_v20 = vpop.f32.mrf.mxu0  ;;  %2708 = vmatpush1.bf16.msra.mxu0 %v7236_v2  ;;  %v7250_v25 = vld [vmem:[#allocation7 + $0x70] sm:$0xff]  }
 0xafc   :  { %v6807_v26 = vpop.f32.mrf.mxu1  ;;  %7150 = vrot.lane.b32.xlu1 %v7149_v62, %s7659_s17  ;;  %2709 = vmatprep.subr.bf16.mxu0 %v7241_v17  ;;  %v7251_v62 = vld [vmem:[#allocation7 + $0x30] sm:$0xff]   ;;  %v7252_v20 = vld [vmem:[#allocation7 + $0x68] sm:$0xff]  }
 0xafd   :  { %v2496_v23 = vpop.f32.mrf.mxu0  ;;  %v7253_v26 = vld [vmem:[#allocation7 + $0x28] sm:$0xff]  }
 0xafe   :  { %v7254_v23 = vld [vmem:[#allocation7 + $0x60] sm:$0xff]  }
 0xaff   :  { %v6813_v27 = vpop.f32.mrf.mxu0  ;;  %2710 = vmatpush1.bf16.msra.mxu0 %v7239_v18  ;;  %v6090_v18 = vld [vmem:[%s8864_s9] ss:$0 sm:$0xff] }
 0xb00   :  { %2711 = vmatprep.subr.bf16.mxu0 %v7244_v14  ;;  %v7255_v27 = vld [vmem:[#allocation7 + $0x20] sm:$0xff]  }
 0xb03   :  { %2712 = vmatpush1.bf16.msra.mxu0 %v7242_v19 }
 0xb04   :  { %2713 = vmatprep.subr.bf16.mxu0 %v7247_v39 }
 0xb07   :  { %2714 = vmatpush1.bf16.msra.mxu0 %v7245_v22 }
 0xb5e   :  { %v7141_v29 = vpop.permute.xlu1 %7140 }
 0xb5f   :  { %v7143_v40 = vunpack.i.h.bf16 %v7141_v29  ;;  %v7142_v13 = vunpack.i.l.bf16 %v7141_v29  ;;  %v7256_v29 = vld [vmem:[#allocation7 + $0x58] sm:$0xff]  }
 0xb61   :  { %v2524_v9 = vsel %vm529_vm1, %v2217_v54, %v7143_v40  ;;  %v2523_v42 = vsel %vm529_vm1, %v2171_v43, %v7142_v13 }
 0xb66   :  { %v7146_v33 = vpop.permute.xlu0 %7145 }
 0xb67   :  { %v7148_v36 = vunpack.i.h.bf16 %v7146_v33  ;;  %v7147_v37 = vunpack.i.l.bf16 %v7146_v33  ;;  %v7257_v33 = vld [vmem:[#allocation7 + $0x18] sm:$0xff]  }
 0xb69   :  { %v2526_v32 = vsel %vm1406_vm4, %v2524_v9, %v7148_v36  ;;  %v2525_v49 = vsel %vm1406_vm4, %v2523_v42, %v7147_v37 }
 0xb6e   :  { %v7151_v16 = vpop.permute.xlu1 %7150 }
 0xb6f   :  { %v7153_v38 = vunpack.i.h.bf16 %v7151_v16  ;;  %v7152_v46 = vunpack.i.l.bf16 %v7151_v16 }
 0xb71   :  { %v2528_v21 = vsel %vm1409_vm5, %v2526_v32, %v7153_v38  ;;  %v2527_v58 = vsel %vm1409_vm5, %v2525_v49, %v7152_v46  ;;  %v2598_v46 = vrot.slane %v8041_v34, %v7822_v55  ;;  %v2603_v32 = vsub.s32 3, %v7782_v30 }
 0xb72   :  { %v2529_v50 = vpack.c.bf16 %v2528_v21, %v2527_v58 }
 0xb74   :  { %6831 = vmatmul.mubr.bf16.vlgmr.msra.gmra.mxu1 %v2529_v50  ;;  %v2604_v50 = vrot.slane %v8041_v34, %v2603_v32  ;;  %v178_v34 = vld [vmem:[%s8862_s7] sm:$0x3] }
 0xb75   :  { %6418 = vmatpush3.bf16.msra.mxu1 %v7249_v24 }
 0xb76   :  { %6419 = vmatprep.subr.bf16.mxu1 %v7250_v25 }
 0xb79   :  { %6420 = vmatpush3.bf16.msra.mxu1 %v7251_v62 }
 0xb7a   :  { %6421 = vmatprep.subr.bf16.mxu1 %v7252_v20 }
 0xb7d   :  { %6422 = vmatpush3.bf16.msra.mxu1 %v7253_v26  ;;  %v8289_v26 = vld [vmem:[#allocation2 + $0x168] ss:$12 sps:$4 sm:$0xff]  }
 0xb7e   :  { %6423 = vmatprep.subr.bf16.mxu1 %v7254_v23  ;;  %v7266_v23 = vld [vmem:[#allocation2 + $0x16c] ss:$12 sps:$4 sm:$0xff]  }
 0xb7f   :  { %3182 = vmatprep.subr.bf16.mxu0 %v7266_v23 }
 0xb81   :  { %6424 = vmatpush3.bf16.msra.mxu1 %v7255_v27 }
 0xb82   :  { %6425 = vmatprep.subr.bf16.mxu1 %v7256_v29 }
 0xb85   :  { %6426 = vmatpush3.bf16.msra.mxu1 %v7257_v33 }
 0xc34   :  { %v2564_v51 = vpop.f32.mrf.mxu1 }
 0xc35   :  { %v2565_v59 = vadd.f32 %v8020_v48, %v2564_v51 }
 0xc36   :  { %v6832_v56 = vpop.f32.mrf.mxu1 }
 0xc37   :  { %v2571_v54 = vadd.f32 %v2565_v59, %v8047_v41 }
 0xc38   :  { %v2567_v57 = vpop.f32.mrf.mxu1 }
 0xc39   :  { %v2568_v60 = vadd.f32 %v8020_v48, %v2567_v57  ;;  %2573 = vadd.xlane.f32.xlu0 %v2571_v54  ;;  %v7258_v57 = vld [vmem:[#allocation7 + $0x50] sm:$0xff]  }
 0xc3a   :  { %v6833_v43 = vpop.f32.mrf.mxu1  ;;  %6427 = vmatprep.subr.bf16.mxu1 %v7258_v57  ;;  %v7287_v57 = vld [vmem:[#allocation2 + $0xc4] ss:$12 sps:$4 sm:$0xff]  }
 0xc3b   :  { %v2572_v45 = vadd.f32 %v2568_v60, %v8049_v47  ;;  %v7259_v60 = vld [vmem:[#allocation7 + $0x10] sm:$0xff]   ;;  %v7260_v43 = vld [vmem:[#allocation7 + $0x48] sm:$0xff]  }
 0xc3c   :  { %6428 = vmatpush3.bf16.msra.mxu1 %v7259_v60  ;;  %v8310_v60 = vld [vmem:[#allocation2 + $0xc0] ss:$12 sps:$4 sm:$0xff]  }
 0xc3d   :  { %2575 = vadd.xlane.f32.xlu1 %v2572_v45  ;;  %6429 = vmatprep.subr.bf16.mxu1 %v7260_v43 }
 0xcc2   :  { %v2574_v4 = vpop.xlane.xlu0 %2573 }
 0xcc3   :  { %v2577_v41 = vmul.f32 0.0078125, %v2574_v4 }
 0xcc5   :  { %v8222_v53 = vsub.f32 %v2571_v54, %v2577_v41  ;;  %v2616_v41 = vrot.slane %v178_v34, %v7785_v31 }
 0xcc6   :  { %v2576_v48 = vpop.xlane.xlu1 %2575 }
 0xcc7   :  { %v2578_v8 = vmul.f32 0.0078125, %v2576_v48  ;;  %v2581_v47 = vmul.f32 %v8222_v53, %v8222_v53 }
 0xcc9   :  { %v8226_v52 = vsub.f32 %v2572_v45, %v2578_v8  ;;  %2583 = vadd.xlane.f32.xlu0 %v2581_v47  ;;  %v7261_v45 = vld [vmem:[#allocation7 + $0x8] sm:$0xff]  }
 0xcca   :  { %6430 = vmatpush3.bf16.msra.mxu1 %v7261_v45 }
 0xccb   :  { %v2582_v3 = vmul.f32 %v8226_v52, %v8226_v52  ;;  %6431 = vmatprep.subr.bf16.mxu1 %v7262_v63 }
 0xccd   :  { %2585 = vadd.xlane.f32.xlu0 %v2582_v3 }
 0xcce   :  { %6432 = vmatpush3.bf16.msra.mxu1 %v7263_v61 }
 0xd52   :  { %v2584_v40 = vpop.xlane.xlu0 %2583 }
 0xd53   :  { %v2587_v13 = vmul.f32 0.0078125, %v2584_v40 }
 0xd55   :  { %v2589_v36 = vadd.f32 1e-05, %v2587_v13 }
 0xd56   :  { %v2586_v37 = vpop.xlane.xlu0 %2585 }
 0xd57   :  { %7436 = vrsqrt.f32 %v2589_v36  ;;  %v2588_v16 = vmul.f32 0.0078125, %v2586_v37 }
 0xd59   :  { %v2590_v9 = vadd.f32 1e-05, %v2588_v16 }
 0xd5b   :  { %7438 = vrsqrt.f32 %v2590_v9  ;;  %v7269_v9 = vld [vmem:[#allocation2 + $0x154] ss:$12 sps:$4 sm:$0xff]  }
 0xd64   :  { %v7437_v42 = vpop.eup %7436 }
 0xd65   :  { %v2593_v38 = vmul.f32 %v7437_v42, %v8222_v53  ;;  %v2612_v53 = vrot.slane %v178_v34, %v7794_v35  ;;  %v8292_v42 = vld [vmem:[#allocation2 + $0x150] ss:$12 sps:$4 sm:$0xff]  }
 0xd67   :  { %v2599_v58 = vmul.f32 %v2598_v46, %v2593_v38  ;;  %v7272_v38 = vld [vmem:[#allocation2 + $0x13c] ss:$12 sps:$4 sm:$0xff]  }
 0xd68   :  { %v7439_v49 = vpop.eup %7438 }
 0xd69   :  { %v2594_v21 = vmul.f32 %v7439_v49, %v8226_v52  ;;  %v2605_v59 = vadd.f32 %v2604_v50, %v2599_v58  ;;  %v8298_v49 = vld [vmem:[#allocation2 + $0x120] ss:$12 sps:$4 sm:$0xff]  }
 0xd6a   :  { %v7278_v58 = vld [vmem:[#allocation2 + $0x10c] ss:$12 sps:$4 sm:$0xff]  }
 0xd6b   :  { %v2600_v51 = vmul.f32 %v2598_v46, %v2594_v21  ;;  %v8295_v46 = vld [vmem:[#allocation2 + $0x138] ss:$12 sps:$4 sm:$0xff]  }
 0xd6c   :  { %v7275_v21 = vld [vmem:[#allocation2 + $0x124] ss:$12 sps:$4 sm:$0xff]  }
 0xd6d   :  { %v2606_v56 = vadd.f32 %v2604_v50, %v2600_v51  ;;  %v8301_v50 = vld [vmem:[#allocation2 + $0x108] ss:$12 sps:$4 sm:$0xff]  }
 0xd6e   :  { %v7281_v51 = vld [vmem:[#allocation2 + $0xf4] ss:$12 sps:$4 sm:$0xff]  }
 0xd6f   :  { %v2607_v54 = vpack.c.bf16 %v2606_v56, %v2605_v59 }
 0xd71   :  { %2732 = vmatmul.mubr.bf16.vlgmr.msra.gmra.mxu0 %v2607_v54  ;;  %v8307_v54 = vld [vmem:[#allocation2 + $0xd8] ss:$12 sps:$4 sm:$0xff]  }
 0xd72   :  { %3214 = vmatprep.mubr.bf16.mxu0 %v7656_v0  ;;  %3183 = vmatpush1.bf16.msra.mxu0 %v8289_v26 }
 0xd73   :  { %3184 = vmatprep.subr.bf16.mxu0 %v7269_v9 }
 0xd76   :  { %3185 = vmatpush1.bf16.msra.mxu0 %v8292_v42 }
 0xd77   :  { %3186 = vmatprep.subr.bf16.mxu0 %v7272_v38 }
 0xd7a   :  { %3187 = vmatpush1.bf16.msra.mxu0 %v8295_v46 }
 0xd7b   :  { %3188 = vmatprep.subr.bf16.mxu0 %v7275_v21 }
 0xd7e   :  { %3189 = vmatpush1.bf16.msra.mxu0 %v8298_v49 }
 0xd7f   :  { %3190 = vmatprep.subr.bf16.mxu0 %v7278_v58 }
 0xd82   :  { %3191 = vmatpush1.bf16.msra.mxu0 %v8301_v50 }
 0xd83   :  { %3192 = vmatprep.subr.bf16.mxu0 %v7281_v51 }
 0xe31   :  { %v2733_v4 = vpop.f32.mrf.mxu0 }
 0xe32   :  { %v2734_v3 = vadd.f32 %v2733_v4, %v2612_v53 }
 0xe33   :  { %v2735_v48 = vpop.f32.mrf.mxu0 }
 0xe34   :  { %v2736_v47 = vadd.f32 %v2735_v48, %v2616_v41  ;;  %v2742_v1 = vmax.f32 %v2734_v3, 0.0 }
 0xe35   :  { %v2737_v8 = vpop.f32.mrf.mxu0 }
 0xe36   :  { %v2738_v52 = vadd.f32 %v2737_v8, %v2612_v53  ;;  %v2743_v11 = vmax.f32 %v2736_v47, 0.0  ;;  %v7534_v8 = vld [vmem:[%s8865_s10] sm:$0x3f] }
 0xe37   :  { %v2739_v10 = vpop.f32.mrf.mxu0 }
 0xe38   :  { %v2740_v6 = vadd.f32 %v2739_v10, %v2616_v41  ;;  %v2744_v7 = vmax.f32 %v2738_v52, 0.0  ;;  %v2917_v41 = vsub.s32 4, %v7782_v30  ;;  %v2923_v52 = vsub.s32 5, %v7782_v30 }
 0xe3a   :  { %v2745_v15 = vmax.f32 %v2740_v6, 0.0  ;;  %v2746_v2 = vpack.c.bf16 %v2744_v7, %v2742_v1  ;;  %v2918_v47 = vrot.slane %v7534_v8, %v2917_v41  ;;  %v2924_v7 = vrot.slane %v7534_v8, %v2923_v52 }
 0xe3c   :  { %v2747_v44 = vpack.c.bf16 %v2745_v15, %v2743_v11 }
 0xe3e   :  { %2882 = vmatprep.mubr.bf16.mxu1 %v2747_v44 }
 0xe3f   :  { %2883 = vmatmul.mubr.bf16.vlgmr.msra.gmra.mxu1 %v2746_v2  ;;  %v7288_v2 = vld [vmem:[#allocation2 + $0x170] ss:$12 sps:$4 sm:$0xff]  }
 0xe40   :  { %6834 = vmatprep.subr.bf16.mxu1 %v7288_v2 }
 0xe41   :  { %6835 = vmatpush3.bf16.msra.mxu1 %v7288_v2 }
 0xeff   :  { %v6433_v17 = vpop.f32.mrf.mxu1 }
 0xf01   :  { %v6434_v14 = vpop.f32.mrf.mxu1 }
 0xf02   :  { %v6435_v19 = vadd.f32 %v6434_v14, %v6433_v17  ;;  %v7289_v17 = vld [vmem:[#allocation2 + $0x158] ss:$12 sps:$4 sm:$0xff]   ;;  %v7291_v14 = vld [vmem:[#allocation2 + $0x128] ss:$12 sps:$4 sm:$0xff]  }
 0xf03   :  { %v6436_v39 = vpop.f32.mrf.mxu1  ;;  %6836 = vmatprep.subr.bf16.mxu1 %v7289_v17 }
 0xf04   :  { %v2885_v22 = vadd.f32 %v6435_v19, %v6090_v18  ;;  %6837 = vmatpush3.bf16.msra.mxu1 %v7289_v17  ;;  %v7292_v19 = vld [vmem:[#allocation2 + $0x110] ss:$12 sps:$4 sm:$0xff]  }
 0xf05   :  { %v6437_v5 = vpop.f32.mrf.mxu1 }
 0xf06   :  { %v6438_v24 = vadd.f32 %v6437_v5, %v6436_v39  ;;  %v2891_v25 = vadd.f32 %v2885_v22, %v2605_v59  ;;  %v8304_v59 = vld [vmem:[#allocation2 + $0xf0] ss:$12 sps:$4 sm:$0xff]   ;;  %v7293_v39 = vld [vmem:[#allocation2 + $0xf8] ss:$12 sps:$4 sm:$0xff]   ;;  %v7294_v22 = vld [vmem:[#allocation2 + $0xe0] ss:$12 sps:$4 sm:$0xff]  }
 0xf07   :  { %3193 = vmatpush1.bf16.msra.mxu0 %v8304_v59  ;;  %v7295_v5 = vld [vmem:[#allocation2 + $0xc8] ss:$12 sps:$4 sm:$0xff]  }
 0xf08   :  { %v2888_v62 = vadd.f32 %v6438_v24, %v6090_v18  ;;  %2893 = vadd.xlane.f32.xlu1 %v2891_v25  ;;  %v7290_v18 = vld [vmem:[#allocation2 + $0x140] ss:$12 sps:$4 sm:$0xff]  }
 0xf09   :  { %6838 = vmatprep.subr.bf16.mxu1 %v7290_v18  ;;  %v6107_v24 = vld [vmem:[%s8858_s3 + $0x3] sm:$0x7] }
 0xf0a   :  { %v2892_v20 = vadd.f32 %v2888_v62, %v2606_v56  ;;  %v7284_v56 = vld [vmem:[#allocation2 + $0xdc] ss:$12 sps:$4 sm:$0xff]   ;;  %6839 = vmatpush3.bf16.msra.mxu1 %v7290_v18 }
 0xf0b   :  { %3194 = vmatprep.subr.bf16.mxu0 %v7284_v56  ;;  %6840 = vmatprep.subr.bf16.mxu1 %v7291_v14 }
 0xf0c   :  { %2895 = vadd.xlane.f32.xlu0 %v2892_v20  ;;  %3195 = vmatpush1.bf16.msra.mxu0 %v8307_v54 }
 0xf0d   :  { %3196 = vmatprep.subr.bf16.mxu0 %v7287_v57 }
 0xf0e   :  { %6841 = vmatpush3.bf16.msra.mxu1 %v7291_v14 }
 0xf0f   :  { %6842 = vmatprep.subr.bf16.mxu1 %v7292_v19 }
 0xf10   :  { %3197 = vmatpush1.bf16.msra.mxu0 %v8310_v60 }
 0xf11   :  { %6854 = vmatprep.subr.bf16.mxu0 %v7657_v28 }
 0xf12   :  { %6843 = vmatpush3.bf16.msra.mxu1 %v7292_v19 }
 0xf13   :  { %6844 = vmatprep.subr.bf16.mxu1 %v7293_v39 }
 0xf16   :  { %6845 = vmatpush3.bf16.msra.mxu1 %v7293_v39 }
 0xf17   :  { %6846 = vmatprep.subr.bf16.mxu1 %v7294_v22 }
 0xf1a   :  { %6847 = vmatpush3.bf16.msra.mxu1 %v7294_v22 }
 0xf1b   :  { %6848 = vmatprep.subr.bf16.mxu1 %v7295_v5 }
 0xf1e   :  { %6849 = vmatpush3.bf16.msra.mxu1 %v7295_v5 }
 0xf1f   :  { %6872 = vmatprep.subr.bf16.mxu1 %v7657_v28 }
 0xf91   :  { %v2894_v27 = vpop.xlane.xlu1 %2893 }
 0xf92   :  { %v2897_v29 = vmul.f32 0.0078125, %v2894_v27 }
 0xf94   :  { %v2899_v33 = vsub.f32 %v2891_v25, %v2897_v29  ;;  %v3046_v25 = vrot.slane %v6107_v24, %v7785_v31 }
 0xf95   :  { %v2896_v40 = vpop.xlane.xlu0 %2895 }
 0xf96   :  { %v2898_v13 = vmul.f32 0.0078125, %v2896_v40  ;;  %v2901_v36 = vmul.f32 %v2899_v33, %v2899_v33 }
 0xf98   :  { %v2900_v37 = vsub.f32 %v2892_v20, %v2898_v13  ;;  %2903 = vadd.xlane.f32.xlu1 %v2901_v36  ;;  %v8342_v20 = vrot.slane %v6107_v24, %v7794_v35 }
 0xf9a   :  { %v2902_v16 = vmul.f32 %v2900_v37, %v2900_v37 }
 0xf9c   :  { %2905 = vadd.xlane.f32.xlu0 %v2902_v16 }
0x1021   :  { %v2904_v43 = vpop.xlane.xlu1 %2903 }
0x1022   :  { %v2907_v45 = vmul.f32 0.0078125, %v2904_v43 }
0x1024   :  { %v2909_v63 = vadd.f32 1e-05, %v2907_v45 }
0x1025   :  { %v2906_v61 = vpop.xlane.xlu0 %2905 }
0x1026   :  { %7440 = vrsqrt.f32 %v2909_v63  ;;  %v2908_v34 = vmul.f32 0.0078125, %v2906_v61 }
0x1028   :  { %v2910_v4 = vadd.f32 1e-05, %v2908_v34 }
0x102a   :  { %7442 = vrsqrt.f32 %v2910_v4  ;;  %v3050_v4 = vrot.slane %v6107_v24, %v7822_v55 }
0x1033   :  { %v7441_v53 = vpop.eup %7440 }
0x1034   :  { %v2913_v48 = vmul.f32 %v7441_v53, %v2899_v33 }
0x1036   :  { %v2919_v6 = vmul.f32 %v2918_v47, %v2913_v48 }
0x1037   :  { %v7443_v3 = vpop.eup %7442 }
0x1038   :  { %v2914_v10 = vmul.f32 %v7443_v3, %v2900_v37  ;;  %v8323_v15 = vadd.f32 %v2924_v7, %v2919_v6 }
0x103a   :  { %v2920_v11 = vmul.f32 %v2918_v47, %v2914_v10 }
0x103c   :  { %v8325_v1 = vadd.f32 %v2924_v7, %v2920_v11 }
0x103e   :  { %v3037_v44 = vpack.c.bf16 %v8325_v1, %v8323_v15 }
0x1040   :  { %3215 = vmatmul.mubr.bf16.vlgmr.msra.gmra.mxu0 %v3037_v44  ;;  %6850 = vmatprep.mubr.bf16.mxu1 %v3037_v44 }
0x1041   :  { %3224 = vmatprep.mubr.bf16.mxu0 %v7656_v0  ;;  %6851 = vmatmul.mubr.bf16.vlgmr.msra.gmra.mxu1 %v7769_v12 }
0x1042   :  { %6874 = vmatprep.mubr.msk.bf16.mxu1 %vm7658_vm0, %v7657_v28 }
0x1048   :  { %3225 = vmatmul.mubr.bf16.gmra.mxu0 %v7769_v12 }
0x1049   :  { %6856 = vmatprep.mubr.msk.bf16.mxu0 %vm7658_vm0, %v7657_v28 }
0x1100   :  { %v3216_v62 = vpop.f32.mrf.mxu0 }
0x1101   :  { %v3217_v33 = vadd.f32 %v3216_v62, %v8342_v20  ;;  %v6852_v53 = vpop.f32.mrf.mxu1 }
0x1102   :  { %v3218_v23 = vpop.f32.mrf.mxu0  ;;  %v8371_v48 = vadd.f32 %v6852_v53, %v3050_v4  ;;  %v7535_v53 = vld [vmem:[%s8856_s1] sm:$0xff] }
0x1103   :  { %v3219_v27 = vadd.f32 %v3218_v23, %v3046_v25  ;;  %v6304_v58 = vpack.c.bf16 %v3217_v33, %v3217_v33  ;;  %v3267_v8 = vpop.f32.mrf.mxu1 }
0x1104   :  { %v3220_v29 = vpop.f32.mrf.mxu0  ;;  %v3268_v11 = vadd.f32 %v3267_v8, %v3050_v4 }
0x1105   :  { %v6306_v40 = vpack.c.bf16 %v3219_v27, %v3219_v27  ;;  %v3221_v12 = vadd.f32 %v3220_v29, %v8342_v20  ;;  %v6853_v3 = vpop.f32.mrf.mxu1 }
0x1106   :  { %v3222_v13 = vpop.f32.mrf.mxu0  ;;  %v8373_v7 = vadd.f32 %v6853_v3, %v3050_v4 }
0x1107   :  { %v3282_v36 = vpack.c.bf16 %v3221_v12, %v3217_v33  ;;  %v3223_v37 = vadd.f32 %v3222_v13, %v3046_v25  ;;  %v3358_v16 = vsel %vm529_vm1, %v6306_v40, 0  ;;  %v6305_v56 = vpack.c.bf16 %v3221_v12, %v3221_v12  ;;  %v3270_v44 = vpop.f32.mrf.mxu1 }
0x1108   :  { %6855 = vmatpush3.bf16.xpose.msra.mxu0 %v3358_v16  ;;  %v3226_v9 = vpop.f32.mrf.mxu0  ;;  %v8379_v14 = vpack.c.bf16 %v8373_v7, %v8371_v48  ;;  %v3271_v19 = vadd.f32 %v3270_v44, %v3050_v4 }
0x1109   :  { %v3306_v38 = vpack.c.bf16 %v3223_v37, %v3219_v27  ;;  %3284 = vrot.lane.b32.xlu0 %v3282_v36, %s7659_s17  ;;  %6860 = vmatprep.subr.bf16.mxu0 %v7657_v28  ;;  %v6307_v21 = vpack.c.bf16 %v3223_v37, %v3223_v37  ;;  %v6308_v9 = vpack.c.bf16 %v3268_v11, %v3268_v11 }
0x110a   :  { %v3227_v57 = vpop.f32.mrf.mxu0  ;;  %v8383_v22 = vpack.c.bf16 %v3271_v19, %v3268_v11 }
0x110b   :  { %3308 = vrot.lane.b32.xlu1 %v3306_v38, %s7659_s17  ;;  %v3404_v51 = vsel %vm529_vm1, %v6307_v21, 0  ;;  %v8362_v43 = vadd.f32 %v3227_v57, %v3046_v25 }
0x110c   :  { %v3229_v45 = vpop.f32.mrf.mxu0 }
0x110d   :  { %3312 = vrot.lane.b32.xlu0 %v3306_v38, %s7660_s18 }
0x110e   :  { %v3230_v63 = vpop.f32.mrf.mxu0 }
0x110f   :  { %3310 = vrot.lane.b32.xlu1 %v3306_v38, %s7647_s21  ;;  %6857 = vmatmul.mubr.msk.bf16.vlgmr.msra.gmra.mxu0 %vm529_vm1, %v6304_v58  ;;  %v8364_v61 = vadd.f32 %v3230_v63, %v3046_v25  ;;  %v6309_v38 = vpack.c.bf16 %v3271_v19, %v3271_v19 }
0x1110   :  { %6861 = vmatpush3.bf16.xpose.msra.mxu0 %v3404_v51  ;;  %6862 = vmatprep.mubr.msk.bf16.mxu0 %vm7658_vm0, %v7657_v28 }
0x1111   :  { %6866 = vmatprep.subr.bf16.mxu0 %v7657_v28  ;;  %v8368_v34 = vpack.c.bf16 %v8364_v61, %v8362_v43  ;;  %v3884_v57 = vsel %vm1014_vm2, %v6309_v38, 0 }
0x1113   :  { %3286 = vrot.lane.b32.xlu1 %v3282_v36, %s7647_s21 }
0x1117   :  { %6863 = vmatmul.mubr.msk.bf16.vlgmr.msra.gmra.mxu0 %vm529_vm1, %v6305_v56  ;;  %3288 = vrot.lane.b32.xlu1 %v3282_v36, %s7660_s18  ;;  %v3838_v56 = vsel %vm1014_vm2, %v6308_v9, 0 }
0x1118   :  { %6868 = vmatprep.mubr.msk.bf16.mxu0 %vm7658_vm0, %v7657_v28 }
0x117b   :  { %v3285_v39 = vpop.permute.xlu0 %3284 }
0x117c   :  { %v6154_v25 = vcombine.low %v3285_v39, %v3285_v39  ;;  %v6155_v62 = vcombine.high %v3285_v39, %v3285_v39 }
0x117d   :  { %v3309_v47 = vpop.permute.xlu1 %3308 }
0x117e   :  { %v6162_v10 = vcombine.low %v3309_v47, %v3309_v47  ;;  %v6163_v6 = vcombine.high %v3309_v47, %v3309_v47 }
0x117f   :  { %v3313_v29 = vpop.permute.xlu0 %3312 }
0x1180   :  { %v3496_v2 = vsel %vm529_vm1, %v6163_v6, 0  ;;  %v3450_v17 = vsel %vm529_vm1, %v6162_v10, 0  ;;  %v6166_v40 = vcombine.low %v3313_v29, %v3313_v29  ;;  %v6167_v12 = vcombine.high %v3313_v29, %v3313_v29 }
0x1181   :  { %6873 = vmatpush3.bf16.xpose.msra.mxu1 %v3496_v2  ;;  %v3311_v18 = vpop.permute.xlu1 %3310  ;;  %6867 = vmatpush3.bf16.xpose.msra.mxu0 %v3450_v17  ;;  %v7536_v2 = vld [vmem:[%s8856_s1 + $0x8] sm:$0xff] }
0x1182   :  { %6878 = vmatprep.subr.bf16.mxu0 %v7657_v28  ;;  %6884 = vmatprep.subr.bf16.mxu1 %v7657_v28  ;;  %v6164_v5 = vcombine.low %v3311_v18, %v3311_v18  ;;  %v6165_v24 = vcombine.high %v3311_v18, %v3311_v18  ;;  %v3634_v37 = vsel %vm529_vm1, %v6166_v40, 0  ;;  %v3680_v16 = vsel %vm529_vm1, %v6167_v12, 0 }
0x1184   :  { %v3542_v23 = vsel %vm529_vm1, %v6164_v5, 0  ;;  %v3588_v27 = vsel %vm529_vm1, %v6165_v24, 0 }
0x1185   :  { %v3287_v33 = vpop.permute.xlu1 %3286 }
0x1186   :  { %v6156_v13 = vcombine.low %v3287_v33, %v3287_v33  ;;  %v6157_v36 = vcombine.high %v3287_v33, %v3287_v33 }
0x1188   :  { %6869 = vmatmul.mubr.msk.bf16.vlgmr.msra.gmra.mxu0 %vm529_vm1, %v6154_v25  ;;  %6875 = vmatmul.mubr.msk.bf16.vlgmr.msra.gmra.mxu1 %vm529_vm1, %v6155_v62 }
0x1189   :  { %6879 = vmatpush3.bf16.xpose.msra.mxu0 %v3542_v23  ;;  %6885 = vmatpush3.bf16.xpose.msra.mxu1 %v3588_v27  ;;  %v3289_v21 = vpop.permute.xlu1 %3288 }
0x118a   :  { %6880 = vmatprep.mubr.msk.bf16.mxu0 %vm7658_vm0, %v7657_v28  ;;  %6886 = vmatprep.mubr.msk.bf16.mxu1 %vm7658_vm0, %v7657_v28  ;;  %v6158_v58 = vcombine.low %v3289_v21, %v3289_v21  ;;  %v6159_v51 = vcombine.high %v3289_v21, %v3289_v21 }
0x118b   :  { %6890 = vmatprep.subr.bf16.mxu0 %v7657_v28  ;;  %6896 = vmatprep.subr.bf16.mxu1 %v7657_v28 }
0x1190   :  { %6881 = vmatmul.mubr.msk.bf16.vlgmr.msra.gmra.mxu0 %vm529_vm1, %v6156_v13  ;;  %6887 = vmatmul.mubr.msk.bf16.vlgmr.msra.gmra.mxu1 %vm529_vm1, %v6157_v36 }
0x1191   :  { %6891 = vmatpush3.bf16.xpose.msra.mxu0 %v3634_v37  ;;  %6897 = vmatpush3.bf16.xpose.msra.mxu1 %v3680_v16 }
0x1192   :  { %6892 = vmatprep.mubr.msk.bf16.mxu0 %vm7658_vm0, %v7657_v28  ;;  %6898 = vmatprep.mubr.msk.bf16.mxu1 %vm7658_vm0, %v7657_v28 }
0x1193   :  { %6902 = vmatprep.subr.bf16.mxu0 %v7657_v28  ;;  %6908 = vmatprep.subr.bf16.mxu1 %v7657_v28 }
0x1198   :  { %6893 = vmatmul.mubr.msk.bf16.vlgmr.msra.gmra.mxu0 %vm529_vm1, %v6158_v58  ;;  %6899 = vmatmul.mubr.msk.bf16.vlgmr.msra.gmra.mxu1 %vm529_vm1, %v6159_v51 }
0x1199   :  { %6903 = vmatpush3.bf16.msra.mxu0 %v3838_v56  ;;  %6909 = vmatpush3.bf16.msra.mxu1 %v3884_v57 }
0x119a   :  { %6910 = vmatprep.mubr.msk.bf16.mxu1 %vm7658_vm0, %v7657_v28  ;;  %6920 = vmatprep.subr.bf16.mxu1 %v7657_v28 }
0x119b   :  { %6904 = vmatprep.mubr.msk.bf16.mxu0 %vm7658_vm0, %v7657_v28  ;;  %6914 = vmatprep.subr.bf16.mxu0 %v7657_v28 }
0x11cf   :  { %v3394_v45 = vpop.f32.mrf.mxu0 }
0x11d0   :  { %v3722_v63 = vmul.f32 0.17677669, %v3394_v45 }
0x11d1   :  { %v6858_v4 = vpop.f32.mrf.mxu0 }
0x11d2   :  { %v8418_v8 = vadd.f32 %v7535_v53, %v3722_v63 }
0x11d3   :  { %v3397_v47 = vpop.f32.mrf.mxu0 }
0x11d4   :  { %v3738_v3 = vsel %vm914_vm3, %v8418_v8, -inf }
0x11d5   :  { %v6859_v10 = vpop.f32.mrf.mxu0  ;;  %3739 = vmax.xlane.f32.xlu0 %v3738_v3 }
0x11d7   :  { %v3440_v6 = vpop.f32.mrf.mxu0 }
0x11d8   :  { %v3723_v11 = vmul.f32 0.17677669, %v3440_v6 }
0x11d9   :  { %v6864_v44 = vpop.f32.mrf.mxu0 }
0x11da   :  { %v3731_v17 = vadd.f32 %v7536_v2, %v3723_v11 }
0x11db   :  { %v3443_v18 = vpop.f32.mrf.mxu0 }
0x11dc   :  { %v3741_v19 = vsel %vm914_vm3, %v3731_v17, -inf }
0x11dd   :  { %v6865_v39 = vpop.f32.mrf.mxu0  ;;  %3742 = vmax.xlane.f32.xlu1 %v3741_v19 }
0x1248   :  { %v3486_v5 = vpop.f32.mrf.mxu0  ;;  %v3532_v24 = vpop.f32.mrf.mxu1 }
0x1249   :  { %v3724_v25 = vmul.f32 0.17677669, %v3486_v5  ;;  %v3725_v62 = vmul.f32 0.17677669, %v3532_v24 }
0x124a   :  { %v6870_v23 = vpop.f32.mrf.mxu0  ;;  %v6876_v27 = vpop.f32.mrf.mxu1 }
0x124b   :  { %v3732_v29 = vadd.f32 %v7535_v53, %v3724_v25  ;;  %v3733_v13 = vadd.f32 %v7536_v2, %v3725_v62 }
0x124c   :  { %v3489_v33 = vpop.f32.mrf.mxu0  ;;  %v3535_v40 = vpop.f32.mrf.mxu1 }
0x124d   :  { %v3744_v12 = vsel %vm914_vm3, %v3732_v29, -inf  ;;  %v3747_v58 = vsel %vm914_vm3, %v3733_v13, -inf }
0x124e   :  { %v6877_v36 = vpop.f32.mrf.mxu1  ;;  %3745 = vmax.xlane.f32.xlu0 %v3744_v12  ;;  %v6871_v37 = vpop.f32.mrf.mxu0 }
0x1250   :  { %v3578_v16 = vpop.f32.mrf.mxu0  ;;  %v3624_v9 = vpop.f32.mrf.mxu1 }
0x1251   :  { %v3726_v38 = vmul.f32 0.17677669, %v3578_v16  ;;  %v3727_v21 = vmul.f32 0.17677669, %v3624_v9 }
0x1252   :  { %v6888_v51 = vpop.f32.mrf.mxu1  ;;  %3748 = vmax.xlane.f32.xlu0 %v3747_v58  ;;  %v6882_v56 = vpop.f32.mrf.mxu0 }
0x1253   :  { %v3735_v57 = vadd.f32 %v7536_v2, %v3727_v21  ;;  %v3734_v45 = vadd.f32 %v7535_v53, %v3726_v38 }
0x1254   :  { %v3581_v63 = vpop.f32.mrf.mxu0  ;;  %v3627_v4 = vpop.f32.mrf.mxu1 }
0x1255   :  { %v3753_v47 = vsel %vm914_vm3, %v3735_v57, -inf  ;;  %v3750_v3 = vsel %vm914_vm3, %v3734_v45, -inf }
0x1256   :  { %v6889_v10 = vpop.f32.mrf.mxu1  ;;  %3754 = vmax.xlane.f32.xlu0 %v3753_v47  ;;  %3751 = vmax.xlane.f32.xlu1 %v3750_v3  ;;  %v6883_v6 = vpop.f32.mrf.mxu0 }
0x1258   :  { %v3670_v11 = vpop.f32.mrf.mxu0  ;;  %v3716_v44 = vpop.f32.mrf.mxu1 }
0x1259   :  { %v3728_v18 = vmul.f32 0.17677669, %v3670_v11  ;;  %v3729_v19 = vmul.f32 0.17677669, %v3716_v44 }
0x125a   :  { %v6894_v39 = vpop.f32.mrf.mxu0  ;;  %v6900_v5 = vpop.f32.mrf.mxu1 }
0x125b   :  { %v3737_v24 = vadd.f32 %v7536_v2, %v3729_v19  ;;  %v3736_v25 = vadd.f32 %v7535_v53, %v3728_v18 }
0x125c   :  { %v3673_v62 = vpop.f32.mrf.mxu0  ;;  %v3719_v23 = vpop.f32.mrf.mxu1 }
0x125d   :  { %v3759_v27 = vsel %vm914_vm3, %v3737_v24, -inf  ;;  %v3756_v33 = vsel %vm914_vm3, %v3736_v25, -inf }
0x125e   :  { %3760 = vmax.xlane.f32.xlu0 %v3759_v27  ;;  %v6901_v40 = vpop.f32.mrf.mxu1  ;;  %3757 = vmax.xlane.f32.xlu1 %v3756_v33  ;;  %v6895_v12 = vpop.f32.mrf.mxu0 }
0x125f   :  { %v3740_v9 = vpop.xlane.xlu0 %3739 }
0x1260   :  { %v3762_v38 = vsub.f32 %v8418_v8, %v3740_v9 }
0x1262   :  { %v3770_v21 = vmul.f32 1.442695, %v3762_v38 }
0x1266   :  { %v3743_v36 = vpop.xlane.xlu1 %3742 }
0x1267   :  { %v3763_v37 = vsub.f32 %v3731_v17, %v3743_v36 }
0x1269   :  { %v3772_v16 = vmul.f32 1.442695, %v3763_v37 }
0x126b   :  { %7444 = vpow2.f32 %v3772_v16 }
0x126c   :  { %7446 = vpow2.f32 %v3770_v21 }
0x126f   :  { %3332 = vrot.lane.b32.xlu1 %v8383_v22, %s7659_s17 }
0x1278   :  { %v7445_v2 = vpop.eup %7444 }
0x1279   :  { %v3789_v53 = vsel %vm914_vm3, %v7445_v2, 0.0  ;;  %v8436_v58 = vpop.eup %7446 }
0x127a   :  { %3790 = vadd.xlane.f32.xlu0 %v3789_v53  ;;  %v3786_v51 = vsel %vm914_vm3, %v8436_v58, 0.0 }
0x1293   :  { %3787 = vadd.xlane.f32.xlu1 %v3786_v51 }
0x12d7   :  { %v3746_v17 = vpop.xlane.xlu0 %3745 }
0x12d8   :  { %v3764_v56 = vsub.f32 %v3732_v29, %v3746_v17 }
0x12da   :  { %v3774_v63 = vmul.f32 1.442695, %v3764_v56 }
0x12db   :  { %v3749_v4 = vpop.xlane.xlu0 %3748 }
0x12dc   :  { %7448 = vpow2.f32 %v3774_v63  ;;  %v3765_v47 = vsub.f32 %v3733_v13, %v3749_v4 }
0x12de   :  { %v3776_v3 = vmul.f32 1.442695, %v3765_v47 }
0x12df   :  { %v3752_v10 = vpop.xlane.xlu1 %3751  ;;  %v3755_v6 = vpop.xlane.xlu0 %3754 }
0x12e0   :  { %7450 = vpow2.f32 %v3776_v3  ;;  %v3766_v8 = vsub.f32 %v3734_v45, %v3752_v10  ;;  %v3767_v11 = vsub.f32 %v3735_v57, %v3755_v6 }
0x12e2   :  { %v3778_v44 = vmul.f32 1.442695, %v3766_v8  ;;  %v3780_v18 = vmul.f32 1.442695, %v3767_v11 }
0x12e4   :  { %7452 = vpow2.f32 %v3778_v44 }
0x12e5   :  { %7454 = vpow2.f32 %v3780_v18 }
0x12e7   :  { %v3758_v19 = vpop.xlane.xlu1 %3757  ;;  %v3761_v39 = vpop.xlane.xlu0 %3760 }
0x12e8   :  { %v3768_v5 = vsub.f32 %v3736_v25, %v3758_v19  ;;  %v3769_v62 = vsub.f32 %v3737_v24, %v3761_v39 }
0x12e9   :  { %v7449_v23 = vpop.eup %7448 }
0x12ea   :  { %v3782_v29 = vmul.f32 1.442695, %v3768_v5  ;;  %v3784_v27 = vmul.f32 1.442695, %v3769_v62  ;;  %v3792_v33 = vsel %vm914_vm3, %v7449_v23, 0.0 }
0x12eb   :  { %3793 = vadd.xlane.f32.xlu1 %v3792_v33  ;;  %v3333_v53 = vpop.permute.xlu1 %3332 }
0x12ec   :  { %7456 = vpow2.f32 %v3782_v29  ;;  %v6171_v21 = vcombine.high %v3333_v53, %v3333_v53  ;;  %v6170_v47 = vcombine.low %v3333_v53, %v3333_v53 }
0x12ed   :  { %v7451_v13 = vpop.eup %7450  ;;  %7458 = vpow2.f32 %v3784_v27 }
0x12ee   :  { %v3795_v45 = vsel %vm914_vm3, %v7451_v13, 0.0  ;;  %v3976_v56 = vsel %vm1014_vm2, %v6171_v21, 0 }
0x12ef   :  { %3796 = vadd.xlane.f32.xlu0 %v3795_v45 }
0x12f1   :  { %v8442_v57 = vpop.eup %7452 }
0x12f2   :  { %v8444_v40 = vpop.eup %7454  ;;  %v3798_v25 = vsel %vm914_vm3, %v8442_v57, 0.0 }
0x12f3   :  { %3799 = vadd.xlane.f32.xlu1 %v3798_v25  ;;  %v3801_v24 = vsel %vm914_vm3, %v8444_v40, 0.0 }
0x12f4   :  { %3802 = vadd.xlane.f32.xlu0 %v3801_v24 }
0x12f9   :  { %v8450_v12 = vpop.eup %7456 }
0x12fa   :  { %v8452_v36 = vpop.eup %7458  ;;  %v3804_v37 = vsel %vm914_vm3, %v8450_v12, 0.0 }
0x12fb   :  { %3805 = vadd.xlane.f32.xlu1 %v3804_v37  ;;  %v3807_v16 = vsel %vm914_vm3, %v8452_v36, 0.0 }
0x12fc   :  { %3808 = vadd.xlane.f32.xlu0 %v3807_v16 }
0x1303   :  { %v3791_v9 = vpop.xlane.xlu0 %3790 }
0x1304   :  { %7460 = vrcp.f32 %v3791_v9 }
0x130c   :  { %3336 = vrot.lane.b32.xlu1 %v8383_v22, %s7660_s18 }
0x1311   :  { %v7461_v38 = vpop.eup %7460 }
0x1312   :  { %3334 = vrot.lane.b32.xlu0 %v8383_v22, %s7647_s21  ;;  %v3819_v51 = vmul.f32 %v7461_v38, %v7445_v2  ;;  %v3930_v22 = vsel %vm1014_vm2, %v6170_v47, 0 }
0x1314   :  { %v3827_v17 = vpack.c.bf16 %v3819_v51, %v3819_v51 }
0x1316   :  { %6911 = vmatmul.mubr.msk.bf16.vlgmr.msra.gmra.mxu1 %vm914_vm3, %v3827_v17 }
0x1317   :  { %6921 = vmatpush3.bf16.msra.mxu1 %v3976_v56  ;;  %6922 = vmatprep.mubr.msk.bf16.mxu1 %vm7658_vm0, %v7657_v28 }
0x1318   :  { %6932 = vmatprep.subr.bf16.mxu1 %v7657_v28 }
0x131c   :  { %v3788_v63 = vpop.xlane.xlu1 %3787 }
0x131d   :  { %7462 = vrcp.f32 %v3788_v63 }
0x132a   :  { %v7463_v4 = vpop.eup %7462 }
0x132b   :  { %v3818_v3 = vmul.f32 %v7463_v4, %v8436_v58 }
0x132d   :  { %v3826_v10 = vpack.c.bf16 %v3818_v3, %v3818_v3 }
0x132f   :  { %6905 = vmatmul.mubr.msk.bf16.vlgmr.msra.gmra.mxu0 %vm914_vm3, %v3826_v10 }
0x1330   :  { %6915 = vmatpush3.bf16.msra.mxu0 %v3930_v22  ;;  %6916 = vmatprep.mubr.msk.bf16.mxu0 %vm7658_vm0, %v7657_v28  ;;  %v8533_v22 = vld [vmem:[#allocation5 + $0x60] sm:$0xff]  }
0x1331   :  { %6926 = vmatprep.subr.bf16.mxu0 %v7657_v28 }
0x1374   :  { %v3794_v2 = vpop.xlane.xlu1 %3793 }
0x1375   :  { %7464 = vrcp.f32 %v3794_v2  ;;  %v8536_v2 = vld [vmem:[#allocation5 + $0x58] sm:$0xff]  }
0x1378   :  { %v3797_v6 = vpop.xlane.xlu0 %3796 }
0x1379   :  { %7466 = vrcp.f32 %v3797_v6 }
0x137c   :  { %v3800_v8 = vpop.xlane.xlu1 %3799 }
0x137d   :  { %7468 = vrcp.f32 %v3800_v8  ;;  %v3803_v11 = vpop.xlane.xlu0 %3802 }
0x137e   :  { %7470 = vrcp.f32 %v3803_v11  ;;  %v8541_v11 = vld [vmem:[#allocation5 + $0x50] sm:$0xff]  }
0x1382   :  { %v7465_v58 = vpop.eup %7464 }
0x1383   :  { %v3820_v44 = vmul.f32 %v7465_v58, %v7449_v23 }
0x1384   :  { %v3806_v18 = vpop.xlane.xlu1 %3805 }
0x1385   :  { %v3828_v19 = vpack.c.bf16 %v3820_v44, %v3820_v44  ;;  %7472 = vrcp.f32 %v3806_v18  ;;  %v3809_v39 = vpop.xlane.xlu0 %3808  ;;  %v8544_v18 = vld [vmem:[#allocation5 + $0x48] sm:$0xff]  }
0x1386   :  { %v7467_v5 = vpop.eup %7466  ;;  %7474 = vrcp.f32 %v3809_v39 }
0x1387   :  { %6917 = vmatmul.mubr.msk.bf16.vlgmr.msra.gmra.mxu0 %vm914_vm3, %v3828_v19  ;;  %v3821_v62 = vmul.f32 %v7467_v5, %v7451_v13 }
0x1388   :  { %6928 = vmatprep.mubr.msk.bf16.mxu0 %vm7658_vm0, %v7657_v28  ;;  %v3337_v29 = vpop.permute.xlu1 %3336 }
0x1389   :  { %v3335_v27 = vpop.permute.xlu0 %3334  ;;  %v3829_v33 = vpack.c.bf16 %v3821_v62, %v3821_v62  ;;  %v6174_v16 = vcombine.low %v3337_v29, %v3337_v29 }
0x138a   :  { %v7469_v45 = vpop.eup %7468  ;;  %v6172_v25 = vcombine.low %v3335_v27, %v3335_v27  ;;  %v6173_v24 = vcombine.high %v3335_v27, %v3335_v27 }
0x138b   :  { %v7471_v37 = vpop.eup %7470  ;;  %v3822_v23 = vmul.f32 %v7469_v45, %v8442_v57  ;;  %6923 = vmatmul.mubr.msk.bf16.vlgmr.msra.gmra.mxu1 %vm914_vm3, %v3829_v33  ;;  %v6175_v57 = vcombine.high %v3337_v29, %v3337_v29  ;;  %v4114_v21 = vsel %vm1014_vm2, %v6174_v16, 0  ;;  %v8550_v33 = vld [vmem:[#allocation5 + $0x40] sm:$0xff]  }
0x138c   :  { %v4022_v9 = vsel %vm1014_vm2, %v6172_v25, 0  ;;  %v4068_v53 = vsel %vm1014_vm2, %v6173_v24, 0  ;;  %6934 = vmatprep.mubr.msk.bf16.mxu1 %vm7658_vm0, %v7657_v28  ;;  %v3823_v38 = vmul.f32 %v7471_v37, %v8444_v40 }
0x138d   :  { %v3830_v13 = vpack.c.bf16 %v3822_v23, %v3822_v23  ;;  %6927 = vmatpush3.bf16.msra.mxu0 %v4022_v9  ;;  %6933 = vmatpush3.bf16.msra.mxu1 %v4068_v53  ;;  %v4160_v63 = vsel %vm1014_vm2, %v6175_v57, 0 }
0x138e   :  { %6938 = vmatprep.subr.bf16.mxu0 %v7657_v28  ;;  %6944 = vmatprep.subr.bf16.mxu1 %v7657_v28  ;;  %v3831_v51 = vpack.c.bf16 %v3823_v38, %v3823_v38 }
0x1390   :  { %6929 = vmatmul.mubr.msk.bf16.vlgmr.msra.gmra.mxu0 %vm914_vm3, %v3830_v13 }
0x1391   :  { %6939 = vmatpush3.bf16.msra.mxu0 %v4114_v21  ;;  %6940 = vmatprep.mubr.msk.bf16.mxu0 %vm7658_vm0, %v7657_v28 }
0x1392   :  { %v7473_v17 = vpop.eup %7472  ;;  %6950 = vmatprep.subr.bf16.mxu0 %v7657_v28 }
0x1393   :  { %v7475_v56 = vpop.eup %7474  ;;  %v3824_v40 = vmul.f32 %v7473_v17, %v8450_v12  ;;  %6935 = vmatmul.mubr.msk.bf16.vlgmr.msra.gmra.mxu1 %vm914_vm3, %v3831_v51 }
0x1394   :  { %6945 = vmatpush3.bf16.msra.mxu1 %v4160_v63  ;;  %6946 = vmatprep.mubr.msk.bf16.mxu1 %vm7658_vm0, %v7657_v28  ;;  %v3825_v47 = vmul.f32 %v7475_v56, %v8452_v36 }
0x1395   :  { %v3832_v4 = vpack.c.bf16 %v3824_v40, %v3824_v40  ;;  %6970 = vmatprep.subr.bf16.mxu1 %v7657_v28 }
0x1396   :  { %v3833_v3 = vpack.c.bf16 %v3825_v47, %v3825_v47 }
0x1398   :  { %6941 = vmatmul.mubr.msk.bf16.vlgmr.msra.gmra.mxu0 %vm914_vm3, %v3832_v4 }
0x1399   :  { %6966 = vmatprep.mubr.msk.bf16.mxu0 %vm7658_vm0, %v7657_v28 }
0x139b   :  { %6947 = vmatmul.mubr.msk.bf16.vlgmr.msra.gmra.mxu1 %vm914_vm3, %v3833_v3 }
0x139c   :  { %6971 = vmatpush3.bf16.msra.mxu1 %v8289_v26  ;;  %6986 = vmatprep.mubr.msk.bf16.mxu1 %vm7658_vm0, %v7657_v28 }
0x139d   :  { %6972 = vmatprep.subr.bf16.mxu1 %v7657_v28 }
0x13a0   :  { %6973 = vmatpush3.bf16.msra.mxu1 %v8292_v42 }
0x13a1   :  { %6974 = vmatprep.subr.bf16.mxu1 %v7657_v28 }
0x13a4   :  { %6975 = vmatpush3.bf16.msra.mxu1 %v8295_v46 }
0x13a5   :  { %6976 = vmatprep.subr.bf16.mxu1 %v7657_v28 }
0x13a8   :  { %6977 = vmatpush3.bf16.msra.mxu1 %v8298_v49 }
0x13a9   :  { %6978 = vmatprep.subr.bf16.mxu1 %v7657_v28 }
0x13ac   :  { %6979 = vmatpush3.bf16.msra.mxu1 %v8301_v50  ;;  %v8521_v50 = vld [vmem:[#allocation5 + $0x78] sm:$0xff]  }
0x13ad   :  { %6980 = vmatprep.subr.bf16.mxu1 %v7657_v28  ;;  %6951 = vmatpush3.bf16.msra.mxu0 %v8521_v50 }
0x13ae   :  { %6952 = vmatprep.subr.bf16.mxu0 %v7657_v28 }
0x13b0   :  { %6981 = vmatpush3.bf16.msra.mxu1 %v8304_v59  ;;  %v8524_v59 = vld [vmem:[#allocation5 + $0x70] sm:$0xff]  }
0x13b1   :  { %6982 = vmatprep.subr.bf16.mxu1 %v7657_v28  ;;  %6953 = vmatpush3.bf16.msra.mxu0 %v8524_v59 }
0x13b2   :  { %6954 = vmatprep.subr.bf16.mxu0 %v7657_v28 }
0x13b4   :  { %6983 = vmatpush3.bf16.msra.mxu1 %v8307_v54  ;;  %v8528_v54 = vld [vmem:[#allocation5 + $0x68] sm:$0xff]  }
0x13b5   :  { %6984 = vmatprep.subr.bf16.mxu1 %v7657_v28  ;;  %6955 = vmatpush3.bf16.msra.mxu0 %v8528_v54 }
0x13b6   :  { %6956 = vmatprep.subr.bf16.mxu0 %v7657_v28 }
0x13b8   :  { %6985 = vmatpush3.bf16.msra.mxu1 %v8310_v60 }
0x13b9   :  { %6996 = vmatprep.subr.bf16.mxu1 %v7657_v28  ;;  %6957 = vmatpush3.bf16.msra.mxu0 %v8533_v22 }
0x13ba   :  { %6958 = vmatprep.subr.bf16.mxu0 %v7657_v28 }
0x13bd   :  { %6959 = vmatpush3.bf16.msra.mxu0 %v8536_v2 }
0x13be   :  { %6960 = vmatprep.subr.bf16.mxu0 %v7657_v28 }
0x13c1   :  { %6961 = vmatpush3.bf16.msra.mxu0 %v8541_v11 }
0x13c2   :  { %6962 = vmatprep.subr.bf16.mxu0 %v7657_v28 }
0x13c5   :  { %6963 = vmatpush3.bf16.msra.mxu0 %v8544_v18 }
0x13c6   :  { %6964 = vmatprep.subr.bf16.mxu0 %v7657_v28 }
0x13c9   :  { %6965 = vmatpush3.bf16.msra.mxu0 %v8550_v33 }
0x13ca   :  { %6990 = vmatprep.subr.bf16.mxu0 %v7657_v28 }
0x13d6   :  { %v8519_v26 = vpop.f32.mrf.mxu1 }
0x13d8   :  { %v6912_v42 = vpop.f32.mrf.mxu1 }
0x13da   :  { %v3923_v46 = vpop.f32.mrf.mxu1 }
0x13dc   :  { %v6913_v49 = vpop.f32.mrf.mxu1 }
0x13ef   :  { %v3874_v60 = vpop.f32.mrf.mxu0 }
0x13f1   :  { %v6906_v12 = vpop.f32.mrf.mxu0 }
0x13f3   :  { %v3877_v36 = vpop.f32.mrf.mxu0 }
0x13f5   :  { %v6907_v10 = vpop.f32.mrf.mxu0 }
0x1447   :  { %v3966_v6 = vpop.f32.mrf.mxu0 }
0x1449   :  { %v6918_v8 = vpop.f32.mrf.mxu0 }
0x144b   :  { %v3969_v58 = vpop.f32.mrf.mxu0  ;;  %v4012_v44 = vpop.f32.mrf.mxu1 }
0x144c   :  { %v7154_v19 = vpack.i.bf16 %v4012_v44, %v3966_v6  ;;  %v6312_v58 = vpack.c.bf16 %v8362_v43, %v8362_v43  ;;  %v8572_v43 = vld [vmem:[%s8860_s5 + $0x1] ss:$0 sm:$0xff] }
0x144d   :  { %v6919_v39 = vpop.f32.mrf.mxu0  ;;  %v6924_v5 = vpop.f32.mrf.mxu1 }
0x144e   :  { %7155 = vrot.lane.b32.xlu1 %v7154_v19, %s7660_s18 }
0x144f   :  { %v4015_v62 = vpop.f32.mrf.mxu1 }
0x1450   :  { %v4058_v29 = vpop.f32.mrf.mxu0 }
0x1451   :  { %v6925_v27 = vpop.f32.mrf.mxu1 }
0x1452   :  { %v6930_v45 = vpop.f32.mrf.mxu0 }
0x1453   :  { %v4104_v25 = vpop.f32.mrf.mxu1 }
0x1454   :  { %v4061_v24 = vpop.f32.mrf.mxu0  ;;  %v7159_v37 = vpack.i.bf16 %v4104_v25, %v4058_v29  ;;  %v4482_v29 = vsel %vm529_vm1, %v6312_v58, 0 }
0x1455   :  { %v6936_v23 = vpop.f32.mrf.mxu1 }
0x1456   :  { %v6931_v16 = vpop.f32.mrf.mxu0  ;;  %7160 = vrot.lane.b32.xlu0 %v7159_v37, %s7647_s21 }
0x1457   :  { %v4107_v9 = vpop.f32.mrf.mxu1 }
0x1458   :  { %v4150_v53 = vpop.f32.mrf.mxu0 }
0x1459   :  { %v6937_v13 = vpop.f32.mrf.mxu1 }
0x145a   :  { %v6942_v38 = vpop.f32.mrf.mxu0 }
0x145b   :  { %v4196_v57 = vpop.f32.mrf.mxu1 }
0x145c   :  { %v4153_v21 = vpop.f32.mrf.mxu0  ;;  %v7164_v51 = vpack.i.bf16 %v4196_v57, %v4150_v53 }
0x145d   :  { %v6948_v17 = vpop.f32.mrf.mxu1 }
0x145e   :  { %v6943_v56 = vpop.f32.mrf.mxu0  ;;  %7165 = vrot.lane.b32.xlu1 %v7164_v51, %s7659_s17 }
0x145f   :  { %v4199_v40 = vpop.f32.mrf.mxu1 }
0x1461   :  { %v6949_v63 = vpop.f32.mrf.mxu1 }
0x14c0   :  { %v7156_v4 = vpop.permute.xlu1 %7155 }
0x14c1   :  { %v7158_v3 = vunpack.i.h.bf16 %v7156_v4  ;;  %v7157_v42 = vunpack.i.l.bf16 %v7156_v4  ;;  %v8585_v4 = vld [vmem:[%s8865_s10 + $0x8] sm:$0x3f] }
0x14c3   :  { %v4227_v36 = vsel %vm529_vm1, %v8519_v26, %v7158_v3  ;;  %v4226_v10 = vsel %vm529_vm1, %v3874_v60, %v7157_v42  ;;  %v4355_v42 = vrot.slane %v8585_v4, %v7794_v35 }
0x14c8   :  { %v7161_v47 = vpop.permute.xlu0 %7160 }
0x14c9   :  { %v7163_v46 = vunpack.i.h.bf16 %v7161_v47  ;;  %v7162_v49 = vunpack.i.l.bf16 %v7161_v47 }
0x14cb   :  { %v4229_v44 = vsel %vm1406_vm4, %v4227_v36, %v7163_v46  ;;  %v4228_v19 = vsel %vm1406_vm4, %v4226_v10, %v7162_v49  ;;  %v4361_v36 = vrot.slane %v8585_v4, %v7785_v31 }
0x14d0   :  { %v7166_v12 = vpop.permute.xlu1 %7165 }
0x14d1   :  { %v7168_v6 = vunpack.i.h.bf16 %v7166_v12  ;;  %v7167_v8 = vunpack.i.l.bf16 %v7166_v12 }
0x14d3   :  { %v4231_v39 = vsel %vm1409_vm5, %v4229_v44, %v7168_v6  ;;  %v4230_v5 = vsel %vm1409_vm5, %v4228_v19, %v7167_v8  ;;  %v6313_v6 = vpack.c.bf16 %v8364_v61, %v8364_v61 }
0x14d4   :  { %v4232_v62 = vpack.c.bf16 %v4231_v39, %v4230_v5 }
0x14d5   :  { %v4528_v19 = vsel %vm529_vm1, %v6313_v6, 0 }
0x14d6   :  { %6967 = vmatmul.mubr.bf16.vlgmr.msra.gmra.mxu0 %v4232_v62 }
0x14d7   :  { %6991 = vmatpush3.bf16.xpose.msra.mxu0 %v4482_v29  ;;  %6992 = vmatprep.mubr.msk.bf16.mxu0 %vm7658_vm0, %v7657_v28 }
0x14d8   :  { %7002 = vmatprep.subr.bf16.mxu0 %v7657_v28 }
0x1596   :  { %v4321_v26 = vpop.f32.mrf.mxu0 }
0x1597   :  { %v4322_v60 = vadd.f32 %v8572_v43, %v4321_v26 }
0x1598   :  { %v6968_v27 = vpop.f32.mrf.mxu0 }
0x1599   :  { %v4328_v45 = vadd.f32 %v4322_v60, %v8323_v15 }
0x159a   :  { %v4324_v25 = vpop.f32.mrf.mxu0 }
0x159b   :  { %v4325_v24 = vadd.f32 %v8572_v43, %v4324_v25  ;;  %4330 = vadd.xlane.f32.xlu0 %v4328_v45 }
0x159c   :  { %v6969_v37 = vpop.f32.mrf.mxu0 }
0x159d   :  { %v4329_v23 = vadd.f32 %v4325_v24, %v8325_v1 }
0x159f   :  { %4332 = vadd.xlane.f32.xlu1 %v4329_v23 }
0x15b0   :  { %4432 = vrot.lane.b32.xlu1 %v8368_v34, %s7659_s17 }
0x15b4   :  { %4434 = vrot.lane.b32.xlu1 %v8368_v34, %s7647_s21 }
0x1624   :  { %v4331_v16 = vpop.xlane.xlu0 %4330 }
0x1625   :  { %v4334_v9 = vmul.f32 0.0078125, %v4331_v16 }
0x1627   :  { %v4336_v53 = vsub.f32 %v4328_v45, %v4334_v9 }
0x1628   :  { %v4333_v13 = vpop.xlane.xlu1 %4332 }
0x1629   :  { %v4335_v38 = vmul.f32 0.0078125, %v4333_v13  ;;  %v4338_v15 = vmul.f32 %v4336_v53, %v4336_v53 }
0x162b   :  { %v4337_v57 = vsub.f32 %v4329_v23, %v4335_v38  ;;  %4340 = vadd.xlane.f32.xlu0 %v4338_v15 }
0x162c   :  { %v4433_v39 = vpop.permute.xlu1 %4432 }
0x162d   :  { %v4339_v21 = vmul.f32 %v4337_v57, %v4337_v57  ;;  %v6211_v62 = vcombine.low %v4433_v39, %v4433_v39  ;;  %v6212_v27 = vcombine.high %v4433_v39, %v4433_v39 }
0x162f   :  { %4342 = vadd.xlane.f32.xlu0 %v4339_v21  ;;  %v4574_v25 = vsel %vm529_vm1, %v6211_v62, 0  ;;  %v4620_v16 = vsel %vm529_vm1, %v6212_v27, 0 }
0x16b4   :  { %v4341_v51 = vpop.xlane.xlu0 %4340 }
0x16b5   :  { %v4344_v17 = vmul.f32 0.0078125, %v4341_v51 }
0x16b7   :  { %v4346_v1 = vadd.f32 1e-05, %v4344_v17 }
0x16b8   :  { %v4343_v56 = vpop.xlane.xlu0 %4342 }
0x16b9   :  { %7476 = vrsqrt.f32 %v4346_v1  ;;  %v4345_v40 = vmul.f32 0.0078125, %v4343_v56 }
0x16bb   :  { %v4347_v63 = vadd.f32 1e-05, %v4345_v40 }
0x16bd   :  { %7478 = vrsqrt.f32 %v4347_v63 }
0x16c6   :  { %v7477_v47 = vpop.eup %7476 }
0x16c7   :  { %v4350_v3 = vmul.f32 %v7477_v47, %v4336_v53 }
0x16c9   :  { %v4356_v12 = vmul.f32 %v4355_v42, %v4350_v3 }
0x16ca   :  { %v7479_v46 = vpop.eup %7478 }
0x16cb   :  { %v4351_v49 = vmul.f32 %v7479_v46, %v4337_v57  ;;  %v8593_v8 = vadd.f32 %v4361_v36, %v4356_v12  ;;  %v6315_v46 = vpack.c.bf16 %v8373_v7, %v8373_v7 }
0x16cd   :  { %v4357_v10 = vmul.f32 %v4355_v42, %v4351_v49  ;;  %v6314_v42 = vpack.c.bf16 %v8371_v48, %v8371_v48 }
0x16cf   :  { %v8595_v58 = vadd.f32 %v4361_v36, %v4357_v10  ;;  %v4954_v36 = vsel %vm1014_vm2, %v6314_v42, 0  ;;  %v5000_v10 = vsel %vm1014_vm2, %v6315_v46, 0 }
0x16d1   :  { %v4364_v44 = vpack.c.bf16 %v8595_v58, %v8593_v8 }
0x16d3   :  { %6987 = vmatmul.mubr.bf16.vlgmr.msra.gmra.mxu1 %v4364_v44 }
0x16d4   :  { %6997 = vmatpush3.bf16.xpose.msra.mxu1 %v4528_v19  ;;  %6998 = vmatprep.mubr.msk.bf16.mxu1 %vm7658_vm0, %v7657_v28 }
0x16d5   :  { %7008 = vmatprep.subr.bf16.mxu1 %v7657_v28 }
0x1793   :  { %v4399_v5 = vpop.f32.mrf.mxu1 }
0x1794   :  { %v4400_v61 = vadd.f32 %v4399_v5, %v8342_v20 }
0x1795   :  { %v6988_v29 = vpop.f32.mrf.mxu1 }
0x1796   :  { %v6310_v26 = vpack.c.bf16 %v4400_v61, %v4400_v61 }
0x1797   :  { %v4402_v60 = vpop.f32.mrf.mxu1 }
0x1798   :  { %v4403_v45 = vadd.f32 %v4402_v60, %v8342_v20  ;;  %6993 = vmatmul.mubr.msk.bf16.vlgmr.msra.gmra.mxu0 %vm529_vm1, %v6310_v26  ;;  %v4435_v20 = vpop.permute.xlu1 %4434 }
0x1799   :  { %7003 = vmatpush3.bf16.xpose.msra.mxu0 %v4574_v25  ;;  %v6989_v24 = vpop.f32.mrf.mxu1  ;;  %7004 = vmatprep.mubr.msk.bf16.mxu0 %vm7658_vm0, %v7657_v28  ;;  %v6213_v9 = vcombine.low %v4435_v20, %v4435_v20  ;;  %v6214_v53 = vcombine.high %v4435_v20, %v4435_v20 }
0x179a   :  { %v4406_v37 = vpack.c.bf16 %v4403_v45, %v4400_v61  ;;  %v6311_v23 = vpack.c.bf16 %v4403_v45, %v4403_v45  ;;  %7014 = vmatprep.subr.bf16.mxu0 %v7657_v28 }
0x179b   :  { %v4666_v57 = vsel %vm529_vm1, %v6213_v9, 0  ;;  %v4712_v21 = vsel %vm529_vm1, %v6214_v53, 0 }
0x179c   :  { %6999 = vmatmul.mubr.msk.bf16.vlgmr.msra.gmra.mxu1 %vm529_vm1, %v6311_v23  ;;  %4410 = vrot.lane.b32.xlu1 %v4406_v37, %s7647_s21 }
0x179d   :  { %4408 = vrot.lane.b32.xlu0 %v4406_v37, %s7659_s17  ;;  %7009 = vmatpush3.bf16.xpose.msra.mxu1 %v4620_v16 }
0x179e   :  { %7010 = vmatprep.mubr.msk.bf16.mxu1 %vm7658_vm0, %v7657_v28  ;;  %7020 = vmatprep.subr.bf16.mxu1 %v7657_v28 }
0x17a0   :  { %4412 = vrot.lane.b32.xlu1 %v4406_v37, %s7660_s18 }
0x17a1   :  { %4436 = vrot.lane.b32.xlu0 %v8368_v34, %s7660_s18 }
0x180e   :  { %v4411_v34 = vpop.permute.xlu1 %4410 }
0x180f   :  { %v4409_v13 = vpop.permute.xlu0 %4408  ;;  %v6205_v56 = vcombine.low %v4411_v34, %v4411_v34  ;;  %v6206_v40 = vcombine.high %v4411_v34, %v4411_v34 }
0x1810   :  { %v6203_v38 = vcombine.low %v4409_v13, %v4409_v13  ;;  %v6204_v15 = vcombine.high %v4409_v13, %v4409_v13 }
0x1812   :  { %7005 = vmatmul.mubr.msk.bf16.vlgmr.msra.gmra.mxu0 %vm529_vm1, %v6203_v38  ;;  %7011 = vmatmul.mubr.msk.bf16.vlgmr.msra.gmra.mxu1 %vm529_vm1, %v6204_v15  ;;  %v4413_v3 = vpop.permute.xlu1 %4412 }
0x1813   :  { %7015 = vmatpush3.bf16.xpose.msra.mxu0 %v4666_v57  ;;  %7021 = vmatpush3.bf16.xpose.msra.mxu1 %v4712_v21  ;;  %v4437_v51 = vpop.permute.xlu0 %4436  ;;  %v6207_v49 = vcombine.low %v4413_v3, %v4413_v3  ;;  %v6208_v12 = vcombine.high %v4413_v3, %v4413_v3 }
0x1814   :  { %7016 = vmatprep.mubr.msk.bf16.mxu0 %vm7658_vm0, %v7657_v28  ;;  %7022 = vmatprep.mubr.msk.bf16.mxu1 %vm7658_vm0, %v7657_v28  ;;  %v6215_v17 = vcombine.low %v4437_v51, %v4437_v51  ;;  %v6216_v1 = vcombine.high %v4437_v51, %v4437_v51 }
0x1815   :  { %7026 = vmatprep.subr.bf16.mxu0 %v7657_v28  ;;  %7032 = vmatprep.subr.bf16.mxu1 %v7657_v28 }
0x1816   :  { %v4758_v63 = vsel %vm529_vm1, %v6215_v17, 0  ;;  %v4804_v47 = vsel %vm529_vm1, %v6216_v1, 0 }
0x181a   :  { %7017 = vmatmul.mubr.msk.bf16.vlgmr.msra.gmra.mxu0 %vm529_vm1, %v6205_v56  ;;  %7023 = vmatmul.mubr.msk.bf16.vlgmr.msra.gmra.mxu1 %vm529_vm1, %v6206_v40 }
0x181b   :  { %7027 = vmatpush3.bf16.xpose.msra.mxu0 %v4758_v63  ;;  %7033 = vmatpush3.bf16.xpose.msra.mxu1 %v4804_v47 }
0x181c   :  { %7028 = vmatprep.mubr.msk.bf16.mxu0 %vm7658_vm0, %v7657_v28  ;;  %7034 = vmatprep.mubr.msk.bf16.mxu1 %vm7658_vm0, %v7657_v28 }
0x181d   :  { %7038 = vmatprep.subr.bf16.mxu0 %v7657_v28  ;;  %7044 = vmatprep.subr.bf16.mxu1 %v7657_v28 }
0x1822   :  { %7029 = vmatmul.mubr.msk.bf16.vlgmr.msra.gmra.mxu0 %vm529_vm1, %v6207_v49  ;;  %7035 = vmatmul.mubr.msk.bf16.vlgmr.msra.gmra.mxu1 %vm529_vm1, %v6208_v12 }
0x1823   :  { %7039 = vmatpush3.bf16.msra.mxu0 %v4954_v36  ;;  %7045 = vmatpush3.bf16.msra.mxu1 %v5000_v10 }
0x1824   :  { %7046 = vmatprep.mubr.msk.bf16.mxu1 %vm7658_vm0, %v7657_v28  ;;  %7056 = vmatprep.subr.bf16.mxu1 %v7657_v28 }
0x1825   :  { %7040 = vmatprep.mubr.msk.bf16.mxu0 %vm7658_vm0, %v7657_v28  ;;  %7050 = vmatprep.subr.bf16.mxu0 %v7657_v28 }
0x1858   :  { %v4518_v48 = vpop.f32.mrf.mxu0 }
0x1859   :  { %v8654_v7 = vmul.f32 0.17677669, %v4518_v48 }
0x185a   :  { %v6994_v6 = vpop.f32.mrf.mxu0 }
0x185b   :  { %v4854_v44 = vsel %vm914_vm3, %v8654_v7, -inf }
0x185c   :  { %v4564_v19 = vpop.f32.mrf.mxu1  ;;  %4855 = vmax.xlane.f32.xlu0 %v4854_v44  ;;  %v4521_v39 = vpop.f32.mrf.mxu0 }
0x185d   :  { %v4847_v5 = vmul.f32 0.17677669, %v4564_v19 }
0x185e   :  { %v6995_v62 = vpop.f32.mrf.mxu0  ;;  %v7000_v61 = vpop.f32.mrf.mxu1 }
0x185f   :  { %v4857_v29 = vsel %vm914_vm3, %v4847_v5, -inf }
0x1860   :  { %4858 = vmax.xlane.f32.xlu1 %v4857_v29  ;;  %v4567_v26 = vpop.f32.mrf.mxu1 }
0x1862   :  { %v7001_v60 = vpop.f32.mrf.mxu1 }
0x18d2   :  { %v4610_v27 = vpop.f32.mrf.mxu0  ;;  %v4656_v45 = vpop.f32.mrf.mxu1 }
0x18d3   :  { %v4848_v25 = vmul.f32 0.17677669, %v4610_v27  ;;  %v4849_v23 = vmul.f32 0.17677669, %v4656_v45 }
0x18d4   :  { %v7006_v24 = vpop.f32.mrf.mxu0  ;;  %v7012_v37 = vpop.f32.mrf.mxu1 }
0x18d5   :  { %v4860_v16 = vsel %vm914_vm3, %v4848_v25, -inf  ;;  %v4863_v38 = vsel %vm914_vm3, %v4849_v23, -inf }
0x18d6   :  { %v4659_v20 = vpop.f32.mrf.mxu1  ;;  %4861 = vmax.xlane.f32.xlu0 %v4860_v16  ;;  %v4613_v9 = vpop.f32.mrf.mxu0 }
0x18d8   :  { %v7007_v53 = vpop.f32.mrf.mxu0  ;;  %v7013_v13 = vpop.f32.mrf.mxu1 }
0x18da   :  { %v4748_v15 = vpop.f32.mrf.mxu1  ;;  %4864 = vmax.xlane.f32.xlu0 %v4863_v38  ;;  %v4702_v57 = vpop.f32.mrf.mxu0 }
0x18db   :  { %v4851_v21 = vmul.f32 0.17677669, %v4748_v15  ;;  %v4850_v51 = vmul.f32 0.17677669, %v4702_v57 }
0x18dc   :  { %v7018_v34 = vpop.f32.mrf.mxu0  ;;  %v7024_v17 = vpop.f32.mrf.mxu1 }
0x18dd   :  { %v4869_v1 = vsel %vm914_vm3, %v4851_v21, -inf  ;;  %v4866_v56 = vsel %vm914_vm3, %v4850_v51, -inf }
0x18de   :  { %v4751_v40 = vpop.f32.mrf.mxu1  ;;  %4870 = vmax.xlane.f32.xlu0 %v4869_v1  ;;  %4867 = vmax.xlane.f32.xlu1 %v4866_v56  ;;  %v4705_v63 = vpop.f32.mrf.mxu0 }
0x18e0   :  { %v7019_v47 = vpop.f32.mrf.mxu0  ;;  %v7025_v3 = vpop.f32.mrf.mxu1 }
0x18e2   :  { %v4794_v42 = vpop.f32.mrf.mxu0  ;;  %v4840_v46 = vpop.f32.mrf.mxu1 }
0x18e3   :  { %v4852_v49 = vmul.f32 0.17677669, %v4794_v42  ;;  %v4853_v12 = vmul.f32 0.17677669, %v4840_v46 }
0x18e4   :  { %v7030_v36 = vpop.f32.mrf.mxu0  ;;  %v7036_v10 = vpop.f32.mrf.mxu1 }
0x18e5   :  { %v4875_v48 = vsel %vm914_vm3, %v4853_v12, -inf  ;;  %v4872_v6 = vsel %vm914_vm3, %v4852_v49, -inf  ;;  %v4856_v45 = vpop.xlane.xlu0 %4855 }
0x18e6   :  { %v4843_v44 = vpop.f32.mrf.mxu1  ;;  %4876 = vmax.xlane.f32.xlu0 %v4875_v48  ;;  %4873 = vmax.xlane.f32.xlu1 %v4872_v6  ;;  %v4797_v19 = vpop.f32.mrf.mxu0  ;;  %v4878_v24 = vsub.f32 %v8654_v7, %v4856_v45 }
0x18e8   :  { %v7031_v39 = vpop.f32.mrf.mxu0  ;;  %v7037_v62 = vpop.f32.mrf.mxu1  ;;  %v4886_v37 = vmul.f32 1.442695, %v4878_v24 }
0x18e9   :  { %v4859_v61 = vpop.xlane.xlu1 %4858 }
0x18ea   :  { %v4879_v29 = vsub.f32 %v4847_v5, %v4859_v61 }
0x18ec   :  { %v4888_v26 = vmul.f32 1.442695, %v4879_v29 }
0x18ee   :  { %7480 = vpow2.f32 %v4888_v26 }
0x18ef   :  { %7482 = vpow2.f32 %v4886_v37 }
0x18f7   :  { %4456 = vrot.lane.b32.xlu1 %v8379_v14, %s7659_s17 }
0x18fb   :  { %v7481_v60 = vpop.eup %7480 }
0x18fc   :  { %v4905_v27 = vsel %vm914_vm3, %v7481_v60, 0.0  ;;  %v8669_v16 = vpop.eup %7482 }
0x18fd   :  { %4906 = vadd.xlane.f32.xlu0 %v4905_v27  ;;  %v4902_v20 = vsel %vm914_vm3, %v8669_v16, 0.0 }
0x191b   :  { %4903 = vadd.xlane.f32.xlu1 %v4902_v20 }
0x195f   :  { %v4862_v5 = vpop.xlane.xlu0 %4861 }
0x1960   :  { %v4880_v9 = vsub.f32 %v4848_v25, %v4862_v5 }
0x1962   :  { %v4890_v53 = vmul.f32 1.442695, %v4880_v9 }
0x1963   :  { %v4865_v13 = vpop.xlane.xlu0 %4864 }
0x1964   :  { %7484 = vpow2.f32 %v4890_v53  ;;  %v4881_v38 = vsub.f32 %v4849_v23, %v4865_v13 }
0x1966   :  { %v4892_v15 = vmul.f32 1.442695, %v4881_v38 }
0x1967   :  { %v4871_v57 = vpop.xlane.xlu0 %4870  ;;  %v4868_v34 = vpop.xlane.xlu1 %4867 }
0x1968   :  { %7486 = vpow2.f32 %v4892_v15  ;;  %v4883_v17 = vsub.f32 %v4851_v21, %v4871_v57  ;;  %v4882_v7 = vsub.f32 %v4850_v51, %v4868_v34 }
0x196a   :  { %v4896_v1 = vmul.f32 1.442695, %v4883_v17  ;;  %v4894_v56 = vmul.f32 1.442695, %v4882_v7 }
0x196c   :  { %7488 = vpow2.f32 %v4896_v1 }
0x196d   :  { %7490 = vpow2.f32 %v4894_v56 }
0x196f   :  { %v4877_v40 = vpop.xlane.xlu0 %4876  ;;  %v4874_v63 = vpop.xlane.xlu1 %4873 }
0x1970   :  { %v4885_v47 = vsub.f32 %v4853_v12, %v4877_v40  ;;  %v4884_v3 = vsub.f32 %v4852_v49, %v4874_v63 }
0x1971   :  { %v7485_v42 = vpop.eup %7484 }
0x1972   :  { %v4900_v25 = vmul.f32 1.442695, %v4885_v47  ;;  %v4898_v46 = vmul.f32 1.442695, %v4884_v3  ;;  %v4908_v36 = vsel %vm914_vm3, %v7485_v42, 0.0 }
0x1973   :  { %4909 = vadd.xlane.f32.xlu1 %v4908_v36  ;;  %v4457_v62 = vpop.permute.xlu1 %4456 }
0x1974   :  { %7492 = vpow2.f32 %v4900_v25  ;;  %v6220_v29 = vcombine.high %v4457_v62, %v4457_v62  ;;  %v6219_v37 = vcombine.low %v4457_v62, %v4457_v62 }
0x1975   :  { %v7487_v23 = vpop.eup %7486  ;;  %7494 = vpow2.f32 %v4898_v46 }
0x1976   :  { %v4911_v21 = vsel %vm914_vm3, %v7487_v23, 0.0  ;;  %v5092_v45 = vsel %vm1014_vm2, %v6220_v29, 0 }
0x1977   :  { %4912 = vadd.xlane.f32.xlu0 %v4911_v21 }
0x1979   :  { %v8675_v51 = vpop.eup %7488 }
0x197a   :  { %v8677_v10 = vpop.eup %7490  ;;  %v4917_v12 = vsel %vm914_vm3, %v8675_v51, 0.0 }
0x197b   :  { %4918 = vadd.xlane.f32.xlu0 %v4917_v12  ;;  %v4914_v49 = vsel %vm914_vm3, %v8677_v10, 0.0 }
0x197c   :  { %4915 = vadd.xlane.f32.xlu1 %v4914_v49 }
0x1981   :  { %v8683_v48 = vpop.eup %7492 }
0x1982   :  { %v8685_v6 = vpop.eup %7494  ;;  %v4923_v44 = vsel %vm914_vm3, %v8683_v48, 0.0 }
0x1983   :  { %4924 = vadd.xlane.f32.xlu0 %v4923_v44  ;;  %v4920_v19 = vsel %vm914_vm3, %v8685_v6, 0.0 }
0x1984   :  { %4921 = vadd.xlane.f32.xlu1 %v4920_v19 }
0x1986   :  { %v4907_v39 = vpop.xlane.xlu0 %4906 }
0x1987   :  { %7496 = vrcp.f32 %v4907_v39 }
0x1994   :  { %v7497_v61 = vpop.eup %7496 }
0x1995   :  { %v4935_v26 = vmul.f32 %v7497_v61, %v7481_v60  ;;  %4460 = vrot.lane.b32.xlu1 %v8379_v14, %s7660_s18 }
0x1997   :  { %v4943_v27 = vpack.c.bf16 %v4935_v26, %v4935_v26 }
0x1999   :  { %4458 = vrot.lane.b32.xlu0 %v8379_v14, %s7647_s21  ;;  %7047 = vmatmul.mubr.msk.bf16.vlgmr.msra.gmra.mxu1 %vm914_vm3, %v4943_v27  ;;  %v5046_v14 = vsel %vm1014_vm2, %v6219_v37, 0 }
0x199a   :  { %7057 = vmatpush3.bf16.msra.mxu1 %v5092_v45  ;;  %7058 = vmatprep.mubr.msk.bf16.mxu1 %vm7658_vm0, %v7657_v28 }
0x199b   :  { %7068 = vmatprep.subr.bf16.mxu1 %v7657_v28 }
0x19a4   :  { %v4904_v24 = vpop.xlane.xlu1 %4903 }
0x19a5   :  { %7498 = vrcp.f32 %v4904_v24 }
0x19b2   :  { %v7499_v60 = vpop.eup %7498 }
0x19b3   :  { %v4934_v20 = vmul.f32 %v7499_v60, %v8669_v16 }
0x19b5   :  { %v4942_v5 = vpack.c.bf16 %v4934_v20, %v4934_v20 }
0x19b7   :  { %7041 = vmatmul.mubr.msk.bf16.vlgmr.msra.gmra.mxu0 %vm914_vm3, %v4942_v5 }
0x19b8   :  { %7051 = vmatpush3.bf16.msra.mxu0 %v5046_v14  ;;  %7052 = vmatprep.mubr.msk.bf16.mxu0 %vm7658_vm0, %v7657_v28 }
0x19b9   :  { %7062 = vmatprep.subr.bf16.mxu0 %v7657_v28 }
0x19fc   :  { %v4910_v9 = vpop.xlane.xlu1 %4909 }
0x19fd   :  { %7500 = vrcp.f32 %v4910_v9 }
0x1a00   :  { %v4913_v53 = vpop.xlane.xlu0 %4912 }
0x1a01   :  { %7502 = vrcp.f32 %v4913_v53 }
0x1a04   :  { %v4919_v13 = vpop.xlane.xlu0 %4918 }
0x1a05   :  { %7504 = vrcp.f32 %v4919_v13  ;;  %v4916_v38 = vpop.xlane.xlu1 %4915 }
0x1a06   :  { %7506 = vrcp.f32 %v4916_v38 }
0x1a0a   :  { %v7501_v16 = vpop.eup %7500 }
0x1a0b   :  { %v4936_v15 = vmul.f32 %v7501_v16, %v7485_v42 }
0x1a0c   :  { %v4925_v57 = vpop.xlane.xlu0 %4924 }
0x1a0d   :  { %v4944_v34 = vpack.c.bf16 %v4936_v15, %v4936_v15  ;;  %7508 = vrcp.f32 %v4925_v57  ;;  %v4922_v17 = vpop.xlane.xlu1 %4921 }
0x1a0e   :  { %v7503_v7 = vpop.eup %7502  ;;  %7510 = vrcp.f32 %v4922_v17 }
0x1a0f   :  { %v4937_v1 = vmul.f32 %v7503_v7, %v7487_v23  ;;  %7053 = vmatmul.mubr.msk.bf16.vlgmr.msra.gmra.mxu0 %vm914_vm3, %v4944_v34 }
0x1a10   :  { %v4459_v56 = vpop.permute.xlu0 %4458  ;;  %7064 = vmatprep.mubr.msk.bf16.mxu0 %vm7658_vm0, %v7657_v28 }
0x1a11   :  { %v4945_v40 = vpack.c.bf16 %v4937_v1, %v4937_v1  ;;  %v6221_v63 = vcombine.low %v4459_v56, %v4459_v56  ;;  %v6222_v47 = vcombine.high %v4459_v56, %v4459_v56  ;;  %v4461_v3 = vpop.permute.xlu1 %4460 }
0x1a12   :  { %v7505_v25 = vpop.eup %7504  ;;  %v6223_v21 = vcombine.low %v4461_v3, %v4461_v3  ;;  %v6224_v44 = vcombine.high %v4461_v3, %v4461_v3 }
0x1a13   :  { %v7507_v46 = vpop.eup %7506  ;;  %7059 = vmatmul.mubr.msk.bf16.vlgmr.msra.gmra.mxu1 %vm914_vm3, %v4945_v40  ;;  %v5138_v42 = vsel %vm1014_vm2, %v6221_v63, 0  ;;  %v5184_v36 = vsel %vm1014_vm2, %v6222_v47, 0  ;;  %v4939_v12 = vmul.f32 %v7505_v25, %v8675_v51 }
0x1a14   :  { %v4938_v23 = vmul.f32 %v7507_v46, %v8677_v10  ;;  %7063 = vmatpush3.bf16.msra.mxu0 %v5138_v42  ;;  %7069 = vmatpush3.bf16.msra.mxu1 %v5184_v36  ;;  %v5230_v19 = vsel %vm1014_vm2, %v6223_v21, 0  ;;  %v5276_v62 = vsel %vm1014_vm2, %v6224_v44, 0 }
0x1a15   :  { %7074 = vmatprep.subr.bf16.mxu0 %v7657_v28  ;;  %7070 = vmatprep.mubr.msk.bf16.mxu1 %vm7658_vm0, %v7657_v28  ;;  %v4947_v39 = vpack.c.bf16 %v4939_v12, %v4939_v12 }
0x1a16   :  { %v4946_v49 = vpack.c.bf16 %v4938_v23, %v4938_v23  ;;  %7080 = vmatprep.subr.bf16.mxu1 %v7657_v28 }
0x1a18   :  { %7065 = vmatmul.mubr.msk.bf16.vlgmr.msra.gmra.mxu0 %vm914_vm3, %v4946_v49 }
0x1a19   :  { %7075 = vmatpush3.bf16.msra.mxu0 %v5230_v19  ;;  %7076 = vmatprep.mubr.msk.bf16.mxu0 %vm7658_vm0, %v7657_v28 }
0x1a1a   :  { %v7509_v10 = vpop.eup %7508  ;;  %7086 = vmatprep.subr.bf16.mxu0 %v7657_v28 }
0x1a1b   :  { %v7511_v51 = vpop.eup %7510  ;;  %7071 = vmatmul.mubr.msk.bf16.vlgmr.msra.gmra.mxu1 %vm914_vm3, %v4947_v39  ;;  %v4941_v29 = vmul.f32 %v7509_v10, %v8683_v48 }
0x1a1c   :  { %v4940_v61 = vmul.f32 %v7511_v51, %v8685_v6  ;;  %7081 = vmatpush3.bf16.msra.mxu1 %v5276_v62  ;;  %7082 = vmatprep.mubr.msk.bf16.mxu1 %vm7658_vm0, %v7657_v28 }
0x1a1d   :  { %v4949_v27 = vpack.c.bf16 %v4941_v29, %v4941_v29 }
0x1a1e   :  { %v4948_v26 = vpack.c.bf16 %v4940_v61, %v4940_v61 }
0x1a20   :  { %7077 = vmatmul.mubr.msk.bf16.vlgmr.msra.gmra.mxu0 %vm914_vm3, %v4948_v26 }
0x1a21   :  { %7087 = vmatpush3.bf16.msra.mxu0 %v8521_v50  ;;  %7102 = vmatprep.mubr.msk.bf16.mxu0 %vm7658_vm0, %v7657_v28 }
0x1a22   :  { %7088 = vmatprep.subr.bf16.mxu0 %v7657_v28 }
0x1a23   :  { %7083 = vmatmul.mubr.msk.bf16.vlgmr.msra.gmra.mxu1 %vm914_vm3, %v4949_v27 }
0x1a24   :  { %5550 = vmatprep.mubr.bf16.mxu1 %v7656_v0 }
0x1a25   :  { %7089 = vmatpush3.bf16.msra.mxu0 %v8524_v59 }
0x1a26   :  { %7090 = vmatprep.subr.bf16.mxu0 %v7657_v28 }
0x1a29   :  { %7091 = vmatpush3.bf16.msra.mxu0 %v8528_v54 }
0x1a2a   :  { %7092 = vmatprep.subr.bf16.mxu0 %v7657_v28 }
0x1a2d   :  { %7093 = vmatpush3.bf16.msra.mxu0 %v8533_v22 }
0x1a2e   :  { %7094 = vmatprep.subr.bf16.mxu0 %v7657_v28 }
0x1a31   :  { %7095 = vmatpush3.bf16.msra.mxu0 %v8536_v2 }
0x1a32   :  { %7096 = vmatprep.subr.bf16.mxu0 %v7657_v28 }
0x1a35   :  { %7097 = vmatpush3.bf16.msra.mxu0 %v8541_v11 }
0x1a36   :  { %7098 = vmatprep.subr.bf16.mxu0 %v7657_v28 }
0x1a39   :  { %7099 = vmatpush3.bf16.msra.mxu0 %v8544_v18 }
0x1a3a   :  { %7100 = vmatprep.subr.bf16.mxu0 %v7657_v28 }
0x1a3d   :  { %7101 = vmatpush3.bf16.msra.mxu0 %v8550_v33 }
0x1a59   :  { %v5036_v50 = vpop.f32.mrf.mxu1 }
0x1a5b   :  { %v7048_v59 = vpop.f32.mrf.mxu1 }
0x1a5d   :  { %v5039_v54 = vpop.f32.mrf.mxu1 }
0x1a5f   :  { %v7049_v22 = vpop.f32.mrf.mxu1 }
0x1a77   :  { %v4990_v48 = vpop.f32.mrf.mxu0 }
0x1a79   :  { %v7042_v6 = vpop.f32.mrf.mxu0 }
0x1a7b   :  { %v4993_v45 = vpop.f32.mrf.mxu0 }
0x1a7d   :  { %v7043_v2 = vpop.f32.mrf.mxu0 }
0x1a7e   :  { %v7304_v2 = vld [vmem:[%s8861_s6 + $0xf0] ss:$8 sps:$4 sm:$0xff]  }
0x1acf   :  { %v5082_v24 = vpop.f32.mrf.mxu0 }
0x1ad1   :  { %v7054_v60 = vpop.f32.mrf.mxu0 }
0x1ad3   :  { %v5085_v37 = vpop.f32.mrf.mxu0  ;;  %v5128_v11 = vpop.f32.mrf.mxu1 }
0x1ad4   :  { %v7169_v20 = vpack.i.bf16 %v5128_v11, %v5082_v24  ;;  %v7306_v24 = vld [vmem:[%s8861_s6 + $0xf4] ss:$8 sps:$4 sm:$0xff]  }
0x1ad5   :  { %v7055_v5 = vpop.f32.mrf.mxu0  ;;  %v7060_v14 = vpop.f32.mrf.mxu1  ;;  %5518 = vmatprep.subr.bf16.mxu1 %v7306_v24 }
0x1ad6   :  { %7170 = vrot.lane.b32.xlu1 %v7169_v20, %s7660_s18  ;;  %5519 = vmatpush1.bf16.msra.mxu1 %v7304_v2  ;;  %v7309_v14 = vld [vmem:[%s8861_s6 + $0xe4] ss:$8 sps:$4 sm:$0xff]  }
0x1ad7   :  { %v5131_v28 = vpop.f32.mrf.mxu1  ;;  %5520 = vmatprep.subr.bf16.mxu1 %v7309_v14 }
0x1ad8   :  { %v5174_v18 = vpop.f32.mrf.mxu0  ;;  %v7307_v28 = vld [vmem:[%s8861_s6 + $0xe0] ss:$8 sps:$4 sm:$0xff]  }
0x1ad9   :  { %v7061_v33 = vpop.f32.mrf.mxu1 }
0x1ada   :  { %v7066_v9 = vpop.f32.mrf.mxu0  ;;  %5521 = vmatpush1.bf16.msra.mxu1 %v7307_v28  ;;  %v7310_v33 = vld [vmem:[%s8861_s6 + $0xd0] ss:$8 sps:$4 sm:$0xff]  }
0x1adb   :  { %v5220_v53 = vpop.f32.mrf.mxu1  ;;  %v7315_v9 = vld [vmem:[%s8861_s6 + $0xc4] ss:$8 sps:$4 sm:$0xff]  }
0x1adc   :  { %v5177_v13 = vpop.f32.mrf.mxu0  ;;  %v7174_v38 = vpack.i.bf16 %v5220_v53, %v5174_v18  ;;  %v7312_v18 = vld [vmem:[%s8861_s6 + $0xd4] ss:$8 sps:$4 sm:$0xff]   ;;  %v7313_v53 = vld [vmem:[%s8861_s6 + $0xc0] ss:$8 sps:$4 sm:$0xff]  }
0x1add   :  { %v7072_v16 = vpop.f32.mrf.mxu1  ;;  %5522 = vmatprep.subr.bf16.mxu1 %v7312_v18  ;;  %v7318_v13 = vld [vmem:[%s8861_s6 + $0xb4] ss:$8 sps:$4 sm:$0xff]  }
0x1ade   :  { %v7067_v15 = vpop.f32.mrf.mxu0  ;;  %7175 = vrot.lane.b32.xlu0 %v7174_v38, %s7647_s21  ;;  %5523 = vmatpush1.bf16.msra.mxu1 %v7310_v33  ;;  %v7316_v38 = vld [vmem:[%s8861_s6 + $0xb0] ss:$8 sps:$4 sm:$0xff]   ;;  %v7321_v16 = vld [vmem:[%s8861_s6 + $0xa4] ss:$8 sps:$4 sm:$0xff]  }
0x1adf   :  { %v5223_v57 = vpop.f32.mrf.mxu1  ;;  %5524 = vmatprep.subr.bf16.mxu1 %v7315_v9  ;;  %v7319_v15 = vld [vmem:[%s8861_s6 + $0xa0] ss:$8 sps:$4 sm:$0xff]  }
0x1ae0   :  { %v5266_v34 = vpop.f32.mrf.mxu0  ;;  %v7324_v57 = vld [vmem:[%s8861_s6 + $0x94] ss:$8 sps:$4 sm:$0xff]  }
0x1ae1   :  { %v7073_v17 = vpop.f32.mrf.mxu1 }
0x1ae2   :  { %v7078_v7 = vpop.f32.mrf.mxu0  ;;  %5525 = vmatpush1.bf16.msra.mxu1 %v7313_v53  ;;  %v7327_v17 = vld [vmem:[%s8861_s6 + $0x84] ss:$8 sps:$4 sm:$0xff]  }
0x1ae3   :  { %v5312_v1 = vpop.f32.mrf.mxu1  ;;  %5526 = vmatprep.subr.bf16.mxu1 %v7318_v13  ;;  %v7325_v7 = vld [vmem:[%s8861_s6 + $0x80] ss:$8 sps:$4 sm:$0xff]  }
0x1ae4   :  { %v5269_v56 = vpop.f32.mrf.mxu0  ;;  %v7179_v40 = vpack.i.bf16 %v5312_v1, %v5266_v34  ;;  %v7322_v34 = vld [vmem:[%s8861_s6 + $0x90] ss:$8 sps:$4 sm:$0xff]   ;;  %v6257_v13 = vld [vmem:[%s8864_s9 + $0x1] ss:$0 sm:$0xff] }
0x1ae5   :  { %v7084_v63 = vpop.f32.mrf.mxu1  ;;  %v7328_v1 = vld [vmem:[#allocation7 + $0xf8] sm:$0xff]  }
0x1ae6   :  { %v7079_v47 = vpop.f32.mrf.mxu0  ;;  %7180 = vrot.lane.b32.xlu1 %v7179_v40, %s7659_s17  ;;  %5527 = vmatpush1.bf16.msra.mxu1 %v7316_v38  ;;  %v7329_v56 = vld [vmem:[#allocation7 + $0xb8] sm:$0xff]   ;;  %v7330_v40 = vld [vmem:[#allocation7 + $0xf0] sm:$0xff]  }
0x1ae7   :  { %v5315_v3 = vpop.f32.mrf.mxu1  ;;  %5528 = vmatprep.subr.bf16.mxu1 %v7321_v16  ;;  %6540 = vmatprep.subr.bf16.mxu0 %v7328_v1  ;;  %v7331_v63 = vld [vmem:[#allocation7 + $0xb0] sm:$0xff]   ;;  %v7332_v47 = vld [vmem:[#allocation7 + $0xe8] sm:$0xff]  }
0x1ae8   :  { %v7333_v3 = vld [vmem:[#allocation7 + $0xa8] sm:$0xff]  }
0x1ae9   :  { %v7085_v25 = vpop.f32.mrf.mxu1 }
0x1aea   :  { %5529 = vmatpush1.bf16.msra.mxu1 %v7319_v15  ;;  %v7334_v25 = vld [vmem:[#allocation7 + $0xe0] sm:$0xff]  }
0x1aeb   :  { %5530 = vmatprep.subr.bf16.mxu1 %v7324_v57 }
0x1aee   :  { %5531 = vmatpush1.bf16.msra.mxu1 %v7322_v34 }
0x1aef   :  { %5532 = vmatprep.subr.bf16.mxu1 %v7327_v17 }
0x1af2   :  { %5533 = vmatpush1.bf16.msra.mxu1 %v7325_v7 }
0x1b48   :  { %v7171_v46 = vpop.permute.xlu1 %7170 }
0x1b49   :  { %v7173_v36 = vunpack.i.h.bf16 %v7171_v46  ;;  %v7172_v23 = vunpack.i.l.bf16 %v7171_v46  ;;  %v7335_v46 = vld [vmem:[#allocation7 + $0xa0] sm:$0xff]  }
0x1b4b   :  { %v5343_v44 = vsel %vm529_vm1, %v5036_v50, %v7173_v36  ;;  %v5342_v19 = vsel %vm529_vm1, %v4990_v48, %v7172_v23  ;;  %v7337_v36 = vld [vmem:[#allocation7 + $0x98] sm:$0xff]  }
0x1b50   :  { %v7176_v42 = vpop.permute.xlu0 %7175 }
0x1b51   :  { %v7178_v21 = vunpack.i.h.bf16 %v7176_v42  ;;  %v7177_v12 = vunpack.i.l.bf16 %v7176_v42  ;;  %v7336_v42 = vld [vmem:[#allocation7 + $0xd8] sm:$0xff]  }
0x1b53   :  { %v5345_v51 = vsel %vm1406_vm4, %v5343_v44, %v7178_v21  ;;  %v5344_v62 = vsel %vm1406_vm4, %v5342_v19, %v7177_v12 }
0x1b58   :  { %v7181_v49 = vpop.permute.xlu1 %7180 }
0x1b59   :  { %v7183_v39 = vunpack.i.h.bf16 %v7181_v49  ;;  %v7182_v10 = vunpack.i.l.bf16 %v7181_v49 }
0x1b5b   :  { %v5347_v61 = vsel %vm1409_vm5, %v5345_v51, %v7183_v39  ;;  %v5346_v29 = vsel %vm1409_vm5, %v5344_v62, %v7182_v10  ;;  %v5417_v51 = vrot.slane %v8585_v4, %v7822_v55  ;;  %v7340_v55 = vld [vmem:[#allocation7 + $0xc8] sm:$0xff]  }
0x1b5c   :  { %v5348_v26 = vpack.c.bf16 %v5347_v61, %v5346_v29  ;;  %v5423_v61 = vrot.slane %v8585_v4, %v2603_v32  ;;  %v7343_v32 = vld [vmem:[#allocation7 + $0x80] sm:$0xff]  }
0x1b5d   :  { %v6125_v4 = vld [vmem:[%s8862_s7 + $0x2] sm:$0x3] }
0x1b5e   :  { %7103 = vmatmul.mubr.bf16.vlgmr.msra.gmra.mxu0 %v5348_v26  ;;  %v5435_v24 = vrot.slane %v6125_v4, %v7785_v31 }
0x1b5f   :  { %6541 = vmatpush3.bf16.msra.mxu0 %v7329_v56 }
0x1b60   :  { %6542 = vmatprep.subr.bf16.mxu0 %v7330_v40 }
0x1b63   :  { %6543 = vmatpush3.bf16.msra.mxu0 %v7331_v63 }
0x1b64   :  { %6544 = vmatprep.subr.bf16.mxu0 %v7332_v47 }
0x1b67   :  { %6545 = vmatpush3.bf16.msra.mxu0 %v7333_v3 }
0x1b68   :  { %6546 = vmatprep.subr.bf16.mxu0 %v7334_v25 }
0x1b6b   :  { %6547 = vmatpush3.bf16.msra.mxu0 %v7335_v46 }
0x1b6c   :  { %6548 = vmatprep.subr.bf16.mxu0 %v7336_v42 }
0x1b6f   :  { %6549 = vmatpush3.bf16.msra.mxu0 %v7337_v36 }
0x1c1e   :  { %v5383_v27 = vpop.f32.mrf.mxu0 }
0x1c1f   :  { %v5384_v59 = vadd.f32 %v8572_v43, %v5383_v27 }
0x1c20   :  { %v7104_v54 = vpop.f32.mrf.mxu0 }
0x1c21   :  { %v5390_v50 = vadd.f32 %v5384_v59, %v8593_v8 }
0x1c22   :  { %v5386_v22 = vpop.f32.mrf.mxu0 }
0x1c23   :  { %v5387_v48 = vadd.f32 %v8572_v43, %v5386_v22  ;;  %5392 = vadd.xlane.f32.xlu0 %v5390_v50  ;;  %v7338_v22 = vld [vmem:[#allocation7 + $0xd0] sm:$0xff]  }
0x1c24   :  { %v7105_v6 = vpop.f32.mrf.mxu0  ;;  %6550 = vmatprep.subr.bf16.mxu0 %v7338_v22  ;;  %v7344_v22 = vld [vmem:[#allocation8 + $0x70] ss:$8 sps:$4 sm:$0xff]  }
0x1c25   :  { %v5391_v45 = vadd.f32 %v5387_v48, %v8595_v58  ;;  %v7339_v48 = vld [vmem:[#allocation7 + $0x90] sm:$0xff]   ;;  %v7341_v6 = vld [vmem:[#allocation7 + $0x88] sm:$0xff]  }
0x1c26   :  { %6551 = vmatpush3.bf16.msra.mxu0 %v7339_v48  ;;  %v7346_v48 = vld [vmem:[#allocation8 + $0x74] ss:$8 sps:$4 sm:$0xff]  }
0x1c27   :  { %5394 = vadd.xlane.f32.xlu1 %v5391_v45  ;;  %6552 = vmatprep.subr.bf16.mxu0 %v7340_v55 }
0x1c28   :  { %5895 = vmatprep.subr.bf16.mxu1 %v7346_v48 }
0x1c2a   :  { %6553 = vmatpush3.bf16.msra.mxu0 %v7341_v6 }
0x1cac   :  { %v5393_v60 = vpop.xlane.xlu0 %5392 }
0x1cad   :  { %v5396_v8 = vmul.f32 0.0078125, %v5393_v60 }
0x1caf   :  { %v8768_v37 = vsub.f32 %v5390_v50, %v5396_v8 }
0x1cb0   :  { %v5395_v43 = vpop.xlane.xlu1 %5394 }
0x1cb1   :  { %v5397_v11 = vmul.f32 0.0078125, %v5395_v43  ;;  %v5400_v58 = vmul.f32 %v8768_v37, %v8768_v37 }
0x1cb3   :  { %v8772_v20 = vsub.f32 %v5391_v45, %v5397_v11  ;;  %5402 = vadd.xlane.f32.xlu0 %v5400_v58  ;;  %v7342_v45 = vld [vmem:[#allocation7 + $0xc0] sm:$0xff]  }
0x1cb4   :  { %6554 = vmatprep.subr.bf16.mxu0 %v7342_v45 }
0x1cb5   :  { %v5401_v5 = vmul.f32 %v8772_v20, %v8772_v20  ;;  %6555 = vmatpush3.bf16.msra.mxu0 %v7343_v32 }
0x1cb7   :  { %5404 = vadd.xlane.f32.xlu0 %v5401_v5 }
0x1d3c   :  { %v5403_v23 = vpop.xlane.xlu0 %5402 }
0x1d3d   :  { %v5406_v21 = vmul.f32 0.0078125, %v5403_v23 }
0x1d3f   :  { %v5408_v12 = vadd.f32 1e-05, %v5406_v21 }
0x1d40   :  { %v5405_v49 = vpop.xlane.xlu0 %5404 }
0x1d41   :  { %7512 = vrsqrt.f32 %v5408_v12  ;;  %v5407_v44 = vmul.f32 0.0078125, %v5405_v49 }
0x1d43   :  { %v5409_v19 = vadd.f32 1e-05, %v5407_v44 }
0x1d45   :  { %7514 = vrsqrt.f32 %v5409_v19 }
0x1d4e   :  { %v7513_v39 = vpop.eup %7512 }
0x1d4f   :  { %v5412_v10 = vmul.f32 %v7513_v39, %v8768_v37  ;;  %v7537_v39 = vld [vmem:[%s8865_s10 + $0x8] sm:$0x3f] }
0x1d51   :  { %v5418_v26 = vmul.f32 %v5417_v51, %v5412_v10  ;;  %v5737_v10 = vrot.slane %v7537_v39, %v2917_v41 }
0x1d52   :  { %v7515_v62 = vpop.eup %7514 }
0x1d53   :  { %v5413_v29 = vmul.f32 %v7515_v62, %v8772_v20  ;;  %v5424_v59 = vadd.f32 %v5423_v61, %v5418_v26 }
0x1d55   :  { %v5419_v27 = vmul.f32 %v5417_v51, %v5413_v29 }
0x1d57   :  { %v5425_v54 = vadd.f32 %v5423_v61, %v5419_v27  ;;  %v5743_v61 = vrot.slane %v7537_v39, %v2923_v52 }
0x1d59   :  { %v5426_v50 = vpack.c.bf16 %v5425_v54, %v5424_v59 }
0x1d5b   :  { %5551 = vmatmul.mubr.bf16.vlgmr.msra.gmra.mxu1 %v5426_v50 }
0x1d5c   :  { %5927 = vmatprep.mubr.bf16.mxu1 %v7656_v0  ;;  %v5431_v0 = vrot.slane %v6125_v4, %v7794_v35  ;;  %5896 = vmatpush1.bf16.msra.mxu1 %v7344_v22 }
0x1e1b   :  { %v5552_v2 = vpop.f32.mrf.mxu1 }
0x1e1c   :  { %v5553_v11 = vadd.f32 %v5552_v2, %v5431_v0  ;;  %v7349_v2 = vld [vmem:[#allocation8 + $0x64] ss:$8 sps:$4 sm:$0xff]  }
0x1e1d   :  { %v5554_v60 = vpop.f32.mrf.mxu1  ;;  %5897 = vmatprep.subr.bf16.mxu1 %v7349_v2 }
0x1e1e   :  { %v5555_v37 = vadd.f32 %v5554_v60, %v5435_v24  ;;  %v5561_v18 = vmax.f32 %v5553_v11, 0.0  ;;  %v7350_v60 = vld [vmem:[#allocation8 + $0x50] ss:$8 sps:$4 sm:$0xff]  }
0x1e1f   :  { %v5556_v8 = vpop.f32.mrf.mxu1  ;;  %v7356_v11 = vld [vmem:[#allocation8 + $0x30] ss:$8 sps:$4 sm:$0xff]  }
0x1e20   :  { %v5557_v43 = vadd.f32 %v5556_v8, %v5431_v0  ;;  %v5562_v14 = vmax.f32 %v5555_v37, 0.0  ;;  %v7352_v0 = vld [vmem:[#allocation8 + $0x54] ss:$8 sps:$4 sm:$0xff]   ;;  %v7355_v8 = vld [vmem:[#allocation8 + $0x44] ss:$8 sps:$4 sm:$0xff]  }
0x1e21   :  { %v5558_v58 = vpop.f32.mrf.mxu1  ;;  %v7353_v37 = vld [vmem:[#allocation8 + $0x40] ss:$8 sps:$4 sm:$0xff]  }
0x1e22   :  { %v5559_v20 = vadd.f32 %v5558_v58, %v5435_v24  ;;  %v5563_v5 = vmax.f32 %v5557_v43, 0.0  ;;  %v7347_v24 = vld [vmem:[#allocation8 + $0x60] ss:$8 sps:$4 sm:$0xff]   ;;  %v7358_v43 = vld [vmem:[#allocation8 + $0x34] ss:$8 sps:$4 sm:$0xff]  }
0x1e23   :  { %5898 = vmatpush1.bf16.msra.mxu1 %v7347_v24  ;;  %v7361_v58 = vld [vmem:[#allocation8 + $0x24] ss:$8 sps:$4 sm:$0xff]  }
0x1e24   :  { %v5564_v28 = vmax.f32 %v5559_v20, 0.0  ;;  %v5565_v9 = vpack.c.bf16 %v5563_v5, %v5561_v18  ;;  %5899 = vmatprep.subr.bf16.mxu1 %v7352_v0  ;;  %v7359_v20 = vld [vmem:[#allocation8 + $0x20] ss:$8 sps:$4 sm:$0xff]   ;;  %v7364_v5 = vld [vmem:[#allocation8 + $0x14] ss:$8 sps:$4 sm:$0xff]  }
0x1e25   :  { %v7365_v18 = vld [vmem:[#allocation8] ss:$8 sps:$4 sm:$0xff]  }
0x1e26   :  { %v5566_v33 = vpack.c.bf16 %v5564_v28, %v5562_v14  ;;  %v7362_v14 = vld [vmem:[#allocation8 + $0x10] ss:$8 sps:$4 sm:$0xff]   ;;  %v7367_v28 = vld [vmem:[#allocation8 + $0x4] ss:$8 sps:$4 sm:$0xff]  }
0x1e27   :  { %5900 = vmatpush1.bf16.msra.mxu1 %v7350_v60 }
0x1e28   :  { %5701 = vmatprep.mubr.bf16.mxu0 %v5566_v33  ;;  %5901 = vmatprep.subr.bf16.mxu1 %v7355_v8 }
0x1e29   :  { %5702 = vmatmul.mubr.bf16.vlgmr.msra.gmra.mxu0 %v5565_v9 }
0x1e2b   :  { %5902 = vmatpush1.bf16.msra.mxu1 %v7353_v37 }
0x1e2c   :  { %5903 = vmatprep.subr.bf16.mxu1 %v7358_v43 }
0x1e2f   :  { %5904 = vmatpush1.bf16.msra.mxu1 %v7356_v11 }
0x1e30   :  { %5905 = vmatprep.subr.bf16.mxu1 %v7361_v58 }
0x1e33   :  { %5906 = vmatpush1.bf16.msra.mxu1 %v7359_v20 }
0x1e34   :  { %5907 = vmatprep.subr.bf16.mxu1 %v7364_v5 }
0x1e37   :  { %5908 = vmatpush1.bf16.msra.mxu1 %v7362_v14 }
0x1e38   :  { %5909 = vmatprep.subr.bf16.mxu1 %v7367_v28 }
0x1e3b   :  { %5910 = vmatpush1.bf16.msra.mxu1 %v7365_v18 }
0x1ee9   :  { %v6556_v53 = vpop.f32.mrf.mxu0 }
0x1eeb   :  { %v6557_v38 = vpop.f32.mrf.mxu0 }
0x1eec   :  { %v6558_v16 = vadd.f32 %v6557_v38, %v6556_v53 }
0x1eed   :  { %v6559_v15 = vpop.f32.mrf.mxu0 }
0x1eee   :  { %v5704_v57 = vadd.f32 %v6558_v16, %v6257_v13 }
0x1eef   :  { %v6560_v34 = vpop.f32.mrf.mxu0 }
0x1ef0   :  { %v6561_v17 = vadd.f32 %v6560_v34, %v6559_v15  ;;  %v5710_v7 = vadd.f32 %v5704_v57, %v5424_v59  ;;  %v6274_v34 = vld [vmem:[%s8866_s11] ss:$0 sm:$0xff]  ;;  %s7661_s11 = smov [#allocation10]  }
0x1ef2   :  { %v5707_v1 = vadd.f32 %v6561_v17, %v6257_v13  ;;  %5712 = vadd.xlane.f32.xlu1 %v5710_v7 }
0x1ef4   :  { %v5711_v56 = vadd.f32 %v5707_v1, %v5425_v54 }
0x1ef6   :  { %5714 = vadd.xlane.f32.xlu0 %v5711_v56 }
0x1f7b   :  { %v5713_v40 = vpop.xlane.xlu1 %5712 }
0x1f7c   :  { %v5716_v63 = vmul.f32 0.0078125, %v5713_v40 }
0x1f7e   :  { %v5718_v47 = vsub.f32 %v5710_v7, %v5716_v63 }
0x1f7f   :  { %v5715_v3 = vpop.xlane.xlu0 %5714 }
0x1f80   :  { %v5717_v25 = vmul.f32 0.0078125, %v5715_v3  ;;  %v5720_v46 = vmul.f32 %v5718_v47, %v5718_v47 }
0x1f82   :  { %v5719_v42 = vsub.f32 %v5711_v56, %v5717_v25  ;;  %5722 = vadd.xlane.f32.xlu1 %v5720_v46  ;;  %v6275_v56 = vld [vmem:[%s8867_s12] ss:$0 sm:$0xff]  ;;  %s5947_s12 = sshll.u32 %s7661_s11, 4  ;;  %s5948_s12 = int_to_ptr.vmem [resolvable:$true] %s5947_s12 }
0x1f83   :  { %v5803_v25 = vld [vmem:[%s8869_s14] sm:$0x3]  ;;  %s7618_s14 = scalar_lea.vmem %s5948_s12, 512  ;;  %p7623_p7 = scmp.lt.s32.totalorder %s5948_s12, %s5948_s12 }
0x1f84   :  { %v5721_v36 = vmul.f32 %v5719_v42, %v5719_v42  ;;  %v5808_v46 = vrot.slane %v5803_v25, %v7794_v35  ;;  %p7619_p6 = scmp.ne.s32.totalorder %s5948_s12, %s7618_s14  ;;  %p7624_p8 = scmp.lt.s32.totalorder %s7618_s14, %s7618_s14 }
0x1f86   :  { %5724 = vadd.xlane.f32.xlu0 %v5721_v36  ;;  %p7625_p9 = por %p7624_p8, %p7623_p7 }
0x1f88   :  { %p7626_p10 = pnand %p7625_p9, %p7619_p6 }
0x200b   :  { %v5723_v23 = vpop.xlane.xlu1 %5722 }
0x200c   :  { %v5726_v21 = vmul.f32 0.0078125, %v5723_v23 }
0x200e   :  { %v5728_v12 = vadd.f32 1e-05, %v5726_v21 }
0x200f   :  { %v5725_v49 = vpop.xlane.xlu0 %5724 }
0x2010   :  { %7516 = vrsqrt.f32 %v5728_v12  ;;  %v5727_v44 = vmul.f32 0.0078125, %v5725_v49 }
0x2012   :  { %v5729_v19 = vadd.f32 1e-05, %v5727_v44 }
0x2014   :  { %7518 = vrsqrt.f32 %v5729_v19 }
0x201d   :  { %v7517_v51 = vpop.eup %7516 }
0x201e   :  { %v5732_v62 = vmul.f32 %v7517_v51, %v5718_v47 }
0x2020   :  { %v5738_v29 = vmul.f32 %v5737_v10, %v5732_v62 }
0x2021   :  { %v7519_v26 = vpop.eup %7518 }
0x2022   :  { %v5744_v27 = vadd.f32 %v5743_v61, %v5738_v29  ;;  %v5733_v59 = vmul.f32 %v7519_v26, %v5719_v42  ;;  %v5812_v42 = vrot.slane %v5803_v25, %v7785_v31 }
0x2024   :  { %5748 = vadd.xlane.f32.xlu1 %v5744_v27  ;;  %v5739_v54 = vmul.f32 %v5737_v10, %v5733_v59 }
0x2026   :  { %v5745_v50 = vadd.f32 %v5743_v61, %v5739_v54 }
0x2028   :  { %5750 = vadd.xlane.f32.xlu0 %v5745_v50 }
0x20ad   :  { %v5749_v55 = vpop.xlane.xlu1 %5748 }
0x20ae   :  { %v5752_v6 = vmul.f32 0.0078125, %v5749_v55 }
0x20b0   :  { %v5754_v41 = vsub.f32 %v5744_v27, %v5752_v6 }
0x20b1   :  { %v5751_v45 = vpop.xlane.xlu0 %5750 }
0x20b2   :  { %v5753_v32 = vmul.f32 0.0078125, %v5751_v45  ;;  %v5756_v4 = vmul.f32 %v5754_v41, %v5754_v41 }
0x20b4   :  { %v5755_v30 = vsub.f32 %v5745_v50, %v5753_v32  ;;  %5758 = vadd.xlane.f32.xlu1 %v5756_v4 }
0x20b6   :  { %v5757_v52 = vmul.f32 %v5755_v30, %v5755_v30 }
0x20b8   :  { %5760 = vadd.xlane.f32.xlu0 %v5757_v52 }
0x213d   :  { %v5759_v33 = vpop.xlane.xlu1 %5758 }
0x213e   :  { %v5762_v9 = vmul.f32 0.0078125, %v5759_v33 }
0x2140   :  { %v5764_v53 = vadd.f32 1e-05, %v5762_v9 }
0x2141   :  { %v5761_v13 = vpop.xlane.xlu0 %5760 }
0x2142   :  { %7520 = vrsqrt.f32 %v5764_v53  ;;  %v5763_v38 = vmul.f32 0.0078125, %v5761_v13 }
0x2144   :  { %v5765_v16 = vadd.f32 1e-05, %v5763_v38 }
0x2146   :  { %7522 = vrsqrt.f32 %v5765_v16 }
0x214f   :  { %v7521_v15 = vpop.eup %7520 }
0x2150   :  { %v5768_v57 = vmul.f32 %v7521_v15, %v5754_v41 }
0x2152   :  { %v5776_v1 = vmul.f32 %v6274_v34, %v5768_v57 }
0x2153   :  { %v7523_v17 = vpop.eup %7522 }
0x2154   :  { %v5769_v7 = vmul.f32 %v7523_v17, %v5755_v30  ;;  %v5784_v63 = vadd.f32 %v6275_v56, %v5776_v1 }
0x2156   :  { %v5777_v40 = vmul.f32 %v6274_v34, %v5769_v7 }
0x2158   :  { %v5785_v47 = vadd.f32 %v6275_v56, %v5777_v40 }
0x215a   :  { %v5786_v3 = vpack.c.bf16 %v5785_v47, %v5784_v63 }
0x215c   :  { %5928 = vmatmul.mubr.bf16.vlgmr.msra.gmra.mxu1 %v5786_v3 }
0x221c   :  { %v5929_v36 = vpop.f32.mrf.mxu1 }
0x221d   :  { %v5930_v23 = vadd.f32 %v5929_v36, %v5808_v46 }
0x221e   :  { %v5931_v21 = vpop.f32.mrf.mxu1 }
0x221f   :  { %5938 = vst [vmem:[#allocation10] sm:$0xff] %v5930_v23  ;;  %v5932_v12 = vadd.f32 %v5931_v21, %v5812_v42 }
0x2220   :  { %v5933_v49 = vpop.f32.mrf.mxu1 }
0x2221   :  { %5939 = vst [vmem:[#allocation10 + $0x8] sm:$0xff] %v5932_v12  ;;  %v5934_v44 = vadd.f32 %v5933_v49, %v5808_v46 }
0x2222   :  { %v5935_v19 = vpop.f32.mrf.mxu1 }
0x2223   :  { %5940 = vst [vmem:[#allocation10 + $0x10] sm:$0xff] %v5934_v44  ;;  %v5936_v39 = vadd.f32 %v5935_v19, %v5812_v42 }
0x2225   :  { %5941 = vst [vmem:[#allocation10 + $0x18] sm:$0xff] %v5936_v39 }
0x2226   :  { %7629 = shalt.err (!%p7626_p10)
}
0x2227   :  { %s7662_s19 = smov 256   ;;  %s7663_s23 = smov 16  }
0x2228   :  { %5953 = dma.vmem_to_hbm [thread:$0]  %s5948_s12, 512, %s8870_s15, [#allocation4], %s7662_s19, %s7662_s19, %s7663_s23  }
0x2229   :  { %7644 = dma.done.wait [#allocation4], 512  }
0x222a   :  { %7645 = vsyncadd [#allocation4], 4294966784 }
0x222b   :  { %5957 = vsyncpa [#allocation3], 1 }
0x222c   :  { %5958 = vsyncpa [#allocation6], 1 }
0x222d   :  { %5959 = vsyncpa [#allocation9], 1 }
0x222e   :  { %5960 = vsyncpa [#allocation4], 1 }

</bundles_post_ra>
